<compile_context>
chip_gen: v5e
topology: v5e:2x2
jax: 0.10.0
libtpu: 0.0.40
codegen_flags: <defaults>
</compile_context>

<pallas_src>
import math
import functools

import jax
import jax.numpy as jnp
from jax.experimental import pallas as pl
from jax.experimental.pallas import tpu as pltpu


# ---------------------------------------------------------------------------
# VMEM budget / tiling helpers
# ---------------------------------------------------------------------------
def _query_vmem_limit_bytes():
    # ~3/4 of physical VMEM: ~96 MiB on v5e/v6e (128 MiB), ~48 MiB on v7x (64 MiB).
    try:
        cap = int(pltpu.get_tpu_info().vmem_capacity_bytes)
    except Exception:
        cap = 64 * 1024 * 1024
    return max(32 * 1024 * 1024, min((cap * 3) // 4, 112 * 1024 * 1024))


_VMEM_LIMIT_BYTES = _query_vmem_limit_bytes()
_LARGE_VMEM = _VMEM_LIMIT_BYTES >= 80 * 1024 * 1024
_MAX_TOKEN_TILE = 1024 if _LARGE_VMEM else 512
_MAX_VOCAB_TILE = 1024 if _LARGE_VMEM else 512

_LAYER_KEYS = ("wqkv", "bqkv", "wo", "bo", "ln1w", "ln1b",
               "w1", "b1", "w2", "b2", "ln2w", "ln2b")
_REF_LAYER_KEYS = ("wq", "bq", "wk", "bk", "wv", "bv", "wo", "bo", "ln1w", "ln1b",
                   "w1", "b1", "w2", "b2", "ln2w", "ln2b")


def _round_up(n, m):
    return ((n + m - 1) // m) * m


def _choose_tile(n, align, max_tile):
    """Pick a tile (multiple of `align`, <= max_tile) and padded extent.
    Prefer an exact divisor of the aligned extent; otherwise pad up."""
    n_aligned = _round_up(max(n, align), align)
    cap = max(align, (min(max_tile, n_aligned) // align) * align)
    t = cap
    while t >= align:
        if n_aligned % t == 0:
            break
        t -= align
    if t >= max(align, cap // 4):          # reasonably large exact divisor
        return t, n_aligned
    return cap, _round_up(n_aligned, cap)  # pad instead of using tiny tiles


def _const_spec(a):
    """Full-array block with a constant index map -> weight stays resident."""
    zeros = (0,) * a.ndim
    # TODO(synk): on v7x, pipeline_mode=pl.Buffered(1) on these specs would halve
    # the resident-weight VMEM footprint (constant-index blocks need no double buffer).
    return pl.BlockSpec(a.shape, lambda *_: zeros)


def _compiler_params(semantics):
    return pltpu.CompilerParams(dimension_semantics=semantics,
                                vmem_limit_bytes=_VMEM_LIMIT_BYTES)


def _layernorm(x, w, b, eps=1e-5):
    mu = jnp.mean(x, axis=-1, keepdims=True)
    var = jnp.mean((x - mu) ** 2, axis=-1, keepdims=True)
    return (x - mu) * jax.lax.rsqrt(var + eps) * w + b


# ---------------------------------------------------------------------------
# Kernel bodies
# ---------------------------------------------------------------------------
def _layer_math(x, wqkv, bqkv, wo, bo, ln1w, ln1b,
                w1, b1, w2, b2, ln2w, ln2b, *, num_heads):
    """One post-norm encoder layer on a [S, D] f32 activation block.
       wqkv: [D, 3D] bf16 (1/sqrt(hd) folded into Q columns), bqkv: [1, 3D] f32,
       wo:   [D, D]  bf16 ([in, out]),  w1: [D, F] bf16,  w2: [F, D] bf16."""
    S, D = x.shape
    hd = D // num_heads

    # Fused Q/K/V projection: one lane-dense MXU matmul with N = 3*D.
    qkv = jnp.dot(x.astype(jnp.bfloat16), wqkv,
                  preferred_element_type=jnp.float32) + bqkv          # [S, 3D] f32

    # Per-head attention (score contraction over hd is inherent to attention).
    ctx_heads = []
    for h in range(num_heads):
        qh = qkv[:, h * hd:(h + 1) * hd]
        kh = qkv[:, D + h * hd:D + (h + 1) * hd]
        vh = qkv[:, 2 * D + h * hd:2 * D + (h + 1) * hd]
        s = jnp.einsum("qe,ke->qk",
                       qh.astype(jnp.bfloat16), kh.astype(jnp.bfloat16),
                       preferred_element_type=jnp.float32)            # [S, S]
        s = s - jnp.max(s, axis=-1, keepdims=True)
        p = jnp.exp(s)
        p = p / jnp.sum(p, axis=-1, keepdims=True)                    # exact softmax
        ctx_heads.append(jnp.einsum("qk,ke->qe",
                                    p.astype(jnp.bfloat16), vh.astype(jnp.bfloat16),
                                    preferred_element_type=jnp.float32))
    ctx = ctx_heads[0] if num_heads == 1 else jnp.concatenate(ctx_heads, axis=-1)

    # Single fused output projection (K = D) + residual + LN1.
    attn = jnp.dot(ctx.astype(jnp.bfloat16), wo,
                   preferred_element_type=jnp.float32) + bo
    x1 = _layernorm(x + attn, ln1w, ln1b)

    # FFN + residual + LN2, fused in the same kernel (no HBM round-trip).
    h1 = jnp.maximum(jnp.dot(x1.astype(jnp.bfloat16), w1,
                             preferred_element_type=jnp.float32) + b1, 0.0)
    f = jnp.dot(h1.astype(jnp.bfloat16), w2,
                preferred_element_type=jnp.float32) + b2
    return _layernorm(x1 + f, ln2w, ln2b)


def _layer_kernel(x_ref, wqkv_ref, bqkv_ref, wo_ref, bo_ref, ln1w_ref, ln1b_ref,
                  w1_ref, b1_ref, w2_ref, b2_ref, ln2w_ref, ln2b_ref, o_ref,
                  *, num_heads):
    o_ref[0] = _layer_math(
        x_ref[0], wqkv_ref[...], bqkv_ref[...], wo_ref[...], bo_ref[...],
        ln1w_ref[...], ln1b_ref[...], w1_ref[...], b1_ref[...],
        w2_ref[...], b2_ref[...], ln2w_ref[...], ln2b_ref[...],
        num_heads=num_heads).astype(o_ref.dtype)


def _embed_layer_kernel(x_ref, pe_ref, wqkv_ref, bqkv_ref, wo_ref, bo_ref,
                        ln1w_ref, ln1b_ref, w1_ref, b1_ref, w2_ref, b2_ref,
                        ln2w_ref, ln2b_ref, o_ref, *, num_heads, embed_scale):
    # Fused embedding-scale + positional encoding (layer 0 only).
    x = x_ref[0] * embed_scale + pe_ref[...]
    o_ref[0] = _layer_math(
        x, wqkv_ref[...], bqkv_ref[...], wo_ref[...], bo_ref[...],
        ln1w_ref[...], ln1b_ref[...], w1_ref[...], b1_ref[...],
        w2_ref[...], b2_ref[...], ln2w_ref[...], ln2b_ref[...],
        num_heads=num_heads).astype(o_ref.dtype)


def _fc_out_kernel(x_ref, w_ref, b_ref, o_ref):
    y = jnp.dot(x_ref[...].astype(jnp.bfloat16), w_ref[...],
                preferred_element_type=jnp.float32) + b_ref[...]
    o_ref[...] = y.astype(o_ref.dtype)


def _embed_pe_kernel(x_ref, pe_ref, o_ref, *, embed_scale):
    # Only used in the degenerate num_layers == 0 case.
    o_ref[0] = x_ref[0] * embed_scale + pe_ref[...]


# ---------------------------------------------------------------------------
# Parameters (PyTorch layout) and host-side preparation for the kernels
# ---------------------------------------------------------------------------
def init_params(key, vocab_size, d_model, num_heads, num_layers, dim_ff):
    std = d_model ** (-0.5)
    keys = jax.random.split(key, 3 + num_layers)
    params = {
        "embedding": jax.random.normal(keys[0], (vocab_size, d_model), jnp.float32) * std,
        "fc_out_w": jax.random.normal(keys[1], (vocab_size, d_model), jnp.float32) * std,
        "fc_out_b": jnp.zeros((1, vocab_size), jnp.float32),
        "layers": [],
    }
    for l in range(num_layers):
        lk = jax.random.split(keys[3 + l], 8)
        w_std = 0.05
        params["layers"].append({
            "wq": jax.random.normal(lk[0], (d_model, d_model), jnp.float32) * w_std,
            "bq": jnp.zeros((1, d_model), jnp.float32),
            "wk": jax.random.normal(lk[1], (d_model, d_model), jnp.float32) * w_std,
            "bk": jnp.zeros((1, d_model), jnp.float32),
            "wv": jax.random.normal(lk[2], (d_model, d_model), jnp.float32) * w_std,
            "bv": jnp.zeros((1, d_model), jnp.float32),
            "wo": jax.random.normal(lk[3], (d_model, d_model), jnp.float32) * w_std,
            "bo": jnp.zeros((1, d_model), jnp.float32),
            "ln1w": jnp.ones((1, d_model), jnp.float32),
            "ln1b": jnp.zeros((1, d_model), jnp.float32),
            "w1": jax.random.normal(lk[4], (dim_ff, d_model), jnp.float32) * w_std,
            "b1": jnp.zeros((1, dim_ff), jnp.float32),
            "w2": jax.random.normal(lk[5], (d_model, dim_ff), jnp.float32) * w_std,
            "b2": jnp.zeros((1, d_model), jnp.float32),
            "ln2w": jnp.ones((1, d_model), jnp.float32),
            "ln2b": jnp.zeros((1, d_model), jnp.float32),
        })
    return params


def prepare_params(params, *, num_heads):
    """One-time host-side repacking:
       - fused [D, 3D] QKV weight (pre-transposed to [in, out], 1/sqrt(hd) folded into Q),
       - [D, D] output-projection weight, [D, F]/[F, D] FFN weights,
       - bf16 MXU operands, f32 biases / LayerNorm params, [D, V] fc_out weight."""
    d_model = params["embedding"].shape[1]
    assert d_model % num_heads == 0
    hd = d_model // num_heads
    scale = 1.0 / math.sqrt(hd)

    prepared = {
        "embedding": params["embedding"].astype(jnp.float32),
        "fc_out_w": jnp.transpose(params["fc_out_w"]).astype(jnp.bfloat16),  # [D, V]
        "fc_out_b": params["fc_out_b"].astype(jnp.float32),                  # [1, V]
        "layers": [],
    }
    for lp in params["layers"]:
        wqkv = jnp.concatenate(
            [jnp.transpose(lp["wq"]) * scale,       # fold attention scale into Q
             jnp.transpose(lp["wk"]),
             jnp.transpose(lp["wv"])], axis=1).astype(jnp.bfloat16)          # [D, 3D]
        bqkv = jnp.concatenate(
            [lp["bq"] * scale, lp["bk"], lp["bv"]], axis=1).astype(jnp.float32)  # [1, 3D]
        prepared["layers"].append({
            "wqkv": wqkv,
            "bqkv": bqkv,
            "wo": jnp.transpose(lp["wo"]).astype(jnp.bfloat16),   # [D, D] ([in, out])
            "bo": lp["bo"].astype(jnp.float32),
            "ln1w": lp["ln1w"].astype(jnp.float32),
            "ln1b": lp["ln1b"].astype(jnp.float32),
            "w1": jnp.transpose(lp["w1"]).astype(jnp.bfloat16),   # [D, F]
            "b1": lp["b1"].astype(jnp.float32),
            "w2": jnp.transpose(lp["w2"]).astype(jnp.bfloat16),   # [F, D]
            "b2": lp["b2"].astype(jnp.float32),
            "ln2w": lp["ln2w"].astype(jnp.float32),
            "ln2b": lp["ln2b"].astype(jnp.float32),
        })
    return prepared


def make_pos_encoding(max_seq_len, d_model):
    pos = jnp.arange(max_seq_len, dtype=jnp.float32)[:, None]
    div = jnp.exp(jnp.arange(0, d_model, 2, dtype=jnp.float32)
                  * (-math.log(10000.0) / d_model))
    pe = jnp.zeros((max_seq_len, d_model), jnp.float32)
    pe = pe.at[:, 0::2].set(jnp.sin(pos * div))
    if d_model % 2 == 1:
        pe = pe.at[:, 1::2].set(jnp.cos(pos * div[:-1]))
    else:
        pe = pe.at[:, 1::2].set(jnp.cos(pos * div))
    return pe


# ---------------------------------------------------------------------------
# Forward pass (Pallas)
# ---------------------------------------------------------------------------
def transformer_forward_pallas(prepared, pe, input_ids, *, num_heads):
    B, S = input_ids.shape
    D = prepared["embedding"].shape[1]
    tokens = B * S
    embed_scale = math.sqrt(D)

    # TODO(synk): embedding gather is data-dependent -> kept as an XLA gather.
    # TODO(synk): dropout is identity in eval mode; no stochastic dropout implemented.
    x = jnp.take(prepared["embedding"], input_ids, axis=0)      # [B, S, D] f32
    pe_s = pe[:S, :].astype(jnp.float32)                        # [S, D]

    layers = prepared["layers"]

    if not layers:
        x = pl.pallas_call(
            functools.partial(_embed_pe_kernel, embed_scale=embed_scale),
            out_shape=jax.ShapeDtypeStruct((B, S, D), jnp.float32),
            grid=(B,),
            in_specs=[pl.BlockSpec((1, S, D), lambda b: (b, 0, 0)),
                      pl.BlockSpec((S, D), lambda b: (0, 0))],
            out_specs=pl.BlockSpec((1, S, D), lambda b: (b, 0, 0)),
            compiler_params=_compiler_params(("parallel",)),
        )(x, pe_s)

    # ---- one fused pallas_call per encoder layer (attn + LN1 + FFN + LN2) ----
    # TODO(synk): for long sequences, switch to flash-style KV tiling (the per-head
    # [S,S] score block won't fit VMEM once S reaches a few thousand) and add a
    # second parallel grid axis (query tiles) so both v7x TensorCores stay busy.
    for li, layer in enumerate(layers):
        weights = [layer[k] for k in _LAYER_KEYS]
        if li == 0:
            kernel = functools.partial(_embed_layer_kernel,
                                       num_heads=num_heads, embed_scale=embed_scale)
            extra_inputs = [pe_s]
            extra_specs = [pl.BlockSpec((S, D), lambda b: (0, 0))]
        else:
            kernel = functools.partial(_layer_kernel, num_heads=num_heads)
            extra_inputs, extra_specs = [], []
        x = pl.pallas_call(
            kernel,
            out_shape=jax.ShapeDtypeStruct((B, S, D), jnp.float32),
            grid=(B,),
            in_specs=([pl.BlockSpec((1, S, D), lambda b: (b, 0, 0))]
                      + extra_specs
                      + [_const_spec(w) for w in weights]),
            out_specs=pl.BlockSpec((1, S, D), lambda b: (b, 0, 0)),
            compiler_params=_compiler_params(("parallel",)),
        )(x, *extra_inputs, *weights)

    # ---- output projection: padded (8,128)-aligned tiles, lane-dense stores ----
    w_out = prepared["fc_out_w"]        # [D, V] bf16
    b_out = prepared["fc_out_b"]        # [1, V] f32
    V = w_out.shape[1]
    xf = x.reshape(tokens, D)

    tt, T_pad = _choose_tile(tokens, 8, _MAX_TOKEN_TILE)
    vt, V_pad = _choose_tile(V, 128, _MAX_VOCAB_TILE)
    if T_pad != tokens:
        xf = jnp.pad(xf, ((0, T_pad - tokens), (0, 0)))
    if V_pad != V:
        w_out = jnp.pad(w_out, ((0, 0), (0, V_pad - V)))
        b_out = jnp.pad(b_out, ((0, 0), (0, V_pad - V)))

    t_tiles = T_pad // tt
    v_tiles = V_pad // vt

    # Choose the grid order that re-streams the smaller operand.
    bytes_w = D * V_pad * 2                     # bf16 weight
    bytes_x = T_pad * D * 4                     # f32 activations
    vocab_outer = (v_tiles * bytes_x + bytes_w) < (t_tiles * bytes_w + bytes_x)

    if vocab_outer:
        grid = (v_tiles, t_tiles)
        x_spec = pl.BlockSpec((tt, D), lambda j, i: (i, 0))
        w_spec = pl.BlockSpec((D, vt), lambda j, i: (0, j))
        b_spec = pl.BlockSpec((1, vt), lambda j, i: (0, j))
        o_spec = pl.BlockSpec((tt, vt), lambda j, i: (i, j))
    else:
        grid = (t_tiles, v_tiles)
        x_spec = pl.BlockSpec((tt, D), lambda i, j: (i, 0))
        w_spec = pl.BlockSpec((D, vt), lambda i, j: (0, j))
        b_spec = pl.BlockSpec((1, vt), lambda i, j: (0, j))
        o_spec = pl.BlockSpec((tt, vt), lambda i, j: (i, j))

    logits = pl.pallas_call(
        _fc_out_kernel,
        out_shape=jax.ShapeDtypeStruct((T_pad, V_pad), jnp.float32),
        grid=grid,
        in_specs=[x_spec, w_spec, b_spec],
        out_specs=o_spec,
        compiler_params=_compiler_params(("parallel", "parallel")),
    )(xf, w_out, b_out)
    return logits[:tokens, :V].reshape(B, S, V)


# ---------------------------------------------------------------------------
# Pure-JAX f32 reference (PyTorch-layout weights), for correctness checking
# ---------------------------------------------------------------------------
def _encoder_layer_ref(x, wq, bq, wk, bk, wv, bv, wo, bo, ln1w, ln1b,
                       w1, b1, w2, b2, ln2w, ln2b, *, num_heads):
    B, S, D = x.shape
    hd = D // num_heads
    scale = 1.0 / math.sqrt(hd)
    q = jnp.einsum("bsd,ed->bse", x, wq) + bq
    k = jnp.einsum("bsd,ed->bse", x, wk) + bk
    v = jnp.einsum("bsd,ed->bse", x, wv) + bv
    qh = q.reshape(B, S, num_heads, hd).transpose(0, 2, 1, 3)
    kh = k.reshape(B, S, num_heads, hd).transpose(0, 2, 1, 3)
    vh = v.reshape(B, S, num_heads, hd).transpose(0, 2, 1, 3)
    s = jnp.einsum("bhqe,bhke->bhqk", qh, kh) * scale
    p = jax.nn.softmax(s, axis=-1)
    ctx = jnp.einsum("bhqk,bhke->bhqe", p, vh).transpose(0, 2, 1, 3).reshape(B, S, D)
    attn = jnp.einsum("bsd,ed->bse", ctx, wo) + bo
    x1 = _layernorm(x + attn, ln1w, ln1b)
    h1 = jnp.maximum(jnp.einsum("bsd,fd->bsf", x1, w1) + b1, 0.0)
    ff = jnp.einsum("bsf,df->bsd", h1, w2) + b2
    return _layernorm(x1 + ff, ln2w, ln2b)


def transformer_forward_ref(params, pe, input_ids, *, num_heads):
    B, S = input_ids.shape
    D = params["embedding"].shape[1]
    x = jnp.take(params["embedding"], input_ids, axis=0) * math.sqrt(D) + pe[None, :S, :]
    for layer in params["layers"]:
        x = _encoder_layer_ref(x, *[layer[k] for k in _REF_LAYER_KEYS],
                               num_heads=num_heads)
    return jnp.einsum("bsd,vd->bsv", x, params["fc_out_w"]) + params["fc_out_b"]


# ---------------------------------------------------------------------------
if __name__ == "__main__":
    # Small but tile-friendly shapes: D, dim_ff multiples of 128, head_dim = 64.
    vocab_size = 256
    d_model = 128
    num_heads = 2
    num_layers = 2
    dim_ff = 256
    max_seq_len = 32
    batch, seq = 2, 16

    key = jax.random.PRNGKey(0)
    k_params, k_ids = jax.random.split(key)

    params = init_params(k_params, vocab_size, d_model, num_heads, num_layers, dim_ff)
    pe = make_pos_encoding(max_seq_len, d_model)
    input_ids = jax.random.randint(k_ids, (batch, seq), 0, vocab_size, dtype=jnp.int32)

    prepared = prepare_params(params, num_heads=num_heads)

    fwd = jax.jit(functools.partial(transformer_forward_pallas, num_heads=num_heads))
    logits = jax.block_until_ready(fwd(prepared, pe, input_ids))

    ref = jax.block_until_ready(
        transformer_forward_ref(params, pe, input_ids, num_heads=num_heads))

    assert logits.shape == (batch, seq, vocab_size)
    max_err = float(jnp.max(jnp.abs(logits - ref)))
    # Tolerance covers bf16-MXU-operand / f32-accumulate matmuls vs the all-f32 reference.
    assert bool(jnp.allclose(logits, ref, rtol=2e-2, atol=2e-2)), \
        f"mismatch vs reference (max abs err {max_err})"

    print("KERNEL_OK")
</pallas_src>

<mosaic_0001>
module attributes {stable_mosaic.version = 11 : i64} {
  func.func @_layer_kernel(%arg0: i32, %arg1: memref<1x16x128xf32, #tpu.memory_space<vmem>>, %arg2: memref<128x384xbf16, #tpu.memory_space<vmem>>, %arg3: memref<1x384xf32, #tpu.memory_space<vmem>>, %arg4: memref<128x128xbf16, #tpu.memory_space<vmem>>, %arg5: memref<1x128xf32, #tpu.memory_space<vmem>>, %arg6: memref<1x128xf32, #tpu.memory_space<vmem>>, %arg7: memref<1x128xf32, #tpu.memory_space<vmem>>, %arg8: memref<128x256xbf16, #tpu.memory_space<vmem>>, %arg9: memref<1x256xf32, #tpu.memory_space<vmem>>, %arg10: memref<256x128xbf16, #tpu.memory_space<vmem>>, %arg11: memref<1x128xf32, #tpu.memory_space<vmem>>, %arg12: memref<1x128xf32, #tpu.memory_space<vmem>>, %arg13: memref<1x128xf32, #tpu.memory_space<vmem>>, %arg14: memref<1x16x128xf32, #tpu.memory_space<vmem>>) attributes {dimension_semantics = [#tpu.dimension_semantics<parallel>], iteration_bounds = array<i64: 2>, scalar_prefetch = 0 : i64, scratch_operands = 0 : i64, tpu.core_type = #tpu.core_type<tc>, window_params = [{transform_indices = @transform_0, window_bounds = array<i64: 1, 16, 128>}, {pipeline_mode = #tpu.pipeline_mode<synchronous>, transform_indices = @transform_1, window_bounds = array<i64: 128, 384>}, {pipeline_mode = #tpu.pipeline_mode<synchronous>, transform_indices = @transform_2, window_bounds = array<i64: 1, 384>}, {pipeline_mode = #tpu.pipeline_mode<synchronous>, transform_indices = @transform_3, window_bounds = array<i64: 128, 128>}, {pipeline_mode = #tpu.pipeline_mode<synchronous>, transform_indices = @transform_4, window_bounds = array<i64: 1, 128>}, {pipeline_mode = #tpu.pipeline_mode<synchronous>, transform_indices = @transform_5, window_bounds = array<i64: 1, 128>}, {pipeline_mode = #tpu.pipeline_mode<synchronous>, transform_indices = @transform_6, window_bounds = array<i64: 1, 128>}, {pipeline_mode = #tpu.pipeline_mode<synchronous>, transform_indices = @transform_7, window_bounds = array<i64: 128, 256>}, {pipeline_mode = #tpu.pipeline_mode<synchronous>, transform_indices = @transform_8, window_bounds = array<i64: 1, 256>}, {pipeline_mode = #tpu.pipeline_mode<synchronous>, transform_indices = @transform_9, window_bounds = array<i64: 256, 128>}, {pipeline_mode = #tpu.pipeline_mode<synchronous>, transform_indices = @transform_10, window_bounds = array<i64: 1, 128>}, {pipeline_mode = #tpu.pipeline_mode<synchronous>, transform_indices = @transform_11, window_bounds = array<i64: 1, 128>}, {pipeline_mode = #tpu.pipeline_mode<synchronous>, transform_indices = @transform_12, window_bounds = array<i64: 1, 128>}, {transform_indices = @transform_13, window_bounds = array<i64: 1, 16, 128>}]} {
    %c0 = arith.constant 0 : index
    %c0_0 = arith.constant 0 : index
    %c0_1 = arith.constant 0 : index
    %0 = vector.load %arg1[%c0, %c0_0, %c0_1] : memref<1x16x128xf32, #tpu.memory_space<vmem>>, vector<1x16x128xf32>
    %1 = vector.shape_cast %0 : vector<1x16x128xf32> to vector<16x128xf32>
    %c0_2 = arith.constant 0 : index
    %c0_3 = arith.constant 0 : index
    %2 = vector.load %arg2[%c0_2, %c0_3] : memref<128x384xbf16, #tpu.memory_space<vmem>>, vector<128x384xbf16>
    %c0_4 = arith.constant 0 : index
    %c0_5 = arith.constant 0 : index
    %3 = vector.load %arg3[%c0_4, %c0_5] : memref<1x384xf32, #tpu.memory_space<vmem>>, vector<1x384xf32>
    %c0_6 = arith.constant 0 : index
    %c0_7 = arith.constant 0 : index
    %4 = vector.load %arg4[%c0_6, %c0_7] : memref<128x128xbf16, #tpu.memory_space<vmem>>, vector<128x128xbf16>
    %c0_8 = arith.constant 0 : index
    %c0_9 = arith.constant 0 : index
    %5 = vector.load %arg5[%c0_8, %c0_9] : memref<1x128xf32, #tpu.memory_space<vmem>>, vector<1x128xf32>
    %c0_10 = arith.constant 0 : index
    %c0_11 = arith.constant 0 : index
    %6 = vector.load %arg6[%c0_10, %c0_11] : memref<1x128xf32, #tpu.memory_space<vmem>>, vector<1x128xf32>
    %c0_12 = arith.constant 0 : index
    %c0_13 = arith.constant 0 : index
    %7 = vector.load %arg7[%c0_12, %c0_13] : memref<1x128xf32, #tpu.memory_space<vmem>>, vector<1x128xf32>
    %c0_14 = arith.constant 0 : index
    %c0_15 = arith.constant 0 : index
    %8 = vector.load %arg8[%c0_14, %c0_15] : memref<128x256xbf16, #tpu.memory_space<vmem>>, vector<128x256xbf16>
    %c0_16 = arith.constant 0 : index
    %c0_17 = arith.constant 0 : index
    %9 = vector.load %arg9[%c0_16, %c0_17] : memref<1x256xf32, #tpu.memory_space<vmem>>, vector<1x256xf32>
    %c0_18 = arith.constant 0 : index
    %c0_19 = arith.constant 0 : index
    %10 = vector.load %arg10[%c0_18, %c0_19] : memref<256x128xbf16, #tpu.memory_space<vmem>>, vector<256x128xbf16>
    %c0_20 = arith.constant 0 : index
    %c0_21 = arith.constant 0 : index
    %11 = vector.load %arg11[%c0_20, %c0_21] : memref<1x128xf32, #tpu.memory_space<vmem>>, vector<1x128xf32>
    %c0_22 = arith.constant 0 : index
    %c0_23 = arith.constant 0 : index
    %12 = vector.load %arg12[%c0_22, %c0_23] : memref<1x128xf32, #tpu.memory_space<vmem>>, vector<1x128xf32>
    %c0_24 = arith.constant 0 : index
    %c0_25 = arith.constant 0 : index
    %13 = vector.load %arg13[%c0_24, %c0_25] : memref<1x128xf32, #tpu.memory_space<vmem>>, vector<1x128xf32>
    %14 = arith.truncf %1 : vector<16x128xf32> to vector<16x128xbf16>
    %cst = arith.constant dense<0.000000e+00> : vector<16x384xf32>
    %15 = tpu.matmul %14, %2, %cst {dimension_numbers = #tpu.dot_dimension_numbers<[1], [0], [0], [1], [0, 0, 1, 1], [], []>} : vector<16x128xbf16>, vector<128x384xbf16>, vector<16x384xf32> -> vector<16x384xf32>
    %16 = vector.broadcast %3 : vector<1x384xf32> to vector<16x384xf32>
    %17 = arith.addf %15, %16 : vector<16x384xf32>
    %18 = vector.extract_strided_slice %17 {offsets = [0, 0], sizes = [16, 64], strides = [1, 1]} : vector<16x384xf32> to vector<16x64xf32>
    %19 = vector.extract_strided_slice %17 {offsets = [0, 128], sizes = [16, 64], strides = [1, 1]} : vector<16x384xf32> to vector<16x64xf32>
    %20 = vector.extract_strided_slice %17 {offsets = [0, 256], sizes = [16, 64], strides = [1, 1]} : vector<16x384xf32> to vector<16x64xf32>
    %21 = arith.truncf %18 : vector<16x64xf32> to vector<16x64xbf16>
    %22 = arith.truncf %19 : vector<16x64xf32> to vector<16x64xbf16>
    "tpu.trace_start"() <{level = 10 : i32, message = "qe,ke->qk"}> : () -> ()
    %cst_26 = arith.constant dense<0.000000e+00> : vector<16x16xf32>
    %23 = tpu.matmul %21, %22, %cst_26 {dimension_numbers = #tpu.dot_dimension_numbers<[1], [1], [0], [0], [0, 0, 1, 0], [], []>} : vector<16x64xbf16>, vector<16x64xbf16>, vector<16x16xf32> -> vector<16x16xf32>
    "tpu.trace_stop"() : () -> ()
    %cst_27 = arith.constant dense<0xFF800000> : vector<16xf32>
    %24 = vector.multi_reduction <maximumf>, %23, %cst_27 [1] : vector<16x16xf32> to vector<16xf32>
    %25 = vector.shape_cast %24 : vector<16xf32> to vector<16x1xf32>
    %26 = vector.broadcast %25 : vector<16x1xf32> to vector<16x16xf32>
    %27 = arith.subf %23, %26 : vector<16x16xf32>
    %28 = math.exp %27 : vector<16x16xf32>
    %cst_28 = arith.constant dense<0.000000e+00> : vector<16xf32>
    %29 = vector.multi_reduction <add>, %28, %cst_28 [1] : vector<16x16xf32> to vector<16xf32>
    %30 = vector.shape_cast %29 : vector<16xf32> to vector<16x1xf32>
    %31 = vector.broadcast %30 : vector<16x1xf32> to vector<16x16xf32>
    %32 = arith.divf %28, %31 : vector<16x16xf32>
    %33 = arith.truncf %32 : vector<16x16xf32> to vector<16x16xbf16>
    %34 = arith.truncf %20 : vector<16x64xf32> to vector<16x64xbf16>
    "tpu.trace_start"() <{level = 10 : i32, message = "qk,ke->qe"}> : () -> ()
    %cst_29 = arith.constant dense<0.000000e+00> : vector<16x64xf32>
    %35 = tpu.matmul %33, %34, %cst_29 {dimension_numbers = #tpu.dot_dimension_numbers<[1], [0], [0], [1], [0, 0, 1, 1], [], []>} : vector<16x16xbf16>, vector<16x64xbf16>, vector<16x64xf32> -> vector<16x64xf32>
    "tpu.trace_stop"() : () -> ()
    %36 = vector.extract_strided_slice %17 {offsets = [0, 64], sizes = [16, 64], strides = [1, 1]} : vector<16x384xf32> to vector<16x64xf32>
    %37 = vector.extract_strided_slice %17 {offsets = [0, 192], sizes = [16, 64], strides = [1, 1]} : vector<16x384xf32> to vector<16x64xf32>
    %38 = vector.extract_strided_slice %17 {offsets = [0, 320], sizes = [16, 64], strides = [1, 1]} : vector<16x384xf32> to vector<16x64xf32>
    %39 = arith.truncf %36 : vector<16x64xf32> to vector<16x64xbf16>
    %40 = arith.truncf %37 : vector<16x64xf32> to vector<16x64xbf16>
    "tpu.trace_start"() <{level = 10 : i32, message = "qe,ke->qk"}> : () -> ()
    %cst_30 = arith.constant dense<0.000000e+00> : vector<16x16xf32>
    %41 = tpu.matmul %39, %40, %cst_30 {dimension_numbers = #tpu.dot_dimension_numbers<[1], [1], [0], [0], [0, 0, 1, 0], [], []>} : vector<16x64xbf16>, vector<16x64xbf16>, vector<16x16xf32> -> vector<16x16xf32>
    "tpu.trace_stop"() : () -> ()
    %cst_31 = arith.constant dense<0xFF800000> : vector<16xf32>
    %42 = vector.multi_reduction <maximumf>, %41, %cst_31 [1] : vector<16x16xf32> to vector<16xf32>
    %43 = vector.shape_cast %42 : vector<16xf32> to vector<16x1xf32>
    %44 = vector.broadcast %43 : vector<16x1xf32> to vector<16x16xf32>
    %45 = arith.subf %41, %44 : vector<16x16xf32>
    %46 = math.exp %45 : vector<16x16xf32>
    %cst_32 = arith.constant dense<0.000000e+00> : vector<16xf32>
    %47 = vector.multi_reduction <add>, %46, %cst_32 [1] : vector<16x16xf32> to vector<16xf32>
    %48 = vector.shape_cast %47 : vector<16xf32> to vector<16x1xf32>
    %49 = vector.broadcast %48 : vector<16x1xf32> to vector<16x16xf32>
    %50 = arith.divf %46, %49 : vector<16x16xf32>
    %51 = arith.truncf %50 : vector<16x16xf32> to vector<16x16xbf16>
    %52 = arith.truncf %38 : vector<16x64xf32> to vector<16x64xbf16>
    "tpu.trace_start"() <{level = 10 : i32, message = "qk,ke->qe"}> : () -> ()
    %cst_33 = arith.constant dense<0.000000e+00> : vector<16x64xf32>
    %53 = tpu.matmul %51, %52, %cst_33 {dimension_numbers = #tpu.dot_dimension_numbers<[1], [0], [0], [1], [0, 0, 1, 1], [], []>} : vector<16x16xbf16>, vector<16x64xbf16>, vector<16x64xf32> -> vector<16x64xf32>
    "tpu.trace_stop"() : () -> ()
    %54 = tpu.concatenate %35, %53 in 1 : vector<16x64xf32>, vector<16x64xf32> -> vector<16x128xf32>
    %55 = arith.truncf %54 : vector<16x128xf32> to vector<16x128xbf16>
    %cst_34 = arith.constant dense<0.000000e+00> : vector<16x128xf32>
    %56 = tpu.matmul %55, %4, %cst_34 {dimension_numbers = #tpu.dot_dimension_numbers<[1], [0], [0], [1], [0, 0, 1, 1], [], []>} : vector<16x128xbf16>, vector<128x128xbf16>, vector<16x128xf32> -> vector<16x128xf32>
    %57 = vector.broadcast %5 : vector<1x128xf32> to vector<16x128xf32>
    %58 = arith.addf %56, %57 : vector<16x128xf32>
    %59 = arith.addf %1, %58 : vector<16x128xf32>
    %cst_35 = arith.constant dense<0.000000e+00> : vector<16xf32>
    %60 = vector.multi_reduction <add>, %59, %cst_35 [1] : vector<16x128xf32> to vector<16xf32>
    %61 = vector.shape_cast %60 : vector<16xf32> to vector<16x1xf32>
    %cst_36 = arith.constant 1.280000e+02 : f32
    %62 = vector.broadcast %cst_36 : f32 to vector<16x1xf32>
    %63 = arith.divf %61, %62 : vector<16x1xf32>
    %64 = vector.broadcast %63 : vector<16x1xf32> to vector<16x128xf32>
    %65 = arith.subf %59, %64 : vector<16x128xf32>
    %66 = arith.mulf %65, %65 : vector<16x128xf32>
    %cst_37 = arith.constant dense<0.000000e+00> : vector<16xf32>
    %67 = vector.multi_reduction <add>, %66, %cst_37 [1] : vector<16x128xf32> to vector<16xf32>
    %68 = vector.shape_cast %67 : vector<16xf32> to vector<16x1xf32>
    %cst_38 = arith.constant 1.280000e+02 : f32
    %69 = vector.broadcast %cst_38 : f32 to vector<16x1xf32>
    %70 = arith.divf %68, %69 : vector<16x1xf32>
    %71 = vector.broadcast %63 : vector<16x1xf32> to vector<16x128xf32>
    %72 = arith.subf %59, %71 : vector<16x128xf32>
    %cst_39 = arith.constant 9.99999974E-6 : f32
    %73 = vector.broadcast %cst_39 : f32 to vector<16x1xf32>
    %74 = arith.addf %70, %73 : vector<16x1xf32>
    %75 = math.rsqrt %74 : vector<16x1xf32>
    %76 = vector.broadcast %75 : vector<16x1xf32> to vector<16x128xf32>
    %77 = arith.mulf %72, %76 : vector<16x128xf32>
    %78 = vector.broadcast %6 : vector<1x128xf32> to vector<16x128xf32>
    %79 = arith.mulf %77, %78 : vector<16x128xf32>
    %80 = vector.broadcast %7 : vector<1x128xf32> to vector<16x128xf32>
    %81 = arith.addf %79, %80 : vector<16x128xf32>
    %82 = arith.truncf %81 : vector<16x128xf32> to vector<16x128xbf16>
    %cst_40 = arith.constant dense<0.000000e+00> : vector<16x256xf32>
    %83 = tpu.matmul %82, %8, %cst_40 {dimension_numbers = #tpu.dot_dimension_numbers<[1], [0], [0], [1], [0, 0, 1, 1], [], []>} : vector<16x128xbf16>, vector<128x256xbf16>, vector<16x256xf32> -> vector<16x256xf32>
    %84 = vector.broadcast %9 : vector<1x256xf32> to vector<16x256xf32>
    %85 = arith.addf %83, %84 : vector<16x256xf32>
    %cst_41 = arith.constant 0.000000e+00 : f32
    %86 = vector.broadcast %cst_41 : f32 to vector<16x256xf32>
    %87 = arith.maximumf %85, %86 : vector<16x256xf32>
    %88 = arith.truncf %87 : vector<16x256xf32> to vector<16x256xbf16>
    %cst_42 = arith.constant dense<0.000000e+00> : vector<16x128xf32>
    %89 = tpu.matmul %88, %10, %cst_42 {dimension_numbers = #tpu.dot_dimension_numbers<[1], [0], [0], [1], [0, 0, 1, 1], [], []>} : vector<16x256xbf16>, vector<256x128xbf16>, vector<16x128xf32> -> vector<16x128xf32>
    %90 = vector.broadcast %11 : vector<1x128xf32> to vector<16x128xf32>
    %91 = arith.addf %89, %90 : vector<16x128xf32>
    %92 = arith.addf %81, %91 : vector<16x128xf32>
    %cst_43 = arith.constant dense<0.000000e+00> : vector<16xf32>
    %93 = vector.multi_reduction <add>, %92, %cst_43 [1] : vector<16x128xf32> to vector<16xf32>
    %94 = vector.shape_cast %93 : vector<16xf32> to vector<16x1xf32>
    %cst_44 = arith.constant 1.280000e+02 : f32
    %95 = vector.broadcast %cst_44 : f32 to vector<16x1xf32>
    %96 = arith.divf %94, %95 : vector<16x1xf32>
    %97 = vector.broadcast %96 : vector<16x1xf32> to vector<16x128xf32>
    %98 = arith.subf %92, %97 : vector<16x128xf32>
    %99 = arith.mulf %98, %98 : vector<16x128xf32>
    %cst_45 = arith.constant dense<0.000000e+00> : vector<16xf32>
    %100 = vector.multi_reduction <add>, %99, %cst_45 [1] : vector<16x128xf32> to vector<16xf32>
    %101 = vector.shape_cast %100 : vector<16xf32> to vector<16x1xf32>
    %cst_46 = arith.constant 1.280000e+02 : f32
    %102 = vector.broadcast %cst_46 : f32 to vector<16x1xf32>
    %103 = arith.divf %101, %102 : vector<16x1xf32>
    %104 = vector.broadcast %96 : vector<16x1xf32> to vector<16x128xf32>
    %105 = arith.subf %92, %104 : vector<16x128xf32>
    %cst_47 = arith.constant 9.99999974E-6 : f32
    %106 = vector.broadcast %cst_47 : f32 to vector<16x1xf32>
    %107 = arith.addf %103, %106 : vector<16x1xf32>
    %108 = math.rsqrt %107 : vector<16x1xf32>
    %109 = vector.broadcast %108 : vector<16x1xf32> to vector<16x128xf32>
    %110 = arith.mulf %105, %109 : vector<16x128xf32>
    %111 = vector.broadcast %12 : vector<1x128xf32> to vector<16x128xf32>
    %112 = arith.mulf %110, %111 : vector<16x128xf32>
    %113 = vector.broadcast %13 : vector<1x128xf32> to vector<16x128xf32>
    %114 = arith.addf %112, %113 : vector<16x128xf32>
    %c0_48 = arith.constant 0 : index
    %c0_49 = arith.constant 0 : index
    %c0_50 = arith.constant 0 : index
    %115 = vector.load %arg14[%c0_48, %c0_49, %c0_50] : memref<1x16x128xf32, #tpu.memory_space<vmem>>, vector<1x16x128xf32>
    %116 = vector.shape_cast %115 : vector<1x16x128xf32> to vector<16x128xf32>
    %117 = vector.shape_cast %114 : vector<16x128xf32> to vector<1x16x128xf32>
    tpu.vector_store %arg14[%c0_48, %c0_49, %c0_50], %117 {strides = array<i32>} : memref<1x16x128xf32, #tpu.memory_space<vmem>>, vector<1x16x128xf32>,
    return
  }
  func.func @transform_0(%arg0: i32) -> (i32, i32, i32) {
    %c0_i32 = arith.constant 0 : i32
    %c0_i32_0 = arith.constant 0 : i32
    %c0_i32_1 = arith.constant 0 : i32
    return %arg0, %c0_i32, %c0_i32_0 : i32, i32, i32
  }
  func.func @transform_1(%arg0: i32) -> (i32, i32) {
    %c0_i32 = arith.constant 0 : i32
    %c0_i32_0 = arith.constant 0 : i32
    %c0_i32_1 = arith.constant 0 : i32
    return %c0_i32, %c0_i32_0 : i32, i32
  }
  func.func @transform_2(%arg0: i32) -> (i32, i32) {
    %c0_i32 = arith.constant 0 : i32
    %c0_i32_0 = arith.constant 0 : i32
    %c0_i32_1 = arith.constant 0 : i32
    return %c0_i32, %c0_i32_0 : i32, i32
  }
  func.func @transform_3(%arg0: i32) -> (i32, i32) {
    %c0_i32 = arith.constant 0 : i32
    %c0_i32_0 = arith.constant 0 : i32
    %c0_i32_1 = arith.constant 0 : i32
    return %c0_i32, %c0_i32_0 : i32, i32
  }
  func.func @transform_4(%arg0: i32) -> (i32, i32) {
    %c0_i32 = arith.constant 0 : i32
    %c0_i32_0 = arith.constant 0 : i32
    %c0_i32_1 = arith.constant 0 : i32
    return %c0_i32, %c0_i32_0 : i32, i32
  }
  func.func @transform_5(%arg0: i32) -> (i32, i32) {
    %c0_i32 = arith.constant 0 : i32
    %c0_i32_0 = arith.constant 0 : i32
    %c0_i32_1 = arith.constant 0 : i32
    return %c0_i32, %c0_i32_0 : i32, i32
  }
  func.func @transform_6(%arg0: i32) -> (i32, i32) {
    %c0_i32 = arith.constant 0 : i32
    %c0_i32_0 = arith.constant 0 : i32
    %c0_i32_1 = arith.constant 0 : i32
    return %c0_i32, %c0_i32_0 : i32, i32
  }
  func.func @transform_7(%arg0: i32) -> (i32, i32) {
    %c0_i32 = arith.constant 0 : i32
    %c0_i32_0 = arith.constant 0 : i32
    %c0_i32_1 = arith.constant 0 : i32
    return %c0_i32, %c0_i32_0 : i32, i32
  }
  func.func @transform_8(%arg0: i32) -> (i32, i32) {
    %c0_i32 = arith.constant 0 : i32
    %c0_i32_0 = arith.constant 0 : i32
    %c0_i32_1 = arith.constant 0 : i32
    return %c0_i32, %c0_i32_0 : i32, i32
  }
  func.func @transform_9(%arg0: i32) -> (i32, i32) {
    %c0_i32 = arith.constant 0 : i32
    %c0_i32_0 = arith.constant 0 : i32
    %c0_i32_1 = arith.constant 0 : i32
    return %c0_i32, %c0_i32_0 : i32, i32
  }
  func.func @transform_10(%arg0: i32) -> (i32, i32) {
    %c0_i32 = arith.constant 0 : i32
    %c0_i32_0 = arith.constant 0 : i32
    %c0_i32_1 = arith.constant 0 : i32
    return %c0_i32, %c0_i32_0 : i32, i32
  }
  func.func @transform_11(%arg0: i32) -> (i32, i32) {
    %c0_i32 = arith.constant 0 : i32
    %c0_i32_0 = arith.constant 0 : i32
    %c0_i32_1 = arith.constant 0 : i32
    return %c0_i32, %c0_i32_0 : i32, i32
  }
  func.func @transform_12(%arg0: i32) -> (i32, i32) {
    %c0_i32 = arith.constant 0 : i32
    %c0_i32_0 = arith.constant 0 : i32
    %c0_i32_1 = arith.constant 0 : i32
    return %c0_i32, %c0_i32_0 : i32, i32
  }
  func.func @transform_13(%arg0: i32) -> (i32, i32, i32) {
    %c0_i32 = arith.constant 0 : i32
    %c0_i32_0 = arith.constant 0 : i32
    %c0_i32_1 = arith.constant 0 : i32
    return %arg0, %c0_i32, %c0_i32_0 : i32, i32, i32
  }
}

module attributes {stable_mosaic.version = 11 : i64} {
  func.func @_embed_layer_kernel(%arg0: i32, %arg1: memref<1x16x128xf32, #tpu.memory_space<vmem>>, %arg2: memref<16x128xf32, #tpu.memory_space<vmem>>, %arg3: memref<128x384xbf16, #tpu.memory_space<vmem>>, %arg4: memref<1x384xf32, #tpu.memory_space<vmem>>, %arg5: memref<128x128xbf16, #tpu.memory_space<vmem>>, %arg6: memref<1x128xf32, #tpu.memory_space<vmem>>, %arg7: memref<1x128xf32, #tpu.memory_space<vmem>>, %arg8: memref<1x128xf32, #tpu.memory_space<vmem>>, %arg9: memref<128x256xbf16, #tpu.memory_space<vmem>>, %arg10: memref<1x256xf32, #tpu.memory_space<vmem>>, %arg11: memref<256x128xbf16, #tpu.memory_space<vmem>>, %arg12: memref<1x128xf32, #tpu.memory_space<vmem>>, %arg13: memref<1x128xf32, #tpu.memory_space<vmem>>, %arg14: memref<1x128xf32, #tpu.memory_space<vmem>>, %arg15: memref<1x16x128xf32, #tpu.memory_space<vmem>>) attributes {dimension_semantics = [#tpu.dimension_semantics<parallel>], iteration_bounds = array<i64: 2>, scalar_prefetch = 0 : i64, scratch_operands = 0 : i64, tpu.core_type = #tpu.core_type<tc>, window_params = [{transform_indices = @transform_0, window_bounds = array<i64: 1, 16, 128>}, {pipeline_mode = #tpu.pipeline_mode<synchronous>, transform_indices = @transform_1, window_bounds = array<i64: 16, 128>}, {pipeline_mode = #tpu.pipeline_mode<synchronous>, transform_indices = @transform_2, window_bounds = array<i64: 128, 384>}, {pipeline_mode = #tpu.pipeline_mode<synchronous>, transform_indices = @transform_3, window_bounds = array<i64: 1, 384>}, {pipeline_mode = #tpu.pipeline_mode<synchronous>, transform_indices = @transform_4, window_bounds = array<i64: 128, 128>}, {pipeline_mode = #tpu.pipeline_mode<synchronous>, transform_indices = @transform_5, window_bounds = array<i64: 1, 128>}, {pipeline_mode = #tpu.pipeline_mode<synchronous>, transform_indices = @transform_6, window_bounds = array<i64: 1, 128>}, {pipeline_mode = #tpu.pipeline_mode<synchronous>, transform_indices = @transform_7, window_bounds = array<i64: 1, 128>}, {pipeline_mode = #tpu.pipeline_mode<synchronous>, transform_indices = @transform_8, window_bounds = array<i64: 128, 256>}, {pipeline_mode = #tpu.pipeline_mode<synchronous>, transform_indices = @transform_9, window_bounds = array<i64: 1, 256>}, {pipeline_mode = #tpu.pipeline_mode<synchronous>, transform_indices = @transform_10, window_bounds = array<i64: 256, 128>}, {pipeline_mode = #tpu.pipeline_mode<synchronous>, transform_indices = @transform_11, window_bounds = array<i64: 1, 128>}, {pipeline_mode = #tpu.pipeline_mode<synchronous>, transform_indices = @transform_12, window_bounds = array<i64: 1, 128>}, {pipeline_mode = #tpu.pipeline_mode<synchronous>, transform_indices = @transform_13, window_bounds = array<i64: 1, 128>}, {transform_indices = @transform_14, window_bounds = array<i64: 1, 16, 128>}]} {
    %c0 = arith.constant 0 : index
    %c0_0 = arith.constant 0 : index
    %c0_1 = arith.constant 0 : index
    %0 = vector.load %arg1[%c0, %c0_0, %c0_1] : memref<1x16x128xf32, #tpu.memory_space<vmem>>, vector<1x16x128xf32>
    %1 = vector.shape_cast %0 : vector<1x16x128xf32> to vector<16x128xf32>
    %cst = arith.constant 11.3137083 : f32
    %2 = vector.broadcast %cst : f32 to vector<16x128xf32>
    %3 = arith.mulf %1, %2 : vector<16x128xf32>
    %c0_2 = arith.constant 0 : index
    %c0_3 = arith.constant 0 : index
    %4 = vector.load %arg2[%c0_2, %c0_3] : memref<16x128xf32, #tpu.memory_space<vmem>>, vector<16x128xf32>
    %5 = arith.addf %3, %4 : vector<16x128xf32>
    %c0_4 = arith.constant 0 : index
    %c0_5 = arith.constant 0 : index
    %6 = vector.load %arg3[%c0_4, %c0_5] : memref<128x384xbf16, #tpu.memory_space<vmem>>, vector<128x384xbf16>
    %c0_6 = arith.constant 0 : index
    %c0_7 = arith.constant 0 : index
    %7 = vector.load %arg4[%c0_6, %c0_7] : memref<1x384xf32, #tpu.memory_space<vmem>>, vector<1x384xf32>
    %c0_8 = arith.constant 0 : index
    %c0_9 = arith.constant 0 : index
    %8 = vector.load %arg5[%c0_8, %c0_9] : memref<128x128xbf16, #tpu.memory_space<vmem>>, vector<128x128xbf16>
    %c0_10 = arith.constant 0 : index
    %c0_11 = arith.constant 0 : index
    %9 = vector.load %arg6[%c0_10, %c0_11] : memref<1x128xf32, #tpu.memory_space<vmem>>, vector<1x128xf32>
    %c0_12 = arith.constant 0 : index
    %c0_13 = arith.constant 0 : index
    %10 = vector.load %arg7[%c0_12, %c0_13] : memref<1x128xf32, #tpu.memory_space<vmem>>, vector<1x128xf32>
    %c0_14 = arith.constant 0 : index
    %c0_15 = arith.constant 0 : index
    %11 = vector.load %arg8[%c0_14, %c0_15] : memref<1x128xf32, #tpu.memory_space<vmem>>, vector<1x128xf32>
    %c0_16 = arith.constant 0 : index
    %c0_17 = arith.constant 0 : index
    %12 = vector.load %arg9[%c0_16, %c0_17] : memref<128x256xbf16, #tpu.memory_space<vmem>>, vector<128x256xbf16>
    %c0_18 = arith.constant 0 : index
    %c0_19 = arith.constant 0 : index
    %13 = vector.load %arg10[%c0_18, %c0_19] : memref<1x256xf32, #tpu.memory_space<vmem>>, vector<1x256xf32>
    %c0_20 = arith.constant 0 : index
    %c0_21 = arith.constant 0 : index
    %14 = vector.load %arg11[%c0_20, %c0_21] : memref<256x128xbf16, #tpu.memory_space<vmem>>, vector<256x128xbf16>
    %c0_22 = arith.constant 0 : index
    %c0_23 = arith.constant 0 : index
    %15 = vector.load %arg12[%c0_22, %c0_23] : memref<1x128xf32, #tpu.memory_space<vmem>>, vector<1x128xf32>
    %c0_24 = arith.constant 0 : index
    %c0_25 = arith.constant 0 : index
    %16 = vector.load %arg13[%c0_24, %c0_25] : memref<1x128xf32, #tpu.memory_space<vmem>>, vector<1x128xf32>
    %c0_26 = arith.constant 0 : index
    %c0_27 = arith.constant 0 : index
    %17 = vector.load %arg14[%c0_26, %c0_27] : memref<1x128xf32, #tpu.memory_space<vmem>>, vector<1x128xf32>
    %18 = arith.truncf %5 : vector<16x128xf32> to vector<16x128xbf16>
    %cst_28 = arith.constant dense<0.000000e+00> : vector<16x384xf32>
    %19 = tpu.matmul %18, %6, %cst_28 {dimension_numbers = #tpu.dot_dimension_numbers<[1], [0], [0], [1], [0, 0, 1, 1], [], []>} : vector<16x128xbf16>, vector<128x384xbf16>, vector<16x384xf32> -> vector<16x384xf32>
    %20 = vector.broadcast %7 : vector<1x384xf32> to vector<16x384xf32>
    %21 = arith.addf %19, %20 : vector<16x384xf32>
    %22 = vector.extract_strided_slice %21 {offsets = [0, 0], sizes = [16, 64], strides = [1, 1]} : vector<16x384xf32> to vector<16x64xf32>
    %23 = vector.extract_strided_slice %21 {offsets = [0, 128], sizes = [16, 64], strides = [1, 1]} : vector<16x384xf32> to vector<16x64xf32>
    %24 = vector.extract_strided_slice %21 {offsets = [0, 256], sizes = [16, 64], strides = [1, 1]} : vector<16x384xf32> to vector<16x64xf32>
    %25 = arith.truncf %22 : vector<16x64xf32> to vector<16x64xbf16>
    %26 = arith.truncf %23 : vector<16x64xf32> to vector<16x64xbf16>
    "tpu.trace_start"() <{level = 10 : i32, message = "qe,ke->qk"}> : () -> ()
    %cst_29 = arith.constant dense<0.000000e+00> : vector<16x16xf32>
    %27 = tpu.matmul %25, %26, %cst_29 {dimension_numbers = #tpu.dot_dimension_numbers<[1], [1], [0], [0], [0, 0, 1, 0], [], []>} : vector<16x64xbf16>, vector<16x64xbf16>, vector<16x16xf32> -> vector<16x16xf32>
    "tpu.trace_stop"() : () -> ()
    %cst_30 = arith.constant dense<0xFF800000> : vector<16xf32>
    %28 = vector.multi_reduction <maximumf>, %27, %cst_30 [1] : vector<16x16xf32> to vector<16xf32>
    %29 = vector.shape_cast %28 : vector<16xf32> to vector<16x1xf32>
    %30 = vector.broadcast %29 : vector<16x1xf32> to vector<16x16xf32>
    %31 = arith.subf %27, %30 : vector<16x16xf32>
    %32 = math.exp %31 : vector<16x16xf32>
    %cst_31 = arith.constant dense<0.000000e+00> : vector<16xf32>
    %33 = vector.multi_reduction <add>, %32, %cst_31 [1] : vector<16x16xf32> to vector<16xf32>
    %34 = vector.shape_cast %33 : vector<16xf32> to vector<16x1xf32>
    %35 = vector.broadcast %34 : vector<16x1xf32> to vector<16x16xf32>
    %36 = arith.divf %32, %35 : vector<16x16xf32>
    %37 = arith.truncf %36 : vector<16x16xf32> to vector<16x16xbf16>
    %38 = arith.truncf %24 : vector<16x64xf32> to vector<16x64xbf16>
    "tpu.trace_start"() <{level = 10 : i32, message = "qk,ke->qe"}> : () -> ()
    %cst_32 = arith.constant dense<0.000000e+00> : vector<16x64xf32>
    %39 = tpu.matmul %37, %38, %cst_32 {dimension_numbers = #tpu.dot_dimension_numbers<[1], [0], [0], [1], [0, 0, 1, 1], [], []>} : vector<16x16xbf16>, vector<16x64xbf16>, vector<16x64xf32> -> vector<16x64xf32>
    "tpu.trace_stop"() : () -> ()
    %40 = vector.extract_strided_slice %21 {offsets = [0, 64], sizes = [16, 64], strides = [1, 1]} : vector<16x384xf32> to vector<16x64xf32>
    %41 = vector.extract_strided_slice %21 {offsets = [0, 192], sizes = [16, 64], strides = [1, 1]} : vector<16x384xf32> to vector<16x64xf32>
    %42 = vector.extract_strided_slice %21 {offsets = [0, 320], sizes = [16, 64], strides = [1, 1]} : vector<16x384xf32> to vector<16x64xf32>
    %43 = arith.truncf %40 : vector<16x64xf32> to vector<16x64xbf16>
    %44 = arith.truncf %41 : vector<16x64xf32> to vector<16x64xbf16>
    "tpu.trace_start"() <{level = 10 : i32, message = "qe,ke->qk"}> : () -> ()
    %cst_33 = arith.constant dense<0.000000e+00> : vector<16x16xf32>
    %45 = tpu.matmul %43, %44, %cst_33 {dimension_numbers = #tpu.dot_dimension_numbers<[1], [1], [0], [0], [0, 0, 1, 0], [], []>} : vector<16x64xbf16>, vector<16x64xbf16>, vector<16x16xf32> -> vector<16x16xf32>
    "tpu.trace_stop"() : () -> ()
    %cst_34 = arith.constant dense<0xFF800000> : vector<16xf32>
    %46 = vector.multi_reduction <maximumf>, %45, %cst_34 [1] : vector<16x16xf32> to vector<16xf32>
    %47 = vector.shape_cast %46 : vector<16xf32> to vector<16x1xf32>
    %48 = vector.broadcast %47 : vector<16x1xf32> to vector<16x16xf32>
    %49 = arith.subf %45, %48 : vector<16x16xf32>
    %50 = math.exp %49 : vector<16x16xf32>
    %cst_35 = arith.constant dense<0.000000e+00> : vector<16xf32>
    %51 = vector.multi_reduction <add>, %50, %cst_35 [1] : vector<16x16xf32> to vector<16xf32>
    %52 = vector.shape_cast %51 : vector<16xf32> to vector<16x1xf32>
    %53 = vector.broadcast %52 : vector<16x1xf32> to vector<16x16xf32>
    %54 = arith.divf %50, %53 : vector<16x16xf32>
    %55 = arith.truncf %54 : vector<16x16xf32> to vector<16x16xbf16>
    %56 = arith.truncf %42 : vector<16x64xf32> to vector<16x64xbf16>
    "tpu.trace_start"() <{level = 10 : i32, message = "qk,ke->qe"}> : () -> ()
    %cst_36 = arith.constant dense<0.000000e+00> : vector<16x64xf32>
    %57 = tpu.matmul %55, %56, %cst_36 {dimension_numbers = #tpu.dot_dimension_numbers<[1], [0], [0], [1], [0, 0, 1, 1], [], []>} : vector<16x16xbf16>, vector<16x64xbf16>, vector<16x64xf32> -> vector<16x64xf32>
    "tpu.trace_stop"() : () -> ()
    %58 = tpu.concatenate %39, %57 in 1 : vector<16x64xf32>, vector<16x64xf32> -> vector<16x128xf32>
    %59 = arith.truncf %58 : vector<16x128xf32> to vector<16x128xbf16>
    %cst_37 = arith.constant dense<0.000000e+00> : vector<16x128xf32>
    %60 = tpu.matmul %59, %8, %cst_37 {dimension_numbers = #tpu.dot_dimension_numbers<[1], [0], [0], [1], [0, 0, 1, 1], [], []>} : vector<16x128xbf16>, vector<128x128xbf16>, vector<16x128xf32> -> vector<16x128xf32>
    %61 = vector.broadcast %9 : vector<1x128xf32> to vector<16x128xf32>
    %62 = arith.addf %60, %61 : vector<16x128xf32>
    %63 = arith.addf %5, %62 : vector<16x128xf32>
    %cst_38 = arith.constant dense<0.000000e+00> : vector<16xf32>
    %64 = vector.multi_reduction <add>, %63, %cst_38 [1] : vector<16x128xf32> to vector<16xf32>
    %65 = vector.shape_cast %64 : vector<16xf32> to vector<16x1xf32>
    %cst_39 = arith.constant 1.280000e+02 : f32
    %66 = vector.broadcast %cst_39 : f32 to vector<16x1xf32>
    %67 = arith.divf %65, %66 : vector<16x1xf32>
    %68 = vector.broadcast %67 : vector<16x1xf32> to vector<16x128xf32>
    %69 = arith.subf %63, %68 : vector<16x128xf32>
    %70 = arith.mulf %69, %69 : vector<16x128xf32>
    %cst_40 = arith.constant dense<0.000000e+00> : vector<16xf32>
    %71 = vector.multi_reduction <add>, %70, %cst_40 [1] : vector<16x128xf32> to vector<16xf32>
    %72 = vector.shape_cast %71 : vector<16xf32> to vector<16x1xf32>
    %cst_41 = arith.constant 1.280000e+02 : f32
    %73 = vector.broadcast %cst_41 : f32 to vector<16x1xf32>
    %74 = arith.divf %72, %73 : vector<16x1xf32>
    %75 = vector.broadcast %67 : vector<16x1xf32> to vector<16x128xf32>
    %76 = arith.subf %63, %75 : vector<16x128xf32>
    %cst_42 = arith.constant 9.99999974E-6 : f32
    %77 = vector.broadcast %cst_42 : f32 to vector<16x1xf32>
    %78 = arith.addf %74, %77 : vector<16x1xf32>
    %79 = math.rsqrt %78 : vector<16x1xf32>
    %80 = vector.broadcast %79 : vector<16x1xf32> to vector<16x128xf32>
    %81 = arith.mulf %76, %80 : vector<16x128xf32>
    %82 = vector.broadcast %10 : vector<1x128xf32> to vector<16x128xf32>
    %83 = arith.mulf %81, %82 : vector<16x128xf32>
    %84 = vector.broadcast %11 : vector<1x128xf32> to vector<16x128xf32>
    %85 = arith.addf %83, %84 : vector<16x128xf32>
    %86 = arith.truncf %85 : vector<16x128xf32> to vector<16x128xbf16>
    %cst_43 = arith.constant dense<0.000000e+00> : vector<16x256xf32>
    %87 = tpu.matmul %86, %12, %cst_43 {dimension_numbers = #tpu.dot_dimension_numbers<[1], [0], [0], [1], [0, 0, 1, 1], [], []>} : vector<16x128xbf16>, vector<128x256xbf16>, vector<16x256xf32> -> vector<16x256xf32>
    %88 = vector.broadcast %13 : vector<1x256xf32> to vector<16x256xf32>
    %89 = arith.addf %87, %88 : vector<16x256xf32>
    %cst_44 = arith.constant 0.000000e+00 : f32
    %90 = vector.broadcast %cst_44 : f32 to vector<16x256xf32>
    %91 = arith.maximumf %89, %90 : vector<16x256xf32>
    %92 = arith.truncf %91 : vector<16x256xf32> to vector<16x256xbf16>
    %cst_45 = arith.constant dense<0.000000e+00> : vector<16x128xf32>
    %93 = tpu.matmul %92, %14, %cst_45 {dimension_numbers = #tpu.dot_dimension_numbers<[1], [0], [0], [1], [0, 0, 1, 1], [], []>} : vector<16x256xbf16>, vector<256x128xbf16>, vector<16x128xf32> -> vector<16x128xf32>
    %94 = vector.broadcast %15 : vector<1x128xf32> to vector<16x128xf32>
    %95 = arith.addf %93, %94 : vector<16x128xf32>
    %96 = arith.addf %85, %95 : vector<16x128xf32>
    %cst_46 = arith.constant dense<0.000000e+00> : vector<16xf32>
    %97 = vector.multi_reduction <add>, %96, %cst_46 [1] : vector<16x128xf32> to vector<16xf32>
    %98 = vector.shape_cast %97 : vector<16xf32> to vector<16x1xf32>
    %cst_47 = arith.constant 1.280000e+02 : f32
    %99 = vector.broadcast %cst_47 : f32 to vector<16x1xf32>
    %100 = arith.divf %98, %99 : vector<16x1xf32>
    %101 = vector.broadcast %100 : vector<16x1xf32> to vector<16x128xf32>
    %102 = arith.subf %96, %101 : vector<16x128xf32>
    %103 = arith.mulf %102, %102 : vector<16x128xf32>
    %cst_48 = arith.constant dense<0.000000e+00> : vector<16xf32>
    %104 = vector.multi_reduction <add>, %103, %cst_48 [1] : vector<16x128xf32> to vector<16xf32>
    %105 = vector.shape_cast %104 : vector<16xf32> to vector<16x1xf32>
    %cst_49 = arith.constant 1.280000e+02 : f32
    %106 = vector.broadcast %cst_49 : f32 to vector<16x1xf32>
    %107 = arith.divf %105, %106 : vector<16x1xf32>
    %108 = vector.broadcast %100 : vector<16x1xf32> to vector<16x128xf32>
    %109 = arith.subf %96, %108 : vector<16x128xf32>
    %cst_50 = arith.constant 9.99999974E-6 : f32
    %110 = vector.broadcast %cst_50 : f32 to vector<16x1xf32>
    %111 = arith.addf %107, %110 : vector<16x1xf32>
    %112 = math.rsqrt %111 : vector<16x1xf32>
    %113 = vector.broadcast %112 : vector<16x1xf32> to vector<16x128xf32>
    %114 = arith.mulf %109, %113 : vector<16x128xf32>
    %115 = vector.broadcast %16 : vector<1x128xf32> to vector<16x128xf32>
    %116 = arith.mulf %114, %115 : vector<16x128xf32>
    %117 = vector.broadcast %17 : vector<1x128xf32> to vector<16x128xf32>
    %118 = arith.addf %116, %117 : vector<16x128xf32>
    %c0_51 = arith.constant 0 : index
    %c0_52 = arith.constant 0 : index
    %c0_53 = arith.constant 0 : index
    %119 = vector.load %arg15[%c0_51, %c0_52, %c0_53] : memref<1x16x128xf32, #tpu.memory_space<vmem>>, vector<1x16x128xf32>
    %120 = vector.shape_cast %119 : vector<1x16x128xf32> to vector<16x128xf32>
    %121 = vector.shape_cast %118 : vector<16x128xf32> to vector<1x16x128xf32>
    tpu.vector_store %arg15[%c0_51, %c0_52, %c0_53], %121 {strides = array<i32>} : memref<1x16x128xf32, #tpu.memory_space<vmem>>, vector<1x16x128xf32>,
    return
  }
  func.func @transform_0(%arg0: i32) -> (i32, i32, i32) {
    %c0_i32 = arith.constant 0 : i32
    %c0_i32_0 = arith.constant 0 : i32
    %c0_i32_1 = arith.constant 0 : i32
    return %arg0, %c0_i32, %c0_i32_0 : i32, i32, i32
  }
  func.func @transform_1(%arg0: i32) -> (i32, i32) {
    %c0_i32 = arith.constant 0 : i32
    %c0_i32_0 = arith.constant 0 : i32
    %c0_i32_1 = arith.constant 0 : i32
    return %c0_i32, %c0_i32_0 : i32, i32
  }
  func.func @transform_2(%arg0: i32) -> (i32, i32) {
    %c0_i32 = arith.constant 0 : i32
    %c0_i32_0 = arith.constant 0 : i32
    %c0_i32_1 = arith.constant 0 : i32
    return %c0_i32, %c0_i32_0 : i32, i32
  }
  func.func @transform_3(%arg0: i32) -> (i32, i32) {
    %c0_i32 = arith.constant 0 : i32
    %c0_i32_0 = arith.constant 0 : i32
    %c0_i32_1 = arith.constant 0 : i32
    return %c0_i32, %c0_i32_0 : i32, i32
  }
  func.func @transform_4(%arg0: i32) -> (i32, i32) {
    %c0_i32 = arith.constant 0 : i32
    %c0_i32_0 = arith.constant 0 : i32
    %c0_i32_1 = arith.constant 0 : i32
    return %c0_i32, %c0_i32_0 : i32, i32
  }
  func.func @transform_5(%arg0: i32) -> (i32, i32) {
    %c0_i32 = arith.constant 0 : i32
    %c0_i32_0 = arith.constant 0 : i32
    %c0_i32_1 = arith.constant 0 : i32
    return %c0_i32, %c0_i32_0 : i32, i32
  }
  func.func @transform_6(%arg0: i32) -> (i32, i32) {
    %c0_i32 = arith.constant 0 : i32
    %c0_i32_0 = arith.constant 0 : i32
    %c0_i32_1 = arith.constant 0 : i32
    return %c0_i32, %c0_i32_0 : i32, i32
  }
  func.func @transform_7(%arg0: i32) -> (i32, i32) {
    %c0_i32 = arith.constant 0 : i32
    %c0_i32_0 = arith.constant 0 : i32
    %c0_i32_1 = arith.constant 0 : i32
    return %c0_i32, %c0_i32_0 : i32, i32
  }
  func.func @transform_8(%arg0: i32) -> (i32, i32) {
    %c0_i32 = arith.constant 0 : i32
    %c0_i32_0 = arith.constant 0 : i32
    %c0_i32_1 = arith.constant 0 : i32
    return %c0_i32, %c0_i32_0 : i32, i32
  }
  func.func @transform_9(%arg0: i32) -> (i32, i32) {
    %c0_i32 = arith.constant 0 : i32
    %c0_i32_0 = arith.constant 0 : i32
    %c0_i32_1 = arith.constant 0 : i32
    return %c0_i32, %c0_i32_0 : i32, i32
  }
  func.func @transform_10(%arg0: i32) -> (i32, i32) {
    %c0_i32 = arith.constant 0 : i32
    %c0_i32_0 = arith.constant 0 : i32
    %c0_i32_1 = arith.constant 0 : i32
    return %c0_i32, %c0_i32_0 : i32, i32
  }
  func.func @transform_11(%arg0: i32) -> (i32, i32) {
    %c0_i32 = arith.constant 0 : i32
    %c0_i32_0 = arith.constant 0 : i32
    %c0_i32_1 = arith.constant 0 : i32
    return %c0_i32, %c0_i32_0 : i32, i32
  }
  func.func @transform_12(%arg0: i32) -> (i32, i32) {
    %c0_i32 = arith.constant 0 : i32
    %c0_i32_0 = arith.constant 0 : i32
    %c0_i32_1 = arith.constant 0 : i32
    return %c0_i32, %c0_i32_0 : i32, i32
  }
  func.func @transform_13(%arg0: i32) -> (i32, i32) {
    %c0_i32 = arith.constant 0 : i32
    %c0_i32_0 = arith.constant 0 : i32
    %c0_i32_1 = arith.constant 0 : i32
    return %c0_i32, %c0_i32_0 : i32, i32
  }
  func.func @transform_14(%arg0: i32) -> (i32, i32, i32) {
    %c0_i32 = arith.constant 0 : i32
    %c0_i32_0 = arith.constant 0 : i32
    %c0_i32_1 = arith.constant 0 : i32
    return %arg0, %c0_i32, %c0_i32_0 : i32, i32, i32
  }
}

module attributes {stable_mosaic.version = 11 : i64} {
  func.func @_fc_out_kernel(%arg0: i32, %arg1: i32, %arg2: memref<32x128xf32, #tpu.memory_space<vmem>>, %arg3: memref<128x256xbf16, #tpu.memory_space<vmem>>, %arg4: memref<1x256xf32, #tpu.memory_space<vmem>>, %arg5: memref<32x256xf32, #tpu.memory_space<vmem>>) attributes {dimension_semantics = [#tpu.dimension_semantics<parallel>, #tpu.dimension_semantics<parallel>], iteration_bounds = array<i64: 1, 1>, scalar_prefetch = 0 : i64, scratch_operands = 0 : i64, tpu.core_type = #tpu.core_type<tc>, window_params = [{transform_indices = @transform_0, window_bounds = array<i64: 32, 128>}, {transform_indices = @transform_1, window_bounds = array<i64: 128, 256>}, {transform_indices = @transform_2, window_bounds = array<i64: 1, 256>}, {transform_indices = @transform_3, window_bounds = array<i64: 32, 256>}]} {
    %c0 = arith.constant 0 : index
    %c0_0 = arith.constant 0 : index
    %0 = vector.load %arg2[%c0, %c0_0] : memref<32x128xf32, #tpu.memory_space<vmem>>, vector<32x128xf32>
    %1 = arith.truncf %0 : vector<32x128xf32> to vector<32x128xbf16>
    %c0_1 = arith.constant 0 : index
    %c0_2 = arith.constant 0 : index
    %2 = vector.load %arg3[%c0_1, %c0_2] : memref<128x256xbf16, #tpu.memory_space<vmem>>, vector<128x256xbf16>
    %cst = arith.constant dense<0.000000e+00> : vector<32x256xf32>
    %3 = tpu.matmul %1, %2, %cst {dimension_numbers = #tpu.dot_dimension_numbers<[1], [0], [0], [1], [0, 0, 1, 1], [], []>} : vector<32x128xbf16>, vector<128x256xbf16>, vector<32x256xf32> -> vector<32x256xf32>
    %c0_3 = arith.constant 0 : index
    %c0_4 = arith.constant 0 : index
    %4 = vector.load %arg4[%c0_3, %c0_4] : memref<1x256xf32, #tpu.memory_space<vmem>>, vector<1x256xf32>
    %5 = vector.broadcast %4 : vector<1x256xf32> to vector<32x256xf32>
    %6 = arith.addf %3, %5 : vector<32x256xf32>
    %c0_5 = arith.constant 0 : index
    %c0_6 = arith.constant 0 : index
    %7 = vector.load %arg5[%c0_5, %c0_6] : memref<32x256xf32, #tpu.memory_space<vmem>>, vector<32x256xf32>
    tpu.vector_store %arg5[%c0_5, %c0_6], %6 {strides = array<i32>} : memref<32x256xf32, #tpu.memory_space<vmem>>, vector<32x256xf32>,
    return
  }
  func.func @transform_0(%arg0: i32, %arg1: i32) -> (i32, i32) {
    %c0_i32 = arith.constant 0 : i32
    %c0_i32_0 = arith.constant 0 : i32
    return %arg0, %c0_i32 : i32, i32
  }
  func.func @transform_1(%arg0: i32, %arg1: i32) -> (i32, i32) {
    %c0_i32 = arith.constant 0 : i32
    %c0_i32_0 = arith.constant 0 : i32
    return %c0_i32, %arg1 : i32, i32
  }
  func.func @transform_2(%arg0: i32, %arg1: i32) -> (i32, i32) {
    %c0_i32 = arith.constant 0 : i32
    %c0_i32_0 = arith.constant 0 : i32
    return %c0_i32, %arg1 : i32, i32
  }
  func.func @transform_3(%arg0: i32, %arg1: i32) -> (i32, i32) {
    %c0_i32 = arith.constant 0 : i32
    return %arg0, %arg1 : i32, i32
  }
}

</mosaic_0001>

<bundles_post_ra>
// kernel: transformer_forward_pallas.5
= control target key start
LH: loop header
LB: loop body
LE: loop exit
PB: predicated region body
PF: predicated region fallthrough
CT: control target
= control target key end

     0   :  { %8 = vsyncpa [#allocation3], 0  ;;  %s405_s0 = inlined_call_operand.vmem [shape: f32[32,128], index: 0, kind: input, shape index: {}]   ;;  %s406_s1 = inlined_call_operand.hbm [shape: bf16[128,256], index: 1, kind: input, shape index: {}]   ;;  %s407_s2 = inlined_call_operand.vmem [shape: f32[1,256], index: 2, kind: input, shape index: {}]   ;;  %s408_s3 = inlined_call_operand.hbm [shape: f32[32,256], index: 3, kind: output, shape index: {}]  }
   0x1   :  { %9 = vsyncpa [#allocation4], 0  ;;  %s16_s14 = sshll.u32 %s406_s1, 4  ;;  %s358_s15 = smov [#allocation2]   ;;  %s17_s14 = int_to_ptr.hbm [resolvable:$true] %s16_s14 }
   0x2   :  { %s18_s16 = sshll.u32 %s358_s15, 4  ;;  %s359_s17 = smov 128   ;;  %s19_s16 = int_to_ptr.vmem [resolvable:$true] %s18_s16 }
   0x3   :  { %s360_s18 = smov 8  }
   0x4   :  { %24 = dma.hbm_to_vmem [thread:$0]  %s17_s14, 2048, %s19_s16, [#allocation3], %s359_s17, %s359_s17, %s360_s18  }
   0x5   :  { %354 = dma.done.wait [#allocation3], 2048  }
   0x6   :  { %355 = vsyncadd [#allocation3], 4294965248  ;;  %v262_v0 = vld [vmem:[#allocation2 + $0x70] sm:$0xf]  ;;  %v283_v1 = vld [vmem:[#allocation2 + $0x74] sm:$0xf0] }
   0x7   :  { %v282_v2 = vld [vmem:[#allocation2 + $0x74] sm:$0xf]  ;;  %v263_v3 = vor.u32 %v283_v1, %v262_v0  ;;  %v264_v4 = vld [vmem:[#allocation2 + $0x78] sm:$0xf0]  ;;  %v254_v5 = vld [vmem:[#allocation2 + $0x60] sm:$0xf] }
   0x8   :  { %v281_v6 = vld [vmem:[#allocation2 + $0x64] sm:$0xf0]  ;;  %v267_v7 = vor.u32 %v282_v2, %v264_v4  ;;  %v280_v8 = vld [vmem:[#allocation2 + $0x64] sm:$0xf]  ;;  %v256_v9 = vld [vmem:[#allocation2 + $0x68] sm:$0xf0] }
   0x9   :  { %139 = vmatpush.bf16.msra.mxu0 %v263_v3  ;;  %284 = vmatpush.bf16.msra.mxu2 %v263_v3  ;;  %v255_v10 = vor.u32 %v281_v6, %v254_v5  ;;  %v259_v11 = vor.u32 %v280_v8, %v256_v9  ;;  %v246_v12 = vld [vmem:[#allocation2 + $0x50] sm:$0xf]  ;;  %v279_v13 = vld [vmem:[#allocation2 + $0x54] sm:$0xf0]  ;;  %v278_v14 = vld [vmem:[#allocation2 + $0x54] sm:$0xf] }
   0xa   :  { %158 = vmatpush.bf16.msra.mxu1 %v267_v7  ;;  %292 = vmatpush.bf16.msra.mxu3 %v267_v7  ;;  %v248_v15 = vld [vmem:[#allocation2 + $0x58] sm:$0xf0]  ;;  %v247_v16 = vor.u32 %v279_v13, %v246_v12  ;;  %v238_v18 = vld [vmem:[#allocation2 + $0x40] sm:$0xf]  ;;  %v277_v19 = vld [vmem:[#allocation2 + $0x44] sm:$0xf0] }
   0xb   :  { %v251_v17 = vor.u32 %v278_v14, %v248_v15  ;;  %v276_v20 = vld [vmem:[#allocation2 + $0x44] sm:$0xf]  ;;  %v240_v21 = vld [vmem:[#allocation2 + $0x48] sm:$0xf0]  ;;  %v239_v22 = vor.u32 %v277_v19, %v238_v18  ;;  %v230_v24 = vld [vmem:[#allocation2 + $0x30] sm:$0xf] }
   0xc   :  { %v243_v23 = vor.u32 %v276_v20, %v240_v21  ;;  %v275_v25 = vld [vmem:[#allocation2 + $0x34] sm:$0xf0]  ;;  %v274_v26 = vld [vmem:[#allocation2 + $0x34] sm:$0xf]  ;;  %v232_v27 = vld [vmem:[#allocation2 + $0x38] sm:$0xf0] }
   0xd   :  { %140 = vmatpush.bf16.msra.mxu0 %v255_v10  ;;  %285 = vmatpush.bf16.msra.mxu2 %v255_v10  ;;  %v231_v28 = vor.u32 %v275_v25, %v230_v24  ;;  %v235_v29 = vor.u32 %v274_v26, %v232_v27  ;;  %v222_v30 = vld [vmem:[#allocation2 + $0x20] sm:$0xf]  ;;  %v273_v31 = vld [vmem:[#allocation2 + $0x24] sm:$0xf0]  ;;  %v272_v32 = vld [vmem:[#allocation2 + $0x24] sm:$0xf] }
   0xe   :  { %159 = vmatpush.bf16.msra.mxu1 %v259_v11  ;;  %293 = vmatpush.bf16.msra.mxu3 %v259_v11  ;;  %v224_v33 = vld [vmem:[#allocation2 + $0x28] sm:$0xf0]  ;;  %v223_v34 = vor.u32 %v273_v31, %v222_v30  ;;  %v214_v36 = vld [vmem:[#allocation2 + $0x10] sm:$0xf]  ;;  %v271_v37 = vld [vmem:[#allocation2 + $0x14] sm:$0xf0] }
   0xf   :  { %v227_v35 = vor.u32 %v272_v32, %v224_v33  ;;  %v270_v38 = vld [vmem:[#allocation2 + $0x14] sm:$0xf]  ;;  %v216_v39 = vld [vmem:[#allocation2 + $0x18] sm:$0xf0]  ;;  %v215_v40 = vor.u32 %v271_v37, %v214_v36  ;;  %v206_v42 = vld [vmem:[#allocation2] sm:$0xf] }
  0x10   :  { %v219_v41 = vor.u32 %v270_v38, %v216_v39  ;;  %v269_v43 = vld [vmem:[#allocation2 + $0x4] sm:$0xf0]  ;;  %v268_v44 = vld [vmem:[#allocation2 + $0x4] sm:$0xf]  ;;  %v208_v45 = vld [vmem:[#allocation2 + $0x8] sm:$0xf0] }
  0x11   :  { %141 = vmatpush.bf16.msra.mxu0 %v247_v16  ;;  %286 = vmatpush.bf16.msra.mxu2 %v247_v16  ;;  %v31_v46 = vld [vmem:[%s405_s0] sm:$0xff]  ;;  %v207_v47 = vor.u32 %v269_v43, %v206_v42  ;;  %v32_v48 = vld [vmem:[%s405_s0 + $0x8] sm:$0xff]  ;;  %v33_v49 = vld [vmem:[%s405_s0 + $0x10] sm:$0xff]  ;;  %v211_v51 = vor.u32 %v268_v44, %v208_v45  ;;  %s191_s30 = sshll.u32 %s408_s3, 4  ;;  %s362_s4 = smov 256   ;;  %s192_s30 = int_to_ptr.hbm [resolvable:$true] %s191_s30 }
  0x12   :  { %160 = vmatpush.bf16.msra.mxu1 %v251_v17  ;;  %294 = vmatpush.bf16.msra.mxu3 %v251_v17  ;;  %v34_v50 = vld [vmem:[%s405_s0 + $0x18] sm:$0xff]  ;;  %v35_v52 = vpack.c.bf16 %v32_v48, %v31_v46  ;;  %v53_v54 = vld [vmem:[%s407_s2] sm:$0x3]  ;;  %s361_s0 = smov [#allocation5]   ;;  %s363_s5 = smov 16  }
  0x13   :  { %v36_v53 = vpack.c.bf16 %v34_v50, %v33_v49  ;;  %v55_v55 = vperm.slane %v53_v54, 0  ;;  %v56_v56 = vperm.slane %v53_v54, 1  ;;  %s189_s2 = sshll.u32 %s361_s0, 4  ;;  %s190_s2 = int_to_ptr.vmem [resolvable:$true] %s189_s2 }
  0x15   :  { %142 = vmatpush.bf16.msra.mxu0 %v239_v22  ;;  %287 = vmatpush.bf16.msra.mxu2 %v239_v22 }
  0x16   :  { %161 = vmatpush.bf16.msra.mxu1 %v243_v23  ;;  %295 = vmatpush.bf16.msra.mxu3 %v243_v23 }
  0x19   :  { %143 = vmatpush.bf16.msra.mxu0 %v231_v28  ;;  %288 = vmatpush.bf16.msra.mxu2 %v231_v28 }
  0x1a   :  { %162 = vmatpush.bf16.msra.mxu1 %v235_v29  ;;  %296 = vmatpush.bf16.msra.mxu3 %v235_v29 }
  0x1d   :  { %144 = vmatpush.bf16.msra.mxu0 %v223_v34  ;;  %289 = vmatpush.bf16.msra.mxu2 %v223_v34 }
  0x1e   :  { %163 = vmatpush.bf16.msra.mxu1 %v227_v35  ;;  %297 = vmatpush.bf16.msra.mxu3 %v227_v35 }
  0x21   :  { %145 = vmatpush.bf16.msra.mxu0 %v215_v40  ;;  %290 = vmatpush.bf16.msra.mxu2 %v215_v40 }
  0x22   :  { %164 = vmatpush.bf16.msra.mxu1 %v219_v41  ;;  %298 = vmatpush.bf16.msra.mxu3 %v219_v41 }
  0x25   :  { %146 = vmatpush.bf16.msra.mxu0 %v207_v47  ;;  %291 = vmatpush.bf16.msra.mxu2 %v207_v47 }
  0x26   :  { %165 = vmatpush.bf16.msra.mxu1 %v211_v51  ;;  %299 = vmatpush.bf16.msra.mxu3 %v211_v51 }
  0x28   :  { %147 = vmatmul.bf16.vlgmr.msra.gmra.mxu0 %v35_v52  ;;  %152 = vmatmul.bf16.vlgmr.msra.gmra.mxu2 %v36_v53 }
  0x29   :  { %166 = vmatmul.bf16.vlgmr.msra.gmra.mxu1 %v35_v52  ;;  %171 = vmatmul.bf16.vlgmr.msra.gmra.mxu3 %v36_v53 }
  0xa5   :  { %v148_v57 = vpop.f32.mrf.mxu0 }
  0xa6   :  { %v149_v58 = vadd.f32 %v148_v57, %v55_v55  ;;  %v167_v59 = vpop.f32.mrf.mxu1 }
  0xa7   :  { %v168_v60 = vadd.f32 %v167_v59, %v56_v56 }
  0xa8   :  { %177 = vst [vmem:[#allocation5] sm:$0xff] %v149_v58 }
  0xa9   :  { %178 = vst [vmem:[#allocation5 + $0x8] sm:$0xff] %v168_v60 }
  0xab   :  { %v153_v61 = vpop.f32.mrf.mxu2 }
  0xac   :  { %v154_v62 = vadd.f32 %v153_v61, %v55_v55  ;;  %v172_v63 = vpop.f32.mrf.mxu3 }
  0xad   :  { %v173_v0 = vadd.f32 %v172_v63, %v56_v56  ;;  %v150_v1 = vpop.f32.mrf.mxu0 }
  0xae   :  { %181 = vst [vmem:[#allocation5 + $0x20] sm:$0xff] %v154_v62  ;;  %v151_v2 = vadd.f32 %v150_v1, %v55_v55  ;;  %v169_v3 = vpop.f32.mrf.mxu1 }
  0xaf   :  { %182 = vst [vmem:[#allocation5 + $0x28] sm:$0xff] %v173_v0  ;;  %v170_v4 = vadd.f32 %v169_v3, %v56_v56 }
  0xb0   :  { %179 = vst [vmem:[#allocation5 + $0x10] sm:$0xff] %v151_v2 }
  0xb1   :  { %180 = vst [vmem:[#allocation5 + $0x18] sm:$0xff] %v170_v4 }
  0xb3   :  { %v155_v5 = vpop.f32.mrf.mxu2 }
  0xb4   :  { %v156_v6 = vadd.f32 %v155_v5, %v55_v55  ;;  %v174_v7 = vpop.f32.mrf.mxu3 }
  0xb5   :  { %v175_v8 = vadd.f32 %v174_v7, %v56_v56 }
  0xb6   :  { %183 = vst [vmem:[#allocation5 + $0x30] sm:$0xff] %v156_v6 }
  0xb7   :  { %184 = vst [vmem:[#allocation5 + $0x38] sm:$0xff] %v175_v8 }
  0xb8   :  { %197 = dma.vmem_to_hbm [thread:$0]  %s190_s2, 1024, %s192_s30, [#allocation4], %s362_s4, %s362_s4, %s363_s5  }
  0xb9   :  { %356 = dma.done.wait [#allocation4], 1024  }
  0xba   :  { %357 = vsyncadd [#allocation4], 4294966272 }
  0xbb   :  { %202 = vsyncpa [#allocation3], 1 }
  0xbc   :  { %203 = vsyncpa [#allocation4], 1 }

// kernel: transformer_forward_pallas.4
= control target key start
LH: loop header
LB: loop body
LE: loop exit
PB: predicated region body
PF: predicated region fallthrough
CT: control target
= control target key end

     0   :  { %s2389_s0 = inlined_call_operand.vmem [shape: f32[2,16,128], index: 0, kind: input, shape index: {}]   ;;  %s2390_s1 = inlined_call_operand.vmem [shape: bf16[128,384], index: 1, kind: input, shape index: {}]   ;;  %s2391_s2 = inlined_call_operand.vmem [shape: f32[1,384], index: 2, kind: input, shape index: {}]   ;;  %s2392_s3 = inlined_call_operand.hbm [shape: bf16[128,128], index: 3, kind: input, shape index: {}]   ;;  %s2393_s4 = inlined_call_operand.vmem [shape: f32[1,128], index: 4, kind: input, shape index: {}]   ;;  %s2394_s5 = inlined_call_operand.vmem [shape: f32[1,128], index: 5, kind: input, shape index: {}]   ;;  %s2395_s6 = inlined_call_operand.vmem [shape: f32[1,128], index: 6, kind: input, shape index: {}]   ;;  %s2396_s7 = inlined_call_operand.hbm [shape: bf16[128,256], index: 7, kind: input, shape index: {}]   ;;  %s2397_s8 = inlined_call_operand.vmem [shape: f32[1,256], index: 8, kind: input, shape index: {}]   ;;  %s2398_s9 = inlined_call_operand.hbm [shape: bf16[256,128], index: 9, kind: input, shape index: {}]   ;;  %s2399_s10 = inlined_call_operand.vmem [shape: f32[1,128], index: 10, kind: input, shape index: {}]   ;;  %s2400_s11 = inlined_call_operand.vmem [shape: f32[1,128], index: 11, kind: input, shape index: {}]   ;;  %s2401_s12 = inlined_call_operand.vmem [shape: f32[1,128], index: 12, kind: input, shape index: {}]   ;;  %s2402_s13 = inlined_call_operand.vmem [shape: f32[2,16,128], index: 13, kind: output, shape index: {}]  }
   0x1   :  { %2403 = sst [smem:[#allocation9_spill]] %s2392_s3 }
   0x2   :  { %18 = vsyncpa [#allocation3], 0 }
   0x3   :  { %19 = vsyncpa [#allocation5], 0  ;;  %s2095_s25 = smov 0  }
   0x4 LB: > { %s374_s28 = sshll.u32 %s2396_s7, 4  ;;  %s2104_s29 = sadd.s32 4294967295, %s2014_s25   ;;  %s2014_s25 = sphi %s2095_s25, %s25_s25   ;;  %s375_s28 = int_to_ptr.hbm [resolvable:$true] %s374_s28 }
   0x5   : > { %p1487_p0 = scmp.ge.s32.totalorder %s2014_s25, 1  ;;  %p334_p1 = scmp.lt.s32.totalorder %s2014_s25, 3 }
   0x6   : > { %p1850_p2 = scmp.eq.s32.totalorder %s2104_s29, 0  ;;  %s2016_s14 = smov [#allocation4]  }
   0x7   : > { %p2109_p3 = pnand %p1487_p0, %p334_p1  ;;  %s376_s15 = sshll.u32 %s2016_s14, 4  ;;  %s377_s15 = int_to_ptr.vmem [resolvable:$true] %s376_s15 }
   0x8   : > { %s2405_s3 = sld [smem:[#allocation9_spill]]  ;;  %s2017_s20 = smov [#allocation2]  }
   0x9   : > { %p1840_p4 = pneg %p2109_p3  ;;  %s353_s21 = sshll.u32 %s2017_s20, 4  ;;  %s354_s21 = int_to_ptr.vmem [resolvable:$true] %s353_s21 }
   0xa   : > { %s2018_s22 = smov 128   ;;  %s2019_s23 = smov 8  }
   0xb   : > { %p2120_p5 = pnand %p1850_p2, %p1840_p4  ;;  %s391_s27 = sshll.u32 %s2398_s9, 4  ;;  %s392_s27 = int_to_ptr.hbm [resolvable:$true] %s391_s27 }
   0xc   : > { %s2020_s14 = smov 64   ;;  %s2021_s16 = smov 4  }
   0xd   : > { %1846 = dma.hbm_to_vmem [thread:$0]  (!%p2120_p5), %s375_s28, 2048, %s377_s15, [#allocation5], %s2018_s22, %s2018_s22, %s2019_s23  }
   0xe   : > { %s351_s18 = sshll.u32 %s2405_s3, 4  ;;  %s2022_s17 = smov [#allocation6]   ;;  %s352_s18 = int_to_ptr.hbm [resolvable:$true] %s351_s18 }
   0xf   : > { %1843 = dma.hbm_to_vmem [thread:$0]  (!%p2120_p5), %s352_s18, 1024, %s354_s21, [#allocation3], %s2020_s14, %s2020_s14, %s2021_s16  }
  0x10   : > { %s393_s3 = sshll.u32 %s2022_s17, 4  ;;  %426 = sbr.rel (%p2109_p3) target bundleno = 2248 (0x8c8), region = 72  ;;  %s394_s3 = int_to_ptr.vmem [resolvable:$true] %s393_s3 }
  0x11   : > { %1849 = dma.hbm_to_vmem [thread:$0]  (!%p2120_p5), %s392_s27, 2048, %s394_s3, [#allocation5], %s2020_s14, %s2020_s14, %s2021_s16  }
  0x15   : > { %2005 = dma.done.wait (%p1850_p2), [#allocation3], 1024  }
  0x16   : > { %2007 = vsyncadd (%p1850_p2), [#allocation3], 4294966272 }
  0x17   : > { %2009 = dma.done.wait (%p1850_p2), [#allocation5], 4096  }
  0x18   : > { %2011 = vsyncadd (%p1850_p2), [#allocation5], 4294963200  ;;  %v1586_v0 = vld [vmem:[%s2390_s1 + $0xa8] sm:$0xf]  ;;  %v1786_v1 = vld [vmem:[%s2390_s1 + $0xb0] sm:$0xf0] }
  0x19   : > { %v1785_v2 = vld [vmem:[%s2390_s1 + $0xac] sm:$0xf]  ;;  %v1587_v3 = vor.u32 %v1786_v1, %v1586_v0  ;;  %v1588_v4 = vld [vmem:[%s2390_s1 + $0xb4] sm:$0xf0]  ;;  %v1574_v5 = vld [vmem:[%s2390_s1 + $0x90] sm:$0xf] }
  0x1a   : > { %v1783_v6 = vld [vmem:[%s2390_s1 + $0x98] sm:$0xf0]  ;;  %v1591_v7 = vor.u32 %v1785_v2, %v1588_v4  ;;  %v1782_v8 = vld [vmem:[%s2390_s1 + $0x94] sm:$0xf]  ;;  %v1576_v9 = vld [vmem:[%s2390_s1 + $0x9c] sm:$0xf0] }
  0x1b   : > { %734 = vmatpush.bf16.msra.mxu0 %v1587_v3  ;;  %v1575_v10 = vor.u32 %v1783_v6, %v1574_v5  ;;  %v1579_v11 = vor.u32 %v1782_v8, %v1576_v9  ;;  %v1562_v12 = vld [vmem:[%s2390_s1 + $0x78] sm:$0xf]  ;;  %v1780_v13 = vld [vmem:[%s2390_s1 + $0x80] sm:$0xf0]  ;;  %v1779_v14 = vld [vmem:[%s2390_s1 + $0x7c] sm:$0xf] }
  0x1c   : > { %748 = vmatpush.bf16.msra.mxu1 %v1591_v7  ;;  %v1564_v15 = vld [vmem:[%s2390_s1 + $0x84] sm:$0xf0]  ;;  %v1563_v16 = vor.u32 %v1780_v13, %v1562_v12  ;;  %v1550_v18 = vld [vmem:[%s2390_s1 + $0x60] sm:$0xf]  ;;  %v1777_v19 = vld [vmem:[%s2390_s1 + $0x68] sm:$0xf0] }
  0x1d   : > { %v1567_v17 = vor.u32 %v1779_v14, %v1564_v15  ;;  %v1776_v20 = vld [vmem:[%s2390_s1 + $0x64] sm:$0xf]  ;;  %v1552_v21 = vld [vmem:[%s2390_s1 + $0x6c] sm:$0xf0]  ;;  %p481_p6 = scmp.lt.s32.totalorder %s2104_s29, 1  ;;  %v1551_v22 = vor.u32 %v1777_v19, %v1550_v18  ;;  %vm778_vm0 = vcmask 523264  }
  0x1e   : > { %v1538_v23 = vld [vmem:[%s2390_s1 + $0x48] sm:$0xf]  ;;  %v1594_v24 = vld [vmem:[%s2390_s1 + $0xb0] sm:$0xf]  ;;  %v1787_v25 = vld [vmem:[%s2390_s1 + $0xb8] sm:$0xf0]  ;;  %v1555_v26 = vor.u32 %v1776_v20, %v1552_v21 }
  0x1f   : > { %735 = vmatpush.bf16.msra.mxu0 %v1575_v10  ;;  %v1774_v27 = vld [vmem:[%s2390_s1 + $0x50] sm:$0xf0]  ;;  %v1595_v28 = vor.u32 %v1787_v25, %v1594_v24  ;;  %v1582_v29 = vld [vmem:[%s2390_s1 + $0x98] sm:$0xf]  ;;  %v1784_v30 = vld [vmem:[%s2390_s1 + $0xa0] sm:$0xf0] }
  0x20   : > { %749 = vmatpush.bf16.msra.mxu1 %v1579_v11  ;;  %v1773_v31 = vld [vmem:[%s2390_s1 + $0x4c] sm:$0xf]  ;;  %v1540_v32 = vld [vmem:[%s2390_s1 + $0x54] sm:$0xf0]  ;;  %v1583_v33 = vor.u32 %v1784_v30, %v1582_v29  ;;  %v1539_v34 = vor.u32 %v1774_v27, %v1538_v23  ;;  %s2408_s29 = smov (!%p481_p6, %s2104_s29), 1  ;;  %s2023_s22 = smov 64  }
  0x21   : > { %762 = vmatpush.bf16.msra.mxu2 %v1595_v28  ;;  %v1570_v35 = vld [vmem:[%s2390_s1 + $0x80] sm:$0xf]  ;;  %v1781_v36 = vld [vmem:[%s2390_s1 + $0x88] sm:$0xf0]  ;;  %v1543_v37 = vor.u32 %v1773_v31, %v1540_v32  ;;  %v1526_v38 = vld [vmem:[%s2390_s1 + $0x30] sm:$0xf] }
  0x22   : > { %v1771_v39 = vld [vmem:[%s2390_s1 + $0x38] sm:$0xf0]  ;;  %v1770_v40 = vld [vmem:[%s2390_s1 + $0x34] sm:$0xf]  ;;  %v1528_v41 = vld [vmem:[%s2390_s1 + $0x3c] sm:$0xf0]  ;;  %v1571_v42 = vor.u32 %v1781_v36, %v1570_v35 }
  0x23   : > { %736 = vmatpush.bf16.msra.mxu0 %v1563_v16  ;;  %v1527_v43 = vor.u32 %v1771_v39, %v1526_v38  ;;  %v1558_v44 = vld [vmem:[%s2390_s1 + $0x68] sm:$0xf]  ;;  %v1778_v45 = vld [vmem:[%s2390_s1 + $0x70] sm:$0xf0]  ;;  %v1531_v46 = vor.u32 %v1770_v40, %v1528_v41  ;;  %v1514_v47 = vld [vmem:[%s2390_s1 + $0x18] sm:$0xf] }
  0x24   : > { %750 = vmatpush.bf16.msra.mxu1 %v1567_v17  ;;  %v1768_v48 = vld [vmem:[%s2390_s1 + $0x20] sm:$0xf0]  ;;  %s1762_s30 = sshll.u32 %s2408_s29, 4  ;;  %v1767_v49 = vld [vmem:[%s2390_s1 + $0x1c] sm:$0xf]  ;;  %v1559_v51 = vor.u32 %v1778_v45, %v1558_v44  ;;  %vm799_vm1 = vcmask 130048  }
  0x25   : > { %763 = vmatpush.bf16.msra.mxu2 %v1583_v33  ;;  %v1516_v50 = vld [vmem:[%s2390_s1 + $0x24] sm:$0xf0]  ;;  %v1515_v52 = vor.u32 %v1768_v48, %v1514_v47  ;;  %s485_s26 = scalar_lea.vmem %s2389_s0, %s1762_s30  ;;  %v1546_v53 = vld [vmem:[%s2390_s1 + $0x50] sm:$0xf]  ;;  %v1775_v54 = vld [vmem:[%s2390_s1 + $0x58] sm:$0xf0]  ;;  %s490_s24 = scalar_lea.vmem %s2402_s13, %s1762_s30 }
  0x26   : > { %v1519_v55 = vor.u32 %v1767_v49, %v1516_v50  ;;  %v1502_v56 = vld [vmem:[%s2390_s1] sm:$0xf]  ;;  %v1765_v57 = vld [vmem:[%s2390_s1 + $0x8] sm:$0xf0]  ;;  %v1764_v58 = vld [vmem:[%s2390_s1 + $0x4] sm:$0xf]  ;;  %v1547_v61 = vor.u32 %v1775_v54, %v1546_v53 }
  0x27   : > { %737 = vmatpush.bf16.msra.mxu0 %v1551_v22  ;;  %v1504_v59 = vld [vmem:[%s2390_s1 + $0xc] sm:$0xf0]  ;;  %v2281_v60 = vld [vmem:[%s485_s26] sm:$0xff]  ;;  %v1503_v62 = vor.u32 %v1765_v57, %v1502_v56  ;;  %v2283_v63 = vld [vmem:[%s485_s26 + $0x8] sm:$0xff] }
  0x28   : > { %751 = vmatpush.bf16.msra.mxu1 %v1555_v26  ;;  %v1534_v0 = vld [vmem:[%s2390_s1 + $0x38] sm:$0xf]  ;;  %v1772_v1 = vld [vmem:[%s2390_s1 + $0x40] sm:$0xf0]  ;;  %v1507_v2 = vor.u32 %v1764_v58, %v1504_v59  ;;  %v598_v3 = vpack.c.bf16 %v2283_v63, %v2281_v60  ;;  %v1522_v5 = vld [vmem:[%s2390_s1 + $0x20] sm:$0xf] }
  0x29   : > { %764 = vmatpush.bf16.msra.mxu2 %v1571_v42  ;;  %v1535_v4 = vor.u32 %v1772_v1, %v1534_v0  ;;  %v1769_v6 = vld [vmem:[%s2390_s1 + $0x28] sm:$0xf0]  ;;  %v1510_v8 = vld [vmem:[%s2390_s1 + $0x8] sm:$0xf]  ;;  %v1766_v9 = vld [vmem:[%s2390_s1 + $0x10] sm:$0xf0] }
  0x2a   : > { %v1523_v7 = vor.u32 %v1769_v6, %v1522_v5  ;;  %v1511_v10 = vor.u32 %v1766_v9, %v1510_v8  ;;  %v526_v12 = vld [vmem:[%s2391_s2] sm:$0x7] }
  0x2b   : > { %738 = vmatpush.bf16.msra.mxu0 %v1539_v34  ;;  %v601_v14 = vperm.slane %v526_v12, 1  ;;  %v600_v18 = vperm.slane %v526_v12, 0  ;;  %v602_v26 = vperm.slane %v526_v12, 2 }
  0x2c   : > { %752 = vmatpush.bf16.msra.mxu1 %v1543_v37 }
  0x2d   : > { %765 = vmatpush.bf16.msra.mxu2 %v1559_v51 }
  0x2f   : > { %739 = vmatpush.bf16.msra.mxu0 %v1527_v43 }
  0x30   : > { %753 = vmatpush.bf16.msra.mxu1 %v1531_v46 }
  0x31   : > { %766 = vmatpush.bf16.msra.mxu2 %v1547_v61 }
  0x33   : > { %740 = vmatpush.bf16.msra.mxu0 %v1515_v52 }
  0x34   : > { %754 = vmatpush.bf16.msra.mxu1 %v1519_v55 }
  0x35   : > { %767 = vmatpush.bf16.msra.mxu2 %v1535_v4 }
  0x37   : > { %741 = vmatpush.bf16.msra.mxu0 %v1503_v62 }
  0x38   : > { %755 = vmatpush.bf16.msra.mxu1 %v1507_v2 }
  0x39   : > { %768 = vmatpush.bf16.msra.mxu2 %v1523_v7 }
  0x3a   : > { %742 = vmatmul.bf16.vlgmr.msra.gmra.mxu0 %v598_v3 }
  0x3b   : > { %756 = vmatmul.bf16.vlgmr.msra.gmra.mxu1 %v598_v3 }
  0x3d   : > { %769 = vmatpush.bf16.msra.mxu2 %v1511_v10 }
  0x40   : > { %770 = vmatmul.bf16.vlgmr.msra.gmra.mxu2 %v598_v3 }
  0xb7   : > { %v743_v13 = vpop.f32.mrf.mxu0 }
  0xb8   : > { %v757_v11 = vpop.f32.mrf.mxu1  ;;  %v744_v22 = vadd.f32 %v743_v13, %v600_v18 }
  0xb9   : > { %v758_v16 = vadd.f32 %v757_v11, %v601_v14 }
  0xbf   : > { %v745_v20 = vpop.f32.mrf.mxu0 }
  0xc0   : > { %v759_v15 = vpop.f32.mrf.mxu1  ;;  %v746_v23 = vadd.f32 %v745_v20, %v600_v18 }
  0xc1   : > { %v760_v17 = vadd.f32 %v759_v15, %v601_v14 }
  0xc2   : > { %v776_v24 = vpack.c.bf16 %v746_v23, %v744_v22 }
  0xc3   : > { %v777_v19 = vpack.c.bf16 %v760_v17, %v758_v16  ;;  %v771_v25 = vpop.f32.mrf.mxu2 }
  0xc4   : > { %v772_v28 = vadd.f32 %v771_v25, %v602_v26 }
  0xc5   : > { %871 = vrot.lane.b32.xlu2 %v777_v19, %s2023_s22  ;;  %v783_v21 = vsel %vm778_vm0, %v777_v19, 0 }
  0xc6   : > { %792 = vmatpush.bf16.xpose.msra.mxu3 %v783_v21 }
  0xcb   : > { %v773_v27 = vpop.f32.mrf.mxu2 }
  0xcc   : > { %v774_v29 = vadd.f32 %v773_v27, %v602_v26 }
  0xcd   : > { %868 = vrot.lane.b32.xlu2 %v776_v24, %s2023_s22  ;;  %1596 = vmatmul.msk.bf16.vlgmr.msra.gmra.mxu3 %vm778_vm0, %v776_v24 }
  0xce   : > { %v2312_v30 = vpack.c.bf16 %v774_v29, %v772_v28 }
  0xd0   : > { %860 = vmatpush.bf16.msrb.mxu3 %v2312_v30 }
 0x11f   : > { %v872_v31 = vpop.permute.xlu2 %871 }
 0x120   : > { %v877_v32 = vsel %vm778_vm0, %v872_v31, 0 }
 0x121   : > { %886 = vmatpush.bf16.xpose.msra.mxu3 %v877_v32 }
 0x127   : > { %v869_v10 = vpop.permute.xlu2 %868 }
 0x150   : > { %v794_v33 = vpop.f32.mrf.mxu3 }
 0x151   : > { %v800_v34 = vsel %vm799_vm1, %v794_v33, -inf }
 0x152   : > { %801 = vmax.xlane.f32.xlu0 %v800_v34 }
 0x158   : > { %v796_v35 = vpop.f32.mrf.mxu3 }
 0x159   : > { %v803_v36 = vsel %vm799_vm1, %v796_v35, -inf }
 0x15a   : > { %804 = vmax.xlane.f32.xlu0 %v803_v36 }
 0x1c5   : > { %v802_v37 = vpop.xlane.xlu0 %801 }
 0x1c6   : > { %v806_v38 = vsub.f32 %v794_v33, %v802_v37 }
 0x1c8   : > { %v808_v39 = vmul.f32 1.442695, %v806_v38 }
 0x1ca   : > { %1884 = vpow2.f32 %v808_v39 }
 0x1cd   : > { %v805_v40 = vpop.xlane.xlu0 %804 }
 0x1ce   : > { %v807_v41 = vsub.f32 %v796_v35, %v805_v40 }
 0x1d0   : > { %v1885_v42 = vpop.eup %1884  ;;  %v810_v43 = vmul.f32 1.442695, %v807_v41 }
 0x1d1   : > { %v812_v44 = vsel %vm799_vm1, %v1885_v42, 0.0 }
 0x1d2   : > { %1886 = vpow2.f32 %v810_v43  ;;  %813 = vadd.xlane.f32.xlu1 %v812_v44 }
 0x1d8   : > { %v1887_v45 = vpop.eup %1886 }
 0x1d9   : > { %v815_v46 = vsel %vm799_vm1, %v1887_v45, 0.0 }
 0x1da   : > { %816 = vadd.xlane.f32.xlu1 %v815_v46 }
 0x245   : > { %v814_v47 = vpop.xlane.xlu1 %813 }
 0x246   : > { %1888 = vrcp.f32 %v814_v47  ;;  %v829_v56 = vand.u32 2147483648, %v814_v47  ;;  %vm823_vm3 = vweird.f32 %v814_v47  ;;  %v827_v57 = vand.u32 2147483647, %v814_v47 }
 0x248   : > { %v830_v1 = vor.u32 1.1754944e-38, %v829_v56  ;;  %vm828_vm6 = vcmp.eq.f32.partialorder %v827_v57, 8.507059e+37  ;;  %v1792_v56 = vld [vmem:[#allocation2 + $0x20] sm:$0xff]  ;;  %v1791_v57 = vld [vmem:[#allocation2 + $0x18] sm:$0xff] }
 0x24c   : > { %v1889_v48 = vpop.eup %1888 }
 0x24d   : > { %v819_v49 = vmul.f32 %v1889_v48, %v814_v47  ;;  %v817_v50 = vpop.xlane.xlu1 %816  ;;  %vm824_vm2 = vweird.f32 %v1889_v48 }
 0x24e   : > { %1890 = vrcp.f32 %v817_v50  ;;  %vm825_vm4 = vmor %vm823_vm3, %vm824_vm2  ;;  %v844_v59 = vand.u32 2147483648, %v817_v50  ;;  %v842_v0 = vand.u32 2147483647, %v817_v50  ;;  %vm838_vm7 = vweird.f32 %v817_v50 }
 0x24f   : > { %v820_v51 = vsub.f32 1.0, %v819_v49 }
 0x250   : > { %v845_v3 = vor.u32 1.1754944e-38, %v844_v59  ;;  %vm843_vm9 = vcmp.eq.f32.partialorder %v842_v0, 8.507059e+37 }
 0x251   : > { %v821_v52 = vmul.f32 %v1889_v48, %v820_v51 }
 0x253   : > { %v822_v54 = vadd.f32 %v1889_v48, %v821_v52 }
 0x254   : > { %v1891_v53 = vpop.eup %1890 }
 0x255   : > { %v834_v55 = vmul.f32 %v1891_v53, %v817_v50  ;;  %v826_v61 = vsel %vm825_vm4, %v1889_v48, %v822_v54  ;;  %vm839_vm5 = vweird.f32 %v1891_v53  ;;  %v1794_v54 = vld [vmem:[#allocation2 + $0x30] sm:$0xff] }
 0x256   : > { %vm840_vm8 = vmor %vm838_vm7, %vm839_vm5  ;;  %v831_v4 = vsel %vm828_vm6, %v830_v1, %v826_v61  ;;  %v1789_v61 = vld [vmem:[#allocation2 + $0x8] sm:$0xff]  ;;  %v1788_v1 = vld [vmem:[#allocation2] sm:$0xff] }
 0x257   : > { %v835_v58 = vsub.f32 1.0, %v834_v55  ;;  %v832_v7 = vmul.f32 %v1885_v42, %v831_v4  ;;  %v1793_v55 = vld [vmem:[#allocation2 + $0x28] sm:$0xff] }
 0x259   : > { %v836_v62 = vmul.f32 %v1891_v53, %v835_v58  ;;  %v1790_v58 = vld [vmem:[#allocation2 + $0x10] sm:$0xff] }
 0x25b   : > { %v837_v2 = vadd.f32 %v1891_v53, %v836_v62 }
 0x25d   : > { %v841_v5 = vsel %vm840_vm8, %v1891_v53, %v837_v2  ;;  %v1795_v53 = vld [vmem:[#allocation2 + $0x38] sm:$0xff] }
 0x25e   : > { %v846_v6 = vsel %vm843_vm9, %v845_v3, %v841_v5  ;;  %1025 = vmatpush.bf16.msrb.mxu1 %v1795_v53  ;;  %v1803_v53 = vld [vmem:[#allocation4 + $0x34] sm:$0xf0] }
 0x25f   : > { %v847_v8 = vmul.f32 %v1887_v45, %v846_v6 }
 0x261   : > { %v848_v9 = vpack.c.bf16 %v847_v8, %v832_v7  ;;  %v1878_v8 = vld [vmem:[%s2393_s4] ss:$0 sm:$0xff] }
 0x262   : > { %1026 = vmatpush.bf16.msrb.mxu1 %v1794_v54  ;;  %v1802_v54 = vld [vmem:[#allocation4 + $0x34] sm:$0xf] }
 0x263   : > { %1597 = vmatmul.msk.bf16.vlgmr.msrb.gmra.mxu3 %vm799_vm1, %v848_v9 }
 0x266   : > { %1027 = vmatpush.bf16.msrb.mxu1 %v1793_v55 }
 0x26a   : > { %1028 = vmatpush.bf16.msrb.mxu1 %v1792_v56  ;;  %v1660_v56 = vld [vmem:[#allocation4 + $0x38] sm:$0xf0] }
 0x26e   : > { %1029 = vmatpush.bf16.msrb.mxu1 %v1791_v57  ;;  %v1663_v57 = vor.u32 %v1802_v54, %v1660_v56  ;;  %v1822_v54 = vld [vmem:[#allocation6 + $0x50] sm:$0xff]  ;;  %v1812_v56 = vld [vmem:[#allocation6] sm:$0xff] }
 0x272   : > { %1030 = vmatpush.bf16.msrb.mxu1 %v1790_v58  ;;  %v1650_v58 = vld [vmem:[#allocation4 + $0x20] sm:$0xf] }
 0x273   : > { %1598 = vmatmul.msk.bf16.vlgmr.msra.gmra.mxu3 %vm778_vm0, %v869_v10 }
 0x276   : > { %1031 = vmatpush.bf16.msrb.mxu1 %v1789_v61  ;;  %v1800_v61 = vld [vmem:[#allocation4 + $0x24] sm:$0xf] }
 0x27a   : > { %1032 = vmatpush.bf16.msrb.mxu1 %v1788_v1 }
 0x2e6   : > { %v2322_v11 = vpop.f32.mrf.mxu3 }
 0x2ee   : > { %v2324_v12 = vpop.f32.mrf.mxu3 }
 0x2f6   : > { %v888_v13 = vpop.f32.mrf.mxu3 }
 0x2f7   : > { %v893_v14 = vsel %vm799_vm1, %v888_v13, -inf }
 0x2f8   : > { %894 = vmax.xlane.f32.xlu0 %v893_v14 }
 0x2fe   : > { %v890_v15 = vpop.f32.mrf.mxu3 }
 0x2ff   : > { %v896_v16 = vsel %vm799_vm1, %v890_v15, -inf }
 0x300   : > { %897 = vmax.xlane.f32.xlu1 %v896_v16 }
 0x319   : > { %943 = vrot.lane.b32.xlu1 %v2312_v30, %s2023_s22 }
 0x36b   : > { %v895_v17 = vpop.xlane.xlu0 %894 }
 0x36c   : > { %v899_v18 = vsub.f32 %v888_v13, %v895_v17 }
 0x36e   : > { %v901_v19 = vmul.f32 1.442695, %v899_v18 }
 0x370   : > { %1892 = vpow2.f32 %v901_v19 }
 0x373   : > { %v898_v20 = vpop.xlane.xlu1 %897 }
 0x374   : > { %v900_v21 = vsub.f32 %v890_v15, %v898_v20 }
 0x376   : > { %v1893_v22 = vpop.eup %1892  ;;  %v903_v23 = vmul.f32 1.442695, %v900_v21 }
 0x377   : > { %v905_v24 = vsel %vm799_vm1, %v1893_v22, 0.0 }
 0x378   : > { %1894 = vpow2.f32 %v903_v23  ;;  %906 = vadd.xlane.f32.xlu2 %v905_v24 }
 0x37e   : > { %v1895_v25 = vpop.eup %1894 }
 0x37f   : > { %v908_v26 = vsel %vm799_vm1, %v1895_v25, 0.0 }
 0x380   : > { %909 = vadd.xlane.f32.xlu0 %v908_v26 }
 0x38b   : > { %v944_v27 = vpop.permute.xlu1 %943 }
 0x38c   : > { %956 = vmatpush.bf16.msrb.mxu0 %v944_v27 }
 0x3eb   : > { %v907_v28 = vpop.xlane.xlu2 %906 }
 0x3ec   : > { %1896 = vrcp.f32 %v907_v28  ;;  %v922_v37 = vand.u32 2147483648, %v907_v28  ;;  %vm916_vm11 = vweird.f32 %v907_v28  ;;  %v920_v38 = vand.u32 2147483647, %v907_v28 }
 0x3ee   : > { %v923_v44 = vor.u32 1.1754944e-38, %v922_v37  ;;  %vm921_vm14 = vcmp.eq.f32.partialorder %v920_v38, 8.507059e+37  ;;  %v1684_v38 = vld [vmem:[#allocation4 + $0x68] sm:$0xf0] }
 0x3f2   : > { %v1897_v29 = vpop.eup %1896 }
 0x3f3   : > { %v912_v30 = vmul.f32 %v1897_v29, %v907_v28  ;;  %v910_v31 = vpop.xlane.xlu0 %909  ;;  %vm917_vm10 = vweird.f32 %v1897_v29  ;;  %v1690_v28 = vld [vmem:[#allocation4 + $0x70] sm:$0xf] }
 0x3f4   : > { %1898 = vrcp.f32 %v910_v31  ;;  %vm918_vm12 = vmor %vm916_vm11, %vm917_vm10  ;;  %v937_v40 = vand.u32 2147483648, %v910_v31  ;;  %v935_v43 = vand.u32 2147483647, %v910_v31  ;;  %vm931_vm15 = vweird.f32 %v910_v31 }
 0x3f5   : > { %v913_v32 = vsub.f32 1.0, %v912_v30  ;;  %v1810_v30 = vld [vmem:[#allocation4 + $0x74] sm:$0xf] }
 0x3f6   : > { %v938_v46 = vor.u32 1.1754944e-38, %v937_v40  ;;  %vm936_vm3 = vcmp.eq.f32.partialorder %v935_v43, 8.507059e+37  ;;  %v1674_v40 = vld [vmem:[#allocation4 + $0x50] sm:$0xf] }
 0x3f7   : > { %v914_v33 = vmul.f32 %v1897_v29, %v913_v32  ;;  %v1692_v32 = vld [vmem:[#allocation4 + $0x78] sm:$0xf0] }
 0x3f9   : > { %v915_v35 = vadd.f32 %v1897_v29, %v914_v33  ;;  %v1695_v33 = vor.u32 %v1810_v30, %v1692_v32  ;;  %v1824_v32 = vld [vmem:[#allocation6 + $0x60] sm:$0xff] }
 0x3fa   : > { %v1899_v34 = vpop.eup %1898 }
 0x3fb   : > { %v927_v36 = vmul.f32 %v1899_v34, %v910_v31  ;;  %v919_v41 = vsel %vm918_vm12, %v1897_v29, %v915_v35  ;;  %vm932_vm13 = vweird.f32 %v1899_v34  ;;  %v1811_v29 = vld [vmem:[#allocation4 + $0x74] sm:$0xf0]  ;;  %1198 = vmatpush.bf16.msrb.mxu3 %v1695_v33  ;;  %v1809_v35 = vld [vmem:[#allocation4 + $0x64] sm:$0xf0] }
 0x3fc   : > { %vm933_vm2 = vmor %vm931_vm15, %vm932_vm13  ;;  %v924_v47 = vsel %vm921_vm14, %v923_v44, %v919_v41  ;;  %v1691_v31 = vor.u32 %v1811_v29, %v1690_v28  ;;  %v1807_v41 = vld [vmem:[#allocation4 + $0x54] sm:$0xf0]  ;;  %v1676_v44 = vld [vmem:[#allocation4 + $0x58] sm:$0xf0] }
 0x3fd   : > { %v928_v39 = vsub.f32 1.0, %v927_v36  ;;  %v925_v50 = vmul.f32 %v1893_v22, %v924_v47  ;;  %v1808_v36 = vld [vmem:[#allocation4 + $0x64] sm:$0xf]  ;;  %v1675_v43 = vor.u32 %v1807_v41, %v1674_v40  ;;  %v1805_v47 = vld [vmem:[#allocation4 + $0x44] sm:$0xf0] }
 0x3fe   : > { %1184 = vmatpush.bf16.msrb.mxu2 %v1691_v31  ;;  %v1825_v28 = vld [vmem:[#allocation6 + $0x68] sm:$0xff]  ;;  %v1816_v31 = vld [vmem:[#allocation6 + $0x20] sm:$0xff] }
 0x3ff   : > { %v929_v42 = vmul.f32 %v1899_v34, %v928_v39  ;;  %v1687_v39 = vor.u32 %v1808_v36, %v1684_v38 }
 0x401   : > { %v930_v45 = vadd.f32 %v1899_v34, %v929_v42  ;;  %1199 = vmatpush.bf16.msrb.mxu3 %v1687_v39  ;;  %v1806_v42 = vld [vmem:[#allocation4 + $0x54] sm:$0xf] }
 0x403   : > { %v934_v48 = vsel %vm933_vm2, %v1899_v34, %v930_v45  ;;  %v1682_v34 = vld [vmem:[#allocation4 + $0x60] sm:$0xf]  ;;  %v1679_v45 = vor.u32 %v1806_v42, %v1676_v44 }
 0x404   : > { %v939_v49 = vsel %vm936_vm3, %v938_v46, %v934_v48  ;;  %v1683_v37 = vor.u32 %v1809_v35, %v1682_v34  ;;  %v1666_v46 = vld [vmem:[#allocation4 + $0x40] sm:$0xf]  ;;  %v1804_v48 = vld [vmem:[#allocation4 + $0x44] sm:$0xf] }
 0x405   : > { %v940_v51 = vmul.f32 %v1895_v25, %v939_v49  ;;  %1200 = vmatpush.bf16.msrb.mxu3 %v1679_v45  ;;  %v1667_v49 = vor.u32 %v1805_v47, %v1666_v46  ;;  %v1879_v42 = vld [vmem:[%s2394_s5] ss:$0 sm:$0xff] }
 0x406   : > { %1185 = vmatpush.bf16.msrb.mxu2 %v1683_v37  ;;  %v1880_v47 = vld [vmem:[%s2395_s6] ss:$0 sm:$0xff] }
 0x407   : > { %v941_v52 = vpack.c.bf16 %v940_v51, %v925_v50  ;;  %v1668_v50 = vld [vmem:[#allocation4 + $0x48] sm:$0xf0] }
 0x408   : > { %v1671_v51 = vor.u32 %v1804_v48, %v1668_v50 }
 0x409   : > { %1599 = vmatmul.msk.bf16.vlgmr.msrb.gmra.mxu0 %vm799_vm1, %v941_v52  ;;  %v1658_v52 = vld [vmem:[#allocation4 + $0x30] sm:$0xf] }
 0x40a   : > { %1186 = vmatpush.bf16.msrb.mxu2 %v1675_v43  ;;  %1201 = vmatpush.bf16.msrb.mxu3 %v1671_v51  ;;  %v1659_v55 = vor.u32 %v1803_v53, %v1658_v52  ;;  %v1823_v52 = vld [vmem:[#allocation6 + $0x58] sm:$0xff]  ;;  %v1814_v53 = vld [vmem:[#allocation6 + $0x10] sm:$0xff] }
 0x40e   : > { %1187 = vmatpush.bf16.msrb.mxu2 %v1667_v49  ;;  %1202 = vmatpush.bf16.msrb.mxu3 %v1663_v57  ;;  %v1820_v57 = vld [vmem:[#allocation6 + $0x40] sm:$0xff] }
 0x412   : > { %1188 = vmatpush.bf16.msrb.mxu2 %v1659_v55  ;;  %v1821_v55 = vld [vmem:[#allocation6 + $0x48] sm:$0xff] }
 0x486   : > { %v958_v59 = vpop.f32.mrf.mxu0 }
 0x48e   : > { %v960_v62 = vpop.f32.mrf.mxu0 }
 0x48f   : > { %v1873_v0 = vpack.i.bf16 %v960_v62, %v958_v59  ;;  %v1801_v59 = vld [vmem:[#allocation4 + $0x24] sm:$0xf0] }
 0x490   : > { %v1651_v62 = vor.u32 %v1801_v59, %v1650_v58  ;;  %v562_v58 = vld [vmem:[%s2397_s8] sm:$0x3] }
 0x491   : > { %1874 = vrot.lane.b32.xlu0 %v1873_v0, %s2023_s22  ;;  %v1652_v0 = vld [vmem:[#allocation4 + $0x28] sm:$0xf0] }
 0x492   : > { %v1655_v1 = vor.u32 %v1800_v61, %v1652_v0  ;;  %1189 = vmatpush.bf16.msrb.mxu2 %v1651_v62  ;;  %v1100_v62 = vperm.slane %v562_v58, 0  ;;  %v1101_v0 = vperm.slane %v562_v58, 1 }
 0x494   : > { %1203 = vmatpush.bf16.msrb.mxu3 %v1655_v1 }
 0x503   : > { %v1875_v2 = vpop.permute.xlu0 %1874 }
 0x504   : > { %v1877_v3 = vunpack.i.h.bf16 %v1875_v2  ;;  %v1876_v4 = vunpack.i.l.bf16 %v1875_v2  ;;  %v1642_v2 = vld [vmem:[#allocation4 + $0x10] sm:$0xf] }
 0x506   : > { %v971_v5 = vsel %vm778_vm0, %v2322_v11, %v1876_v4  ;;  %v972_v6 = vsel %vm778_vm0, %v2324_v12, %v1877_v3  ;;  %v2024_v11 = vmov 128.0   ;;  %v1799_v3 = vld [vmem:[#allocation4 + $0x14] sm:$0xf0]  ;;  %v1798_v4 = vld [vmem:[#allocation4 + $0x14] sm:$0xf] }
 0x507   : > { %v973_v7 = vpack.c.bf16 %v972_v6, %v971_v5  ;;  %1900 = vrcp.f32 %v2024_v11  ;;  %v1643_v5 = vor.u32 %v1799_v3, %v1642_v2  ;;  %v1644_v6 = vld [vmem:[#allocation4 + $0x18] sm:$0xf0] }
 0x509   : > { %1033 = vmatmul.bf16.vlgmr.msrb.gmra.mxu1 %v973_v7  ;;  %v1647_v7 = vor.u32 %v1798_v4, %v1644_v6  ;;  %1190 = vmatpush.bf16.msrb.mxu2 %v1643_v5 }
 0x50b   : > { %1204 = vmatpush.bf16.msrb.mxu3 %v1647_v7 }
 0x50d   : > { %v1901_v17 = vpop.eup %1900 }
 0x50e   : > { %v1046_v12 = vmul.f32 128.0, %v1901_v17  ;;  %vm1050_vm0 = vweird.f32 %v1901_v17 }
 0x510   : > { %v1047_v18 = vsub.f32 1.0, %v1046_v12  ;;  %v1819_v12 = vld [vmem:[#allocation6 + $0x38] sm:$0xff] }
 0x511   : > { %1317 = vmatpush.bf16.msra.mxu0 %v1819_v12 }
 0x512   : > { %v1048_v19 = vmul.f32 %v1901_v17, %v1047_v18  ;;  %v1827_v18 = vld [vmem:[#allocation6 + $0x78] sm:$0xff] }
 0x513   : > { %1331 = vmatpush.bf16.msra.mxu1 %v1827_v18 }
 0x514   : > { %v1049_v20 = vadd.f32 %v1901_v17, %v1048_v19 }
 0x516   : > { %v2343_v21 = vsel %vm1050_vm0, %v1901_v17, %v1049_v20 }
 0x586   : > { %v1034_v9 = vpop.f32.mrf.mxu1 }
 0x587   : > { %v1035_v10 = vadd.f32 %v1878_v8, %v1034_v9  ;;  %v1797_v9 = vld [vmem:[#allocation4 + $0x4] sm:$0xf0] }
 0x589   : > { %v1039_v13 = vadd.f32 %v1035_v10, %v2281_v60  ;;  %v1796_v10 = vld [vmem:[#allocation4 + $0x4] sm:$0xf] }
 0x58b   : > { %1041 = vadd.xlane.f32.xlu1 %v1039_v13 }
 0x58e   : > { %v1036_v14 = vpop.f32.mrf.mxu1 }
 0x58f   : > { %v1037_v15 = vadd.f32 %v1878_v8, %v1036_v14  ;;  %v1634_v8 = vld [vmem:[#allocation4] sm:$0xf] }
 0x590   : > { %v1635_v14 = vor.u32 %v1797_v9, %v1634_v8 }
 0x591   : > { %v1040_v16 = vadd.f32 %v1037_v15, %v2283_v63  ;;  %v1636_v15 = vld [vmem:[#allocation4 + $0x8] sm:$0xf0] }
 0x592   : > { %v1639_v11 = vor.u32 %v1796_v10, %v1636_v15  ;;  %1191 = vmatpush.bf16.msrb.mxu2 %v1635_v14  ;;  %v1881_v15 = vld [vmem:[%s2399_s10] ss:$0 sm:$0xff] }
 0x593   : > { %1043 = vadd.xlane.f32.xlu0 %v1040_v16 }
 0x594   : > { %1205 = vmatpush.bf16.msrb.mxu3 %v1639_v11 }
 0x5fe   : > { %v1042_v22 = vpop.xlane.xlu1 %1041 }
 0x5ff   : > { %v1052_v23 = vmul.f32 %v2343_v21, %v1042_v22  ;;  %v1818_v22 = vld [vmem:[#allocation6 + $0x30] sm:$0xff] }
 0x600   : > { %1318 = vmatpush.bf16.msra.mxu0 %v1818_v22 }
 0x601   : > { %v2346_v60 = vsub.f32 %v1039_v13, %v1052_v23  ;;  %v1826_v23 = vld [vmem:[#allocation6 + $0x70] sm:$0xff] }
 0x602   : > { %1332 = vmatpush.bf16.msra.mxu1 %v1826_v23 }
 0x603   : > { %v1056_v24 = vmul.f32 %v2346_v60, %v2346_v60 }
 0x605   : > { %1058 = vadd.xlane.f32.xlu2 %v1056_v24 }
 0x606   : > { %v1044_v63 = vpop.xlane.xlu0 %1043  ;;  %1333 = vmatpush.bf16.msra.mxu1 %v1825_v28 }
 0x607   : > { %v1053_v25 = vmul.f32 %v2343_v21, %v1044_v63 }
 0x609   : > { %v2351_v26 = vsub.f32 %v1040_v16, %v1053_v25 }
 0x60a   : > { %1334 = vmatpush.bf16.msra.mxu1 %v1824_v32 }
 0x60b   : > { %v1057_v27 = vmul.f32 %v2351_v26, %v2351_v26 }
 0x60d   : > { %1060 = vadd.xlane.f32.xlu2 %v1057_v27  ;;  %v1817_v27 = vld [vmem:[#allocation6 + $0x28] sm:$0xff] }
 0x60e   : > { %1319 = vmatpush.bf16.msra.mxu0 %v1817_v27  ;;  %1335 = vmatpush.bf16.msra.mxu1 %v1823_v52 }
 0x612   : > { %1320 = vmatpush.bf16.msra.mxu0 %v1816_v31  ;;  %1336 = vmatpush.bf16.msra.mxu1 %v1822_v54 }
 0x616   : > { %1337 = vmatpush.bf16.msra.mxu1 %v1821_v55 }
 0x61a   : > { %1338 = vmatpush.bf16.msra.mxu1 %v1820_v57 }
 0x678   : > { %v1059_v13 = vpop.xlane.xlu2 %1058 }
 0x679   : > { %v1062_v16 = vmul.f32 %v1059_v13, %v2343_v21 }
 0x67b   : > { %v1064_v17 = vadd.f32 1e-05, %v1062_v16 }
 0x67d   : > { %1902 = vrsqrt.f32 %v1064_v17  ;;  %vm1072_vm4 = vweird.f32 %v1064_v17 }
 0x680   : > { %v1061_v19 = vpop.xlane.xlu2 %1060 }
 0x681   : > { %v1063_v20 = vmul.f32 %v1061_v19, %v2343_v21 }
 0x683   : > { %v1903_v24 = vpop.eup %1902  ;;  %v1065_v63 = vadd.f32 1e-05, %v1063_v20 }
 0x684   : > { %v1067_v25 = vmul.f32 %v1903_v24, %v1064_v17  ;;  %vm1073_vm1 = vweird.f32 %v1903_v24 }
 0x685   : > { %1904 = vrsqrt.f32 %v1065_v63  ;;  %vm1074_vm5 = vmor %vm1072_vm4, %vm1073_vm1  ;;  %vm1082_vm7 = vweird.f32 %v1065_v63 }
 0x686   : > { %v1068_v29 = vmul.f32 %v1903_v24, %v1067_v25 }
 0x688   : > { %v1069_v30 = vmul.f32 0.5, %v1068_v29 }
 0x68a   : > { %v1070_v33 = vsub.f32 1.5, %v1069_v30 }
 0x68b   : > { %v1905_v34 = vpop.eup %1904 }
 0x68c   : > { %v1071_v35 = vmul.f32 %v1903_v24, %v1070_v33  ;;  %v1077_v36 = vmul.f32 %v1905_v34, %v1065_v63  ;;  %vm1083_vm6 = vweird.f32 %v1905_v34 }
 0x68d   : > { %vm1084_vm8 = vmor %vm1082_vm7, %vm1083_vm6 }
 0x68e   : > { %v1078_v37 = vmul.f32 %v1905_v34, %v1077_v36  ;;  %v1075_v38 = vsel %vm1074_vm5, %v1903_v24, %v1071_v35 }
 0x68f   : > { %v1086_v41 = vmul.f32 %v1075_v38, %v2346_v60  ;;  %v1815_v60 = vld [vmem:[#allocation6 + $0x18] sm:$0xff] }
 0x690   : > { %v1079_v39 = vmul.f32 0.5, %v1078_v37  ;;  %1321 = vmatpush.bf16.msra.mxu0 %v1815_v60 }
 0x691   : > { %v1091_v46 = vmul.f32 %v1879_v42, %v1086_v41 }
 0x692   : > { %v1080_v40 = vsub.f32 1.5, %v1079_v39 }
 0x693   : > { %v1096_v49 = vadd.f32 %v1880_v47, %v1091_v46 }
 0x694   : > { %v1081_v43 = vmul.f32 %v1905_v34, %v1080_v40  ;;  %1322 = vmatpush.bf16.msra.mxu0 %v1814_v53 }
 0x696   : > { %v1085_v44 = vsel %vm1084_vm8, %v1905_v34, %v1081_v43 }
 0x697   : > { %v1087_v45 = vmul.f32 %v1085_v44, %v2351_v26  ;;  %v1813_v26 = vld [vmem:[#allocation6 + $0x8] sm:$0xff] }
 0x698   : > { %1323 = vmatpush.bf16.msra.mxu0 %v1813_v26 }
 0x699   : > { %v1092_v48 = vmul.f32 %v1879_v42, %v1087_v45 }
 0x69b   : > { %v1097_v50 = vadd.f32 %v1880_v47, %v1092_v48  ;;  %v1882_v47 = vld [vmem:[%s2400_s11] ss:$0 sm:$0xff] }
 0x69c   : > { %1324 = vmatpush.bf16.msra.mxu0 %v1812_v56 }
 0x69d   : > { %v1098_v51 = vpack.c.bf16 %v1097_v50, %v1096_v49 }
 0x69f   : > { %1192 = vmatmul.bf16.vlgmr.msrb.gmra.mxu2 %v1098_v51  ;;  %1206 = vmatmul.bf16.vlgmr.msrb.gmra.mxu3 %v1098_v51 }
 0x722   : > { %v1193_v59 = vpop.f32.mrf.mxu2  ;;  %v1207_v61 = vpop.f32.mrf.mxu3 }
 0x723   : > { %v1194_v1 = vadd.f32 %v1193_v59, %v1100_v62  ;;  %v1208_v2 = vadd.f32 %v1207_v61, %v1101_v0 }
 0x725   : > { %v1212_v7 = vmax.f32 %v1194_v1, 0.0  ;;  %v1213_v8 = vmax.f32 %v1208_v2, 0.0 }
 0x72a   : > { %v1195_v3 = vpop.f32.mrf.mxu2  ;;  %v1209_v4 = vpop.f32.mrf.mxu3 }
 0x72b   : > { %v1196_v5 = vadd.f32 %v1195_v3, %v1100_v62  ;;  %v1210_v6 = vadd.f32 %v1209_v4, %v1101_v0 }
 0x72d   : > { %v1214_v9 = vmax.f32 %v1196_v5, 0.0  ;;  %v1215_v10 = vmax.f32 %v1210_v6, 0.0 }
 0x72f   : > { %v1216_v13 = vpack.c.bf16 %v1214_v9, %v1212_v7  ;;  %v1217_v14 = vpack.c.bf16 %v1215_v10, %v1213_v8 }
 0x731   : > { %1325 = vmatmul.bf16.vlgmr.msra.gmra.mxu0 %v1216_v13  ;;  %1339 = vmatmul.bf16.vlgmr.msra.gmra.mxu1 %v1217_v14 }
 0x7ae   : > { %v1326_v16 = vpop.f32.mrf.mxu0  ;;  %v1340_v11 = vpop.f32.mrf.mxu1 }
 0x7af   : > { %v1327_v17 = vadd.f32 %v1881_v15, %v1326_v16 }
 0x7b1   : > { %v1341_v12 = vadd.f32 %v1340_v11, %v1327_v17 }
 0x7b3   : > { %v1345_v18 = vadd.f32 %v1341_v12, %v1096_v49  ;;  %v1883_v49 = vld [vmem:[%s2401_s12] ss:$0 sm:$0xff] }
 0x7b5   : > { %1347 = vadd.xlane.f32.xlu2 %v1345_v18 }
 0x7b6   : > { %v1328_v19 = vpop.f32.mrf.mxu0  ;;  %v1342_v22 = vpop.f32.mrf.mxu1 }
 0x7b7   : > { %v1329_v20 = vadd.f32 %v1881_v15, %v1328_v19 }
 0x7b9   : > { %v1343_v23 = vadd.f32 %v1342_v22, %v1329_v20 }
 0x7bb   : > { %v1346_v24 = vadd.f32 %v1343_v23, %v1097_v50 }
 0x7bd   : > { %1349 = vadd.xlane.f32.xlu2 %v1346_v24 }
 0x828   : > { %v1348_v63 = vpop.xlane.xlu2 %1347 }
 0x829   : > { %v1351_v25 = vmul.f32 %v1348_v63, %v2343_v21 }
 0x82b   : > { %v1353_v27 = vsub.f32 %v1345_v18, %v1351_v25 }
 0x82d   : > { %v1355_v28 = vmul.f32 %v1353_v27, %v1353_v27 }
 0x82f   : > { %1357 = vadd.xlane.f32.xlu2 %v1355_v28 }
 0x830   : > { %v1350_v29 = vpop.xlane.xlu2 %1349 }
 0x831   : > { %v1352_v30 = vmul.f32 %v1350_v29, %v2343_v21 }
 0x833   : > { %v1354_v31 = vsub.f32 %v1346_v24, %v1352_v30 }
 0x835   : > { %v1356_v32 = vmul.f32 %v1354_v31, %v1354_v31 }
 0x837   : > { %1359 = vadd.xlane.f32.xlu1 %v1356_v32 }
 0x8a2   : > { %v1358_v33 = vpop.xlane.xlu2 %1357 }
 0x8a3   : > { %v1361_v34 = vmul.f32 %v1358_v33, %v2343_v21 }
 0x8a5   : > { %v1363_v35 = vadd.f32 1e-05, %v1361_v34 }
 0x8a7   : > { %1906 = vrsqrt.f32 %v1363_v35  ;;  %vm1371_vm10 = vweird.f32 %v1363_v35 }
 0x8aa   : > { %v1360_v36 = vpop.xlane.xlu1 %1359 }
 0x8ab   : > { %v1362_v37 = vmul.f32 %v1360_v36, %v2343_v21 }
 0x8ad   : > { %v1907_v38 = vpop.eup %1906  ;;  %v1364_v39 = vadd.f32 1e-05, %v1362_v37 }
 0x8ae   : > { %v1366_v40 = vmul.f32 %v1907_v38, %v1363_v35  ;;  %vm1372_vm9 = vweird.f32 %v1907_v38 }
 0x8af   : > { %1908 = vrsqrt.f32 %v1364_v39  ;;  %vm1373_vm11 = vmor %vm1371_vm10, %vm1372_vm9  ;;  %vm1381_vm13 = vweird.f32 %v1364_v39 }
 0x8b0   : > { %v1367_v41 = vmul.f32 %v1907_v38, %v1366_v40 }
 0x8b2   : > { %v1368_v42 = vmul.f32 0.5, %v1367_v41 }
 0x8b4   : > { %v1369_v43 = vsub.f32 1.5, %v1368_v42 }
 0x8b5   : > { %v1909_v44 = vpop.eup %1908 }
 0x8b6   : > { %v1370_v45 = vmul.f32 %v1907_v38, %v1369_v43  ;;  %v1376_v46 = vmul.f32 %v1909_v44, %v1364_v39  ;;  %vm1382_vm12 = vweird.f32 %v1909_v44 }
 0x8b7   : > { %vm1383_vm14 = vmor %vm1381_vm13, %vm1382_vm12 }
 0x8b8   : > { %v1374_v48 = vsel %vm1373_vm11, %v1907_v38, %v1370_v45  ;;  %v1377_v21 = vmul.f32 %v1909_v44, %v1376_v46 }
 0x8b9   : > { %v1385_v50 = vmul.f32 %v1374_v48, %v1353_v27 }
 0x8ba   : > { %v1378_v51 = vmul.f32 0.5, %v1377_v21 }
 0x8bb   : > { %v1390_v60 = vmul.f32 %v1882_v47, %v1385_v50 }
 0x8bc   : > { %v1379_v52 = vsub.f32 1.5, %v1378_v51 }
 0x8bd   : > { %v1395_v53 = vadd.f32 %v1883_v49, %v1390_v60 }
 0x8be   : > { %v1380_v54 = vmul.f32 %v1909_v44, %v1379_v52 }
 0x8bf   : > { %1397 = vst [vmem:[%s490_s24] sm:$0xff] %v1395_v53 }
 0x8c0   : > { %v1384_v26 = vsel %vm1383_vm14, %v1909_v44, %v1380_v54 }
 0x8c1   : > { %v1386_v55 = vmul.f32 %v1384_v26, %v1354_v31 }
 0x8c3   : > { %v1391_v56 = vmul.f32 %v1882_v47, %v1386_v55 }
 0x8c5   : > { %v1396_v57 = vadd.f32 %v1883_v49, %v1391_v56 }
 0x8c7   : > { %1398 = vst [vmem:[%s490_s24 + $0x8] sm:$0xff] %v1396_v57 }
 0x8c8 PF: > { %s25_s25 = sadd.s32 1, %s2014_s25  }
 0x8c9   : > { %p22_p7 = scmp.ge.s32.totalorder %s25_s25, 4  }
 0x8cb   :  { %24 = sbr.rel (!%p22_p7) target bundleno = 4 (0x4), region = 115 }
 0x8d0   :  { %1420 = vsyncpa [#allocation3], 1 }
 0x8d1   :  { %1422 = vsyncpa [#allocation3 + $0x1], 1 }
 0x8d2   :  { %1423 = vsyncpa [#allocation5], 1 }

// kernel: transformer_forward_pallas.3
= control target key start
LH: loop header
LB: loop body
LE: loop exit
PB: predicated region body
PF: predicated region fallthrough
CT: control target
= control target key end

     0   :  { %s2801_s0 = inlined_call_operand.vmem [shape: f32[2,16,128], index: 0, kind: input, shape index: {}]   ;;  %s2802_s1 = inlined_call_operand.vmem [shape: f32[16,128], index: 1, kind: input, shape index: {}]   ;;  %s2803_s2 = inlined_call_operand.vmem [shape: bf16[128,384], index: 2, kind: input, shape index: {}]   ;;  %s2804_s3 = inlined_call_operand.vmem [shape: f32[1,384], index: 3, kind: input, shape index: {}]   ;;  %s2805_s4 = inlined_call_operand.hbm [shape: bf16[128,128], index: 4, kind: input, shape index: {}]   ;;  %s2806_s5 = inlined_call_operand.hbm [shape: f32[1,128], index: 5, kind: input, shape index: {}]   ;;  %s2807_s6 = inlined_call_operand.vmem [shape: f32[1,128], index: 6, kind: input, shape index: {}]   ;;  %s2808_s7 = inlined_call_operand.hbm [shape: f32[1,128], index: 7, kind: input, shape index: {}]   ;;  %s2809_s8 = inlined_call_operand.hbm [shape: bf16[128,256], index: 8, kind: input, shape index: {}]   ;;  %s2810_s9 = inlined_call_operand.vmem [shape: f32[1,256], index: 9, kind: input, shape index: {}]   ;;  %s2811_s10 = inlined_call_operand.hbm [shape: bf16[256,128], index: 10, kind: input, shape index: {}]   ;;  %s2812_s11 = inlined_call_operand.hbm [shape: f32[1,128], index: 11, kind: input, shape index: {}]   ;;  %s2813_s12 = inlined_call_operand.hbm [shape: f32[1,128], index: 12, kind: input, shape index: {}]   ;;  %s2814_s13 = inlined_call_operand.hbm [shape: f32[1,128], index: 13, kind: input, shape index: {}]   ;;  %s2815_s14 = inlined_call_operand.vmem [shape: f32[2,16,128], index: 14, kind: output, shape index: {}]  }
   0x1   :  { %2817 = sst [smem:[#allocation21_spill]] %s2806_s5 }
   0x2   :  { %2818 = sst [smem:[#allocation22_spill]] %s2809_s8 }
   0x3   :  { %19 = vsyncpa [#allocation3], 0 }
   0x4   :  { %20 = vsyncpa [#allocation5], 0 }
   0x5   :  { %21 = vsyncpa [#allocation8], 0 }
   0x6   :  { %22 = vsyncpa [#allocation11], 0 }
   0x7   :  { %23 = vsyncpa [#allocation14], 0  ;;  %s2481_s29 = smov 0  }
   0x8 LB: > { %2819 = sst [smem:[#allocation20_spill]] %s2390_s29  ;;  %s2490_s17 = sadd.s32 4294967295, %s2390_s29   ;;  %s2390_s29 = sphi %s2481_s29, %s29_s29  }
   0x9   : > { %s2820_s5 = sld [smem:[#allocation21_spill]]  ;;  %p1641_p0 = scmp.ge.s32.totalorder %s2390_s29, 1 }
   0xa   : > { %p359_p1 = scmp.lt.s32.totalorder %s2390_s29, 3  ;;  %p2049_p2 = scmp.eq.s32.totalorder %s2490_s17, 0 }
   0xb   : > { %s2392_s19 = smov [#allocation4]   ;;  %s2822_s8 = sld [smem:[#allocation22_spill]] }
   0xc   : > { %p2495_p3 = pnand %p1641_p0, %p359_p1  ;;  %s396_s20 = sshll.u32 %s2392_s19, 4  ;;  %s397_s20 = int_to_ptr.vmem [resolvable:$true] %s396_s20 }
   0xd   : > { %s2393_s25 = smov [#allocation7]   ;;  %s452_s30 = sshll.u32 %s2812_s11, 4  ;;  %s453_s30 = int_to_ptr.hbm [resolvable:$true] %s452_s30 }
   0xe   : > { %p2024_p4 = pneg %p2495_p3  ;;  %s422_s26 = sshll.u32 %s2393_s25, 4  ;;  %s423_s26 = int_to_ptr.vmem [resolvable:$true] %s422_s26 }
   0xf   : > { %s394_s16 = sshll.u32 %s2820_s5, 4  ;;  %s2394_s15 = smov 128   ;;  %s395_s16 = int_to_ptr.hbm [resolvable:$true] %s394_s16 }
  0x10   : > { %p2506_p5 = pnand %p2049_p2, %p2024_p4  ;;  %s2395_s19 = smov 8  }
  0x11   : > { %s420_s23 = sshll.u32 %s2822_s8, 4  ;;  %s2396_s21 = smov [#allocation10]   ;;  %s421_s23 = int_to_ptr.hbm [resolvable:$true] %s420_s23 }
  0x12   : > { %2030 = dma.hbm_to_vmem [thread:$0]  (!%p2506_p5), %s395_s16, 16, %s397_s20, [#allocation5]  }
  0x13   : > { %2036 = dma.hbm_to_vmem [thread:$0]  (!%p2506_p5), %s421_s23, 2048, %s423_s26, [#allocation8], %s2394_s15, %s2394_s15, %s2395_s19  }
  0x14   : > { %s454_s22 = sshll.u32 %s2396_s21, 4  ;;  %s379_s29 = sshll.u32 %s2805_s4, 4  ;;  %s455_s22 = int_to_ptr.vmem [resolvable:$true] %s454_s22  ;;  %s380_s29 = int_to_ptr.hbm [resolvable:$true] %s379_s29 }
  0x15   : > { %2042 = dma.hbm_to_vmem [thread:$0]  (!%p2506_p5), %s453_s30, 16, %s455_s22, [#allocation11]  }
  0x16   : > { %s2397_s25 = smov [#allocation2]   ;;  %s409_s28 = sshll.u32 %s2808_s7, 4  ;;  %s410_s28 = int_to_ptr.hbm [resolvable:$true] %s409_s28 }
  0x17   : > { %s381_s27 = sshll.u32 %s2397_s25, 4  ;;  %s2398_s23 = smov 64   ;;  %s382_s27 = int_to_ptr.vmem [resolvable:$true] %s381_s27 }
  0x18   : > { %s2399_s26 = smov 4   ;;  %s2400_s5 = smov [#allocation6]  }
  0x19   : > { %2027 = dma.hbm_to_vmem [thread:$0]  (!%p2506_p5), %s380_s29, 1024, %s382_s27, [#allocation3], %s2398_s23, %s2398_s23, %s2399_s26  }
  0x1a   : > { %s411_s8 = sshll.u32 %s2400_s5, 4  ;;  %s437_s30 = sshll.u32 %s2811_s10, 4  ;;  %s412_s8 = int_to_ptr.vmem [resolvable:$true] %s411_s8  ;;  %s438_s30 = int_to_ptr.hbm [resolvable:$true] %s437_s30 }
  0x1b   : > { %2033 = dma.hbm_to_vmem [thread:$0]  (!%p2506_p5), %s410_s28, 16, %s412_s8, [#allocation5]  }
  0x1c   : > { %s464_s25 = sshll.u32 %s2813_s12, 4  ;;  %s2401_s16 = smov [#allocation9]   ;;  %s465_s25 = int_to_ptr.hbm [resolvable:$true] %s464_s25 }
  0x1d   : > { %s439_s20 = sshll.u32 %s2401_s16, 4  ;;  %s2402_s29 = smov [#allocation12]   ;;  %s440_s20 = int_to_ptr.vmem [resolvable:$true] %s439_s20 }
  0x1e   : > { %2039 = dma.hbm_to_vmem [thread:$0]  (!%p2506_p5), %s438_s30, 2048, %s440_s20, [#allocation8], %s2398_s23, %s2398_s23, %s2399_s26  }
  0x1f   : > { %s466_s27 = sshll.u32 %s2402_s29, 4  ;;  %s476_s19 = sshll.u32 %s2814_s13, 4  ;;  %s467_s27 = int_to_ptr.vmem [resolvable:$true] %s466_s27  ;;  %s477_s19 = int_to_ptr.hbm [resolvable:$true] %s476_s19 }
  0x20   : > { %2045 = dma.hbm_to_vmem [thread:$0]  (!%p2506_p5), %s465_s25, 16, %s467_s27, [#allocation11]  }
  0x21   : > { %s2403_s28 = smov [#allocation13]   ;;  %499 = sbr.rel (%p2495_p3) target bundleno = 2271 (0x8df), region = 76 }
  0x22   : > { %s478_s8 = sshll.u32 %s2403_s28, 4  ;;  %s479_s8 = int_to_ptr.vmem [resolvable:$true] %s478_s8 }
  0x23   : > { %2048 = dma.hbm_to_vmem [thread:$0]  (!%p2506_p5), %s477_s19, 16, %s479_s8, [#allocation14]  }
  0x26   : > { %2369 = dma.done.wait (%p2049_p2), [#allocation3], 1024  }
  0x27   : > { %2371 = vsyncadd (%p2049_p2), [#allocation3], 4294966272 }
  0x28   : > { %2373 = dma.done.wait (%p2049_p2), [#allocation5], 32  }
  0x29   : > { %2375 = vsyncadd (%p2049_p2), [#allocation5], 4294967264 }
  0x2a   : > { %2377 = dma.done.wait (%p2049_p2), [#allocation8], 4096  }
  0x2b   : > { %2379 = vsyncadd (%p2049_p2), [#allocation8], 4294963200 }
  0x2c   : > { %2381 = dma.done.wait (%p2049_p2), [#allocation11], 32  }
  0x2d   : > { %2383 = vsyncadd (%p2049_p2), [#allocation11], 4294967264 }
  0x2e   : > { %2385 = dma.done.wait (%p2049_p2), [#allocation14], 16  }
  0x2f   : > { %2387 = vsyncadd (%p2049_p2), [#allocation14], 4294967280  ;;  %v1750_v0 = vld [vmem:[%s2803_s2 + $0xa8] sm:$0xf]  ;;  %v1950_v1 = vld [vmem:[%s2803_s2 + $0xb0] sm:$0xf0] }
  0x30   : > { %v1949_v2 = vld [vmem:[%s2803_s2 + $0xac] sm:$0xf]  ;;  %v1751_v3 = vor.u32 %v1950_v1, %v1750_v0  ;;  %v1752_v4 = vld [vmem:[%s2803_s2 + $0xb4] sm:$0xf0]  ;;  %v1738_v5 = vld [vmem:[%s2803_s2 + $0x90] sm:$0xf] }
  0x31   : > { %v1947_v6 = vld [vmem:[%s2803_s2 + $0x98] sm:$0xf0]  ;;  %v1755_v7 = vor.u32 %v1949_v2, %v1752_v4  ;;  %v1946_v8 = vld [vmem:[%s2803_s2 + $0x94] sm:$0xf]  ;;  %v1740_v9 = vld [vmem:[%s2803_s2 + $0x9c] sm:$0xf0] }
  0x32   : > { %840 = vmatpush.bf16.msra.mxu0 %v1751_v3  ;;  %v1739_v10 = vor.u32 %v1947_v6, %v1738_v5  ;;  %p581_p6 = scmp.lt.s32.totalorder %s2490_s17, 1  ;;  %v1743_v11 = vor.u32 %v1946_v8, %v1740_v9  ;;  %v1726_v12 = vld [vmem:[%s2803_s2 + $0x78] sm:$0xf]  ;;  %v1944_v13 = vld [vmem:[%s2803_s2 + $0x80] sm:$0xf0]  ;;  %v597_v58 = vld [vmem:[%s2802_s1 + $0x8] sm:$0xff] }
  0x33   : > { %854 = vmatpush.bf16.msra.mxu1 %v1755_v7  ;;  %v1943_v14 = vld [vmem:[%s2803_s2 + $0x7c] sm:$0xf]  ;;  %v1728_v15 = vld [vmem:[%s2803_s2 + $0x84] sm:$0xf0]  ;;  %v1727_v16 = vor.u32 %v1944_v13, %v1726_v12  ;;  %v1714_v18 = vld [vmem:[%s2803_s2 + $0x60] sm:$0xf] }
  0x34   : > { %s2826_s17 = smov (!%p581_p6, %s2490_s17), 1  ;;  %v1731_v17 = vor.u32 %v1943_v14, %v1728_v15  ;;  %v1941_v19 = vld [vmem:[%s2803_s2 + $0x68] sm:$0xf0]  ;;  %v1940_v20 = vld [vmem:[%s2803_s2 + $0x64] sm:$0xf]  ;;  %vm884_vm0 = vcmask 523264  }
  0x35   : > { %v1716_v21 = vld [vmem:[%s2803_s2 + $0x6c] sm:$0xf0]  ;;  %v1715_v22 = vor.u32 %v1941_v19, %v1714_v18  ;;  %v1702_v23 = vld [vmem:[%s2803_s2 + $0x48] sm:$0xf]  ;;  %v1938_v24 = vld [vmem:[%s2803_s2 + $0x50] sm:$0xf0] }
  0x36   : > { %841 = vmatpush.bf16.msra.mxu0 %v1739_v10  ;;  %s1926_s23 = sshll.u32 %s2826_s17, 4  ;;  %v1719_v25 = vor.u32 %v1940_v20, %v1716_v21  ;;  %v1937_v26 = vld [vmem:[%s2803_s2 + $0x4c] sm:$0xf]  ;;  %v1758_v27 = vld [vmem:[%s2803_s2 + $0xb0] sm:$0xf]  ;;  %v1703_v33 = vor.u32 %v1938_v24, %v1702_v23  ;;  %v596_v57 = vld [vmem:[%s2802_s1] sm:$0xff] }
  0x37   : > { %855 = vmatpush.bf16.msra.mxu1 %v1743_v11  ;;  %v1951_v28 = vld [vmem:[%s2803_s2 + $0xb8] sm:$0xf0]  ;;  %v1704_v29 = vld [vmem:[%s2803_s2 + $0x54] sm:$0xf0]  ;;  %v1948_v32 = vld [vmem:[%s2803_s2 + $0xa0] sm:$0xf0]  ;;  %s585_s18 = scalar_lea.vmem %s2801_s0, %s1926_s23  ;;  %s590_s28 = scalar_lea.vmem %s2815_s14, %s1926_s23 }
  0x38   : > { %v1759_v30 = vor.u32 %v1951_v28, %v1758_v27  ;;  %v1746_v31 = vld [vmem:[%s2803_s2 + $0x98] sm:$0xf]  ;;  %v1690_v34 = vld [vmem:[%s2803_s2 + $0x30] sm:$0xf]  ;;  %v1707_v36 = vor.u32 %v1937_v26, %v1704_v29  ;;  %v1935_v37 = vld [vmem:[%s2803_s2 + $0x38] sm:$0xf0] }
  0x39   : > { %v1747_v35 = vor.u32 %v1948_v32, %v1746_v31  ;;  %v1734_v38 = vld [vmem:[%s2803_s2 + $0x80] sm:$0xf]  ;;  %v1945_v39 = vld [vmem:[%s2803_s2 + $0x88] sm:$0xf0]  ;;  %v1934_v40 = vld [vmem:[%s2803_s2 + $0x34] sm:$0xf]  ;;  %v1691_v46 = vor.u32 %v1935_v37, %v1690_v34 }
  0x3a   : > { %842 = vmatpush.bf16.msra.mxu0 %v1727_v16  ;;  %868 = vmatpush.bf16.msra.mxu2 %v1759_v30  ;;  %v1692_v41 = vld [vmem:[%s2803_s2 + $0x3c] sm:$0xf0]  ;;  %v1678_v43 = vld [vmem:[%s2803_s2 + $0x18] sm:$0xf]  ;;  %v1932_v44 = vld [vmem:[%s2803_s2 + $0x20] sm:$0xf0]  ;;  %v1735_v47 = vor.u32 %v1945_v39, %v1734_v38 }
  0x3b   : > { %856 = vmatpush.bf16.msra.mxu1 %v1731_v17  ;;  %v592_v42 = vld [vmem:[%s585_s18] sm:$0xff]  ;;  %v593_v45 = vld [vmem:[%s585_s18 + $0x8] sm:$0xff]  ;;  %v1695_v48 = vor.u32 %v1934_v40, %v1692_v41  ;;  %v1942_v50 = vld [vmem:[%s2803_s2 + $0x70] sm:$0xf0]  ;;  %v1679_v55 = vor.u32 %v1932_v44, %v1678_v43  ;;  %s2404_s20 = smov 64   ;;  %vm905_vm1 = vcmask 130048  }
  0x3c   : > { %v1722_v49 = vld [vmem:[%s2803_s2 + $0x68] sm:$0xf]  ;;  %v1931_v51 = vld [vmem:[%s2803_s2 + $0x1c] sm:$0xf]  ;;  %v594_v53 = vmul.f32 11.313708, %v592_v42 }
  0x3d   : > { %v1680_v52 = vld [vmem:[%s2803_s2 + $0x24] sm:$0xf0]  ;;  %v595_v54 = vmul.f32 11.313708, %v593_v45  ;;  %v1666_v56 = vld [vmem:[%s2803_s2] sm:$0xf]  ;;  %v1723_v59 = vor.u32 %v1942_v50, %v1722_v49 }
  0x3e   : > { %843 = vmatpush.bf16.msra.mxu0 %v1715_v22  ;;  %869 = vmatpush.bf16.msra.mxu2 %v1747_v35  ;;  %v1683_v60 = vor.u32 %v1931_v51, %v1680_v52  ;;  %v1929_v61 = vld [vmem:[%s2803_s2 + $0x8] sm:$0xf0]  ;;  %v1710_v62 = vld [vmem:[%s2803_s2 + $0x50] sm:$0xf]  ;;  %v1939_v63 = vld [vmem:[%s2803_s2 + $0x58] sm:$0xf0]  ;;  %v2708_v2 = vadd.f32 %v596_v57, %v594_v53 }
  0x3f   : > { %857 = vmatpush.bf16.msra.mxu1 %v1719_v25  ;;  %v1928_v0 = vld [vmem:[%s2803_s2 + $0x4] sm:$0xf]  ;;  %v1668_v1 = vld [vmem:[%s2803_s2 + $0xc] sm:$0xf0]  ;;  %v2710_v3 = vadd.f32 %v597_v58, %v595_v54  ;;  %v1667_v4 = vor.u32 %v1929_v61, %v1666_v56  ;;  %v1711_v5 = vor.u32 %v1939_v63, %v1710_v62  ;;  %v1698_v7 = vld [vmem:[%s2803_s2 + $0x38] sm:$0xf] }
  0x40   : > { %v1671_v6 = vor.u32 %v1928_v0, %v1668_v1  ;;  %v1936_v8 = vld [vmem:[%s2803_s2 + $0x40] sm:$0xf0]  ;;  %v1686_v11 = vld [vmem:[%s2803_s2 + $0x20] sm:$0xf]  ;;  %v1933_v12 = vld [vmem:[%s2803_s2 + $0x28] sm:$0xf0] }
  0x41   : > { %v704_v9 = vpack.c.bf16 %v2710_v3, %v2708_v2  ;;  %v1699_v10 = vor.u32 %v1936_v8, %v1698_v7  ;;  %v1687_v13 = vor.u32 %v1933_v12, %v1686_v11  ;;  %v1674_v14 = vld [vmem:[%s2803_s2 + $0x8] sm:$0xf]  ;;  %v1930_v15 = vld [vmem:[%s2803_s2 + $0x10] sm:$0xf0]  ;;  %v632_v18 = vld [vmem:[%s2804_s3] sm:$0x7] }
  0x42   : > { %844 = vmatpush.bf16.msra.mxu0 %v1703_v33  ;;  %870 = vmatpush.bf16.msra.mxu2 %v1735_v47  ;;  %v1675_v16 = vor.u32 %v1930_v15, %v1674_v14  ;;  %v707_v20 = vperm.slane %v632_v18, 1  ;;  %v706_v24 = vperm.slane %v632_v18, 0  ;;  %v708_v32 = vperm.slane %v632_v18, 2 }
  0x43   : > { %858 = vmatpush.bf16.msra.mxu1 %v1707_v36 }
  0x46   : > { %845 = vmatpush.bf16.msra.mxu0 %v1691_v46  ;;  %871 = vmatpush.bf16.msra.mxu2 %v1723_v59 }
  0x47   : > { %859 = vmatpush.bf16.msra.mxu1 %v1695_v48 }
  0x4a   : > { %846 = vmatpush.bf16.msra.mxu0 %v1679_v55  ;;  %872 = vmatpush.bf16.msra.mxu2 %v1711_v5 }
  0x4b   : > { %860 = vmatpush.bf16.msra.mxu1 %v1683_v60 }
  0x4e   : > { %847 = vmatpush.bf16.msra.mxu0 %v1667_v4  ;;  %873 = vmatpush.bf16.msra.mxu2 %v1699_v10 }
  0x4f   : > { %861 = vmatpush.bf16.msra.mxu1 %v1671_v6 }
  0x51   : > { %848 = vmatmul.bf16.vlgmr.msra.gmra.mxu0 %v704_v9 }
  0x52   : > { %862 = vmatmul.bf16.vlgmr.msra.gmra.mxu1 %v704_v9  ;;  %874 = vmatpush.bf16.msra.mxu2 %v1687_v13 }
  0x56   : > { %875 = vmatpush.bf16.msra.mxu2 %v1675_v16 }
  0x59   : > { %876 = vmatmul.bf16.vlgmr.msra.gmra.mxu2 %v704_v9 }
  0xce   : > { %v849_v19 = vpop.f32.mrf.mxu0 }
  0xcf   : > { %v863_v17 = vpop.f32.mrf.mxu1  ;;  %v850_v28 = vadd.f32 %v849_v19, %v706_v24 }
  0xd0   : > { %v864_v22 = vadd.f32 %v863_v17, %v707_v20 }
  0xd6   : > { %v851_v26 = vpop.f32.mrf.mxu0 }
  0xd7   : > { %v865_v21 = vpop.f32.mrf.mxu1  ;;  %v852_v29 = vadd.f32 %v851_v26, %v706_v24 }
  0xd8   : > { %v866_v23 = vadd.f32 %v865_v21, %v707_v20 }
  0xd9   : > { %v882_v30 = vpack.c.bf16 %v852_v29, %v850_v28 }
  0xda   : > { %v883_v25 = vpack.c.bf16 %v866_v23, %v864_v22 }
  0xdc   : > { %977 = vrot.lane.b32.xlu2 %v883_v25, %s2404_s20  ;;  %v889_v27 = vsel %vm884_vm0, %v883_v25, 0  ;;  %v877_v31 = vpop.f32.mrf.mxu2 }
  0xdd   : > { %898 = vmatpush.bf16.xpose.msra.mxu3 %v889_v27  ;;  %v878_v34 = vadd.f32 %v877_v31, %v708_v32 }
  0xe4   : > { %974 = vrot.lane.b32.xlu2 %v882_v30, %s2404_s20  ;;  %1760 = vmatmul.msk.bf16.vlgmr.msra.gmra.mxu3 %vm884_vm0, %v882_v30  ;;  %v879_v33 = vpop.f32.mrf.mxu2 }
  0xe5   : > { %v880_v35 = vadd.f32 %v879_v33, %v708_v32 }
  0xe7   : > { %v2739_v36 = vpack.c.bf16 %v880_v35, %v878_v34 }
  0xe9   : > { %966 = vmatpush.bf16.msrb.mxu3 %v2739_v36 }
 0x136   : > { %v978_v37 = vpop.permute.xlu2 %977 }
 0x137   : > { %v983_v38 = vsel %vm884_vm0, %v978_v37, 0 }
 0x138   : > { %992 = vmatpush.bf16.xpose.msra.mxu3 %v983_v38 }
 0x13e   : > { %v975_v16 = vpop.permute.xlu2 %974 }
 0x167   : > { %v900_v39 = vpop.f32.mrf.mxu3 }
 0x168   : > { %v906_v40 = vsel %vm905_vm1, %v900_v39, -inf }
 0x169   : > { %907 = vmax.xlane.f32.xlu0 %v906_v40 }
 0x16f   : > { %v902_v41 = vpop.f32.mrf.mxu3 }
 0x170   : > { %v909_v42 = vsel %vm905_vm1, %v902_v41, -inf }
 0x171   : > { %910 = vmax.xlane.f32.xlu0 %v909_v42 }
 0x1dc   : > { %v908_v43 = vpop.xlane.xlu0 %907 }
 0x1dd   : > { %v912_v44 = vsub.f32 %v900_v39, %v908_v43 }
 0x1df   : > { %v914_v45 = vmul.f32 1.442695, %v912_v44 }
 0x1e1   : > { %2098 = vpow2.f32 %v914_v45 }
 0x1e4   : > { %v911_v46 = vpop.xlane.xlu0 %910 }
 0x1e5   : > { %v913_v47 = vsub.f32 %v902_v41, %v911_v46 }
 0x1e7   : > { %v2099_v48 = vpop.eup %2098  ;;  %v916_v49 = vmul.f32 1.442695, %v913_v47 }
 0x1e8   : > { %v918_v50 = vsel %vm905_vm1, %v2099_v48, 0.0 }
 0x1e9   : > { %2100 = vpow2.f32 %v916_v49  ;;  %919 = vadd.xlane.f32.xlu1 %v918_v50 }
 0x1ef   : > { %v2101_v51 = vpop.eup %2100 }
 0x1f0   : > { %v921_v52 = vsel %vm905_vm1, %v2101_v51, 0.0 }
 0x1f1   : > { %922 = vadd.xlane.f32.xlu1 %v921_v52 }
 0x25c   : > { %v920_v53 = vpop.xlane.xlu1 %919 }
 0x25d   : > { %2102 = vrcp.f32 %v920_v53  ;;  %v935_v62 = vand.u32 2147483648, %v920_v53  ;;  %vm929_vm3 = vweird.f32 %v920_v53  ;;  %v933_v63 = vand.u32 2147483647, %v920_v53 }
 0x25f   : > { %v936_v7 = vor.u32 1.1754944e-38, %v935_v62  ;;  %vm934_vm6 = vcmp.eq.f32.partialorder %v933_v63, 8.507059e+37  ;;  %v1956_v62 = vld [vmem:[#allocation2 + $0x20] sm:$0xff]  ;;  %v1955_v63 = vld [vmem:[#allocation2 + $0x18] sm:$0xff] }
 0x263   : > { %v2103_v54 = vpop.eup %2102 }
 0x264   : > { %v925_v55 = vmul.f32 %v2103_v54, %v920_v53  ;;  %v923_v56 = vpop.xlane.xlu1 %922  ;;  %vm930_vm2 = vweird.f32 %v2103_v54 }
 0x265   : > { %2104 = vrcp.f32 %v923_v56  ;;  %vm931_vm4 = vmor %vm929_vm3, %vm930_vm2  ;;  %v950_v1 = vand.u32 2147483648, %v923_v56  ;;  %v948_v6 = vand.u32 2147483647, %v923_v56  ;;  %vm944_vm7 = vweird.f32 %v923_v56 }
 0x266   : > { %v926_v57 = vsub.f32 1.0, %v925_v55 }
 0x267   : > { %v951_v9 = vor.u32 1.1754944e-38, %v950_v1  ;;  %vm949_vm9 = vcmp.eq.f32.partialorder %v948_v6, 8.507059e+37 }
 0x268   : > { %v927_v58 = vmul.f32 %v2103_v54, %v926_v57 }
 0x26a   : > { %v928_v60 = vadd.f32 %v2103_v54, %v927_v58 }
 0x26b   : > { %v2105_v59 = vpop.eup %2104 }
 0x26c   : > { %v940_v61 = vmul.f32 %v2105_v59, %v923_v56  ;;  %v932_v4 = vsel %vm931_vm4, %v2103_v54, %v928_v60  ;;  %vm945_vm5 = vweird.f32 %v2105_v59  ;;  %v1958_v60 = vld [vmem:[#allocation2 + $0x30] sm:$0xff] }
 0x26d   : > { %vm946_vm8 = vmor %vm944_vm7, %vm945_vm5  ;;  %v937_v10 = vsel %vm934_vm6, %v936_v7, %v932_v4  ;;  %v1953_v4 = vld [vmem:[#allocation2 + $0x8] sm:$0xff]  ;;  %v1952_v7 = vld [vmem:[#allocation2] sm:$0xff] }
 0x26e   : > { %v941_v0 = vsub.f32 1.0, %v940_v61  ;;  %v938_v13 = vmul.f32 %v2099_v48, %v937_v10  ;;  %v1957_v61 = vld [vmem:[#allocation2 + $0x28] sm:$0xff] }
 0x270   : > { %v942_v5 = vmul.f32 %v2105_v59, %v941_v0  ;;  %v1954_v0 = vld [vmem:[#allocation2 + $0x10] sm:$0xff] }
 0x272   : > { %v943_v8 = vadd.f32 %v2105_v59, %v942_v5 }
 0x274   : > { %v947_v11 = vsel %vm946_vm8, %v2105_v59, %v943_v8  ;;  %v1959_v59 = vld [vmem:[#allocation2 + $0x38] sm:$0xff] }
 0x275   : > { %v952_v12 = vsel %vm949_vm9, %v951_v9, %v947_v11  ;;  %1131 = vmatpush.bf16.msrb.mxu1 %v1959_v59  ;;  %v1967_v59 = vld [vmem:[#allocation7 + $0x34] sm:$0xf0] }
 0x276   : > { %v953_v14 = vmul.f32 %v2101_v51, %v952_v12 }
 0x278   : > { %v954_v15 = vpack.c.bf16 %v953_v14, %v938_v13  ;;  %v2092_v14 = vld [vmem:[#allocation4] ss:$0 sm:$0xff] }
 0x279   : > { %1132 = vmatpush.bf16.msrb.mxu1 %v1958_v60  ;;  %v1966_v60 = vld [vmem:[#allocation7 + $0x34] sm:$0xf] }
 0x27a   : > { %1761 = vmatmul.msk.bf16.vlgmr.msrb.gmra.mxu3 %vm905_vm1, %v954_v15 }
 0x27d   : > { %1133 = vmatpush.bf16.msrb.mxu1 %v1957_v61 }
 0x281   : > { %1134 = vmatpush.bf16.msrb.mxu1 %v1956_v62  ;;  %v1824_v62 = vld [vmem:[#allocation7 + $0x38] sm:$0xf0] }
 0x285   : > { %1135 = vmatpush.bf16.msrb.mxu1 %v1955_v63  ;;  %v1827_v63 = vor.u32 %v1966_v60, %v1824_v62  ;;  %v1986_v60 = vld [vmem:[#allocation9 + $0x50] sm:$0xff]  ;;  %v1985_v62 = vld [vmem:[#allocation9 + $0x48] sm:$0xff] }
 0x289   : > { %1136 = vmatpush.bf16.msrb.mxu1 %v1954_v0  ;;  %v1814_v0 = vld [vmem:[#allocation7 + $0x20] sm:$0xf] }
 0x28a   : > { %1762 = vmatmul.msk.bf16.vlgmr.msra.gmra.mxu3 %vm884_vm0, %v975_v16 }
 0x28d   : > { %1137 = vmatpush.bf16.msrb.mxu1 %v1953_v4  ;;  %v1964_v4 = vld [vmem:[#allocation7 + $0x24] sm:$0xf] }
 0x291   : > { %1138 = vmatpush.bf16.msrb.mxu1 %v1952_v7 }
 0x2fd   : > { %v2749_v17 = vpop.f32.mrf.mxu3 }
 0x305   : > { %v2751_v18 = vpop.f32.mrf.mxu3 }
 0x30d   : > { %v994_v19 = vpop.f32.mrf.mxu3 }
 0x30e   : > { %v999_v20 = vsel %vm905_vm1, %v994_v19, -inf }
 0x30f   : > { %1000 = vmax.xlane.f32.xlu0 %v999_v20 }
 0x315   : > { %v996_v21 = vpop.f32.mrf.mxu3 }
 0x316   : > { %v1002_v22 = vsel %vm905_vm1, %v996_v21, -inf }
 0x317   : > { %1003 = vmax.xlane.f32.xlu1 %v1002_v22 }
 0x330   : > { %1049 = vrot.lane.b32.xlu1 %v2739_v36, %s2404_s20 }
 0x382   : > { %v1001_v23 = vpop.xlane.xlu0 %1000 }
 0x383   : > { %v1005_v24 = vsub.f32 %v994_v19, %v1001_v23  ;;  %v2405_v23 = vmov 128.0  }
 0x385   : > { %v1007_v25 = vmul.f32 1.442695, %v1005_v24 }
 0x387   : > { %2106 = vpow2.f32 %v1007_v25 }
 0x38a   : > { %v1004_v26 = vpop.xlane.xlu1 %1003 }
 0x38b   : > { %v1006_v27 = vsub.f32 %v996_v21, %v1004_v26 }
 0x38d   : > { %v2107_v28 = vpop.eup %2106  ;;  %v1009_v29 = vmul.f32 1.442695, %v1006_v27 }
 0x38e   : > { %v1011_v30 = vsel %vm905_vm1, %v2107_v28, 0.0 }
 0x38f   : > { %2108 = vpow2.f32 %v1009_v29  ;;  %1012 = vadd.xlane.f32.xlu2 %v1011_v30 }
 0x395   : > { %v2109_v31 = vpop.eup %2108 }
 0x396   : > { %v1014_v32 = vsel %vm905_vm1, %v2109_v31, 0.0 }
 0x397   : > { %1015 = vadd.xlane.f32.xlu0 %v1014_v32 }
 0x3a2   : > { %v1050_v33 = vpop.permute.xlu1 %1049 }
 0x3a3   : > { %1062 = vmatpush.bf16.msrb.mxu0 %v1050_v33 }
 0x402   : > { %v1013_v34 = vpop.xlane.xlu2 %1012 }
 0x403   : > { %2110 = vrcp.f32 %v1013_v34  ;;  %v1028_v43 = vand.u32 2147483648, %v1013_v34  ;;  %vm1022_vm11 = vweird.f32 %v1013_v34  ;;  %v1026_v44 = vand.u32 2147483647, %v1013_v34 }
 0x405   : > { %v1029_v50 = vor.u32 1.1754944e-38, %v1028_v43  ;;  %vm1027_vm14 = vcmp.eq.f32.partialorder %v1026_v44, 8.507059e+37  ;;  %v1848_v44 = vld [vmem:[#allocation7 + $0x68] sm:$0xf0] }
 0x409   : > { %v2111_v35 = vpop.eup %2110 }
 0x40a   : > { %v1018_v36 = vmul.f32 %v2111_v35, %v1013_v34  ;;  %v1016_v37 = vpop.xlane.xlu0 %1015  ;;  %vm1023_vm10 = vweird.f32 %v2111_v35  ;;  %v1854_v34 = vld [vmem:[#allocation7 + $0x70] sm:$0xf] }
 0x40b   : > { %2112 = vrcp.f32 %v1016_v37  ;;  %vm1024_vm12 = vmor %vm1022_vm11, %vm1023_vm10  ;;  %v1043_v46 = vand.u32 2147483648, %v1016_v37  ;;  %v1041_v49 = vand.u32 2147483647, %v1016_v37  ;;  %vm1037_vm15 = vweird.f32 %v1016_v37 }
 0x40c   : > { %v1019_v38 = vsub.f32 1.0, %v1018_v36  ;;  %2114 = vrcp.f32 %v2405_v23  ;;  %v1974_v36 = vld [vmem:[#allocation7 + $0x74] sm:$0xf] }
 0x40d   : > { %v1044_v52 = vor.u32 1.1754944e-38, %v1043_v46  ;;  %vm1042_vm3 = vcmp.eq.f32.partialorder %v1041_v49, 8.507059e+37  ;;  %v1838_v46 = vld [vmem:[#allocation7 + $0x50] sm:$0xf] }
 0x40e   : > { %v1020_v39 = vmul.f32 %v2111_v35, %v1019_v38  ;;  %v1856_v38 = vld [vmem:[#allocation7 + $0x78] sm:$0xf0] }
 0x410   : > { %v1021_v41 = vadd.f32 %v2111_v35, %v1020_v39  ;;  %v1859_v39 = vor.u32 %v1974_v36, %v1856_v38  ;;  %v1988_v38 = vld [vmem:[#allocation9 + $0x60] sm:$0xff] }
 0x411   : > { %v2113_v40 = vpop.eup %2112 }
 0x412   : > { %v1033_v42 = vmul.f32 %v2113_v40, %v1016_v37  ;;  %v1025_v47 = vsel %vm1024_vm12, %v2111_v35, %v1021_v41  ;;  %vm1038_vm13 = vweird.f32 %v2113_v40  ;;  %v2115_v24 = vpop.eup %2114  ;;  %v1975_v35 = vld [vmem:[#allocation7 + $0x74] sm:$0xf0]  ;;  %1304 = vmatpush.bf16.msrb.mxu3 %v1859_v39  ;;  %v1973_v41 = vld [vmem:[#allocation7 + $0x64] sm:$0xf0] }
 0x413   : > { %vm1039_vm2 = vmor %vm1037_vm15, %vm1038_vm13  ;;  %v1030_v53 = vsel %vm1027_vm14, %v1029_v50, %v1025_v47  ;;  %v1855_v37 = vor.u32 %v1975_v35, %v1854_v34  ;;  %v1971_v47 = vld [vmem:[#allocation7 + $0x54] sm:$0xf0]  ;;  %v1840_v50 = vld [vmem:[#allocation7 + $0x58] sm:$0xf0] }
 0x414   : > { %v1034_v45 = vsub.f32 1.0, %v1033_v42  ;;  %v1031_v56 = vmul.f32 %v2107_v28, %v1030_v53  ;;  %v1972_v42 = vld [vmem:[#allocation7 + $0x64] sm:$0xf]  ;;  %v1839_v49 = vor.u32 %v1971_v47, %v1838_v46  ;;  %v1969_v53 = vld [vmem:[#allocation7 + $0x44] sm:$0xf0] }
 0x415   : > { %1290 = vmatpush.bf16.msrb.mxu2 %v1855_v37  ;;  %v1989_v34 = vld [vmem:[#allocation9 + $0x68] sm:$0xff]  ;;  %v1980_v37 = vld [vmem:[#allocation9 + $0x20] sm:$0xff] }
 0x416   : > { %v1035_v48 = vmul.f32 %v2113_v40, %v1034_v45  ;;  %v1851_v45 = vor.u32 %v1972_v42, %v1848_v44 }
 0x418   : > { %v1036_v51 = vadd.f32 %v2113_v40, %v1035_v48  ;;  %1305 = vmatpush.bf16.msrb.mxu3 %v1851_v45  ;;  %v1970_v48 = vld [vmem:[#allocation7 + $0x54] sm:$0xf] }
 0x41a   : > { %v1040_v54 = vsel %vm1039_vm2, %v2113_v40, %v1036_v51  ;;  %v1846_v40 = vld [vmem:[#allocation7 + $0x60] sm:$0xf]  ;;  %v1843_v51 = vor.u32 %v1970_v48, %v1840_v50  ;;  %v2093_v48 = vld [vmem:[%s2807_s6] ss:$0 sm:$0xff] }
 0x41b   : > { %v1045_v55 = vsel %vm1042_vm3, %v1044_v52, %v1040_v54  ;;  %v1847_v43 = vor.u32 %v1973_v41, %v1846_v40  ;;  %v1830_v52 = vld [vmem:[#allocation7 + $0x40] sm:$0xf]  ;;  %v1968_v54 = vld [vmem:[#allocation7 + $0x44] sm:$0xf] }
 0x41c   : > { %v1046_v57 = vmul.f32 %v2109_v31, %v1045_v55  ;;  %1306 = vmatpush.bf16.msrb.mxu3 %v1843_v51  ;;  %v1831_v55 = vor.u32 %v1969_v53, %v1830_v52  ;;  %v2094_v53 = vld [vmem:[#allocation6] ss:$0 sm:$0xff] }
 0x41d   : > { %1291 = vmatpush.bf16.msrb.mxu2 %v1847_v43 }
 0x41e   : > { %v1047_v58 = vpack.c.bf16 %v1046_v57, %v1031_v56  ;;  %v1832_v56 = vld [vmem:[#allocation7 + $0x48] sm:$0xf0] }
 0x41f   : > { %v1835_v57 = vor.u32 %v1968_v54, %v1832_v56 }
 0x420   : > { %1763 = vmatmul.msk.bf16.vlgmr.msrb.gmra.mxu0 %vm905_vm1, %v1047_v58  ;;  %v1822_v58 = vld [vmem:[#allocation7 + $0x30] sm:$0xf] }
 0x421   : > { %1292 = vmatpush.bf16.msrb.mxu2 %v1839_v49  ;;  %1307 = vmatpush.bf16.msrb.mxu3 %v1835_v57  ;;  %v1823_v61 = vor.u32 %v1967_v59, %v1822_v58  ;;  %v1979_v58 = vld [vmem:[#allocation9 + $0x18] sm:$0xff]  ;;  %v1978_v59 = vld [vmem:[#allocation9 + $0x10] sm:$0xff] }
 0x425   : > { %1293 = vmatpush.bf16.msrb.mxu2 %v1831_v55  ;;  %1308 = vmatpush.bf16.msrb.mxu3 %v1827_v63  ;;  %v1984_v63 = vld [vmem:[#allocation9 + $0x40] sm:$0xff] }
 0x429   : > { %1294 = vmatpush.bf16.msrb.mxu2 %v1823_v61  ;;  %v1977_v61 = vld [vmem:[#allocation9 + $0x8] sm:$0xff] }
 0x49d   : > { %v1064_v1 = vpop.f32.mrf.mxu0 }
 0x4a5   : > { %v1066_v5 = vpop.f32.mrf.mxu0 }
 0x4a6   : > { %v2087_v6 = vpack.i.bf16 %v1066_v5, %v1064_v1  ;;  %v1965_v1 = vld [vmem:[#allocation7 + $0x24] sm:$0xf0] }
 0x4a7   : > { %v1815_v5 = vor.u32 %v1965_v1, %v1814_v0  ;;  %v668_v0 = vld [vmem:[%s2810_s9] sm:$0x3] }
 0x4a8   : > { %2088 = vrot.lane.b32.xlu0 %v2087_v6, %s2404_s20  ;;  %v1816_v6 = vld [vmem:[#allocation7 + $0x28] sm:$0xf0] }
 0x4a9   : > { %v1819_v7 = vor.u32 %v1964_v4, %v1816_v6  ;;  %1295 = vmatpush.bf16.msrb.mxu2 %v1815_v5  ;;  %v1206_v5 = vperm.slane %v668_v0, 0  ;;  %v1207_v6 = vperm.slane %v668_v0, 1 }
 0x4ab   : > { %1309 = vmatpush.bf16.msrb.mxu3 %v1819_v7 }
 0x51a   : > { %v2089_v8 = vpop.permute.xlu0 %2088 }
 0x51b   : > { %v2091_v9 = vunpack.i.h.bf16 %v2089_v8  ;;  %v2090_v10 = vunpack.i.l.bf16 %v2089_v8  ;;  %v1806_v8 = vld [vmem:[#allocation7 + $0x10] sm:$0xf] }
 0x51d   : > { %v1077_v11 = vsel %vm884_vm0, %v2749_v17, %v2090_v10  ;;  %v1078_v12 = vsel %vm884_vm0, %v2751_v18, %v2091_v9  ;;  %v1152_v17 = vmul.f32 128.0, %v2115_v24  ;;  %vm1156_vm0 = vweird.f32 %v2115_v24  ;;  %v1963_v9 = vld [vmem:[#allocation7 + $0x14] sm:$0xf0]  ;;  %v1962_v10 = vld [vmem:[#allocation7 + $0x14] sm:$0xf] }
 0x51e   : > { %v1079_v13 = vpack.c.bf16 %v1078_v12, %v1077_v11  ;;  %v1807_v11 = vor.u32 %v1963_v9, %v1806_v8  ;;  %v1808_v12 = vld [vmem:[#allocation7 + $0x18] sm:$0xf0] }
 0x51f   : > { %v1153_v25 = vsub.f32 1.0, %v1152_v17  ;;  %v1983_v17 = vld [vmem:[#allocation9 + $0x38] sm:$0xff] }
 0x520   : > { %1139 = vmatmul.bf16.vlgmr.msrb.gmra.mxu1 %v1079_v13  ;;  %v1811_v13 = vor.u32 %v1962_v10, %v1808_v12  ;;  %1296 = vmatpush.bf16.msrb.mxu2 %v1807_v11 }
 0x521   : > { %v1154_v26 = vmul.f32 %v2115_v24, %v1153_v25  ;;  %v1991_v25 = vld [vmem:[#allocation9 + $0x78] sm:$0xff]  ;;  %1423 = vmatpush.bf16.msra.mxu0 %v1983_v17 }
 0x522   : > { %1310 = vmatpush.bf16.msrb.mxu3 %v1811_v13  ;;  %1437 = vmatpush.bf16.msra.mxu1 %v1991_v25 }
 0x523   : > { %v1155_v18 = vadd.f32 %v2115_v24, %v1154_v26 }
 0x525   : > { %v2767_v27 = vsel %vm1156_vm0, %v2115_v24, %v1155_v18 }
 0x59d   : > { %v1140_v15 = vpop.f32.mrf.mxu1 }
 0x59e   : > { %v1141_v16 = vadd.f32 %v2092_v14, %v1140_v15  ;;  %v1961_v15 = vld [vmem:[#allocation7 + $0x4] sm:$0xf0] }
 0x5a0   : > { %v1145_v19 = vadd.f32 %v1141_v16, %v2708_v2  ;;  %v1960_v16 = vld [vmem:[#allocation7 + $0x4] sm:$0xf] }
 0x5a2   : > { %1147 = vadd.xlane.f32.xlu1 %v1145_v19 }
 0x5a5   : > { %v1142_v20 = vpop.f32.mrf.mxu1 }
 0x5a6   : > { %v1143_v21 = vadd.f32 %v2092_v14, %v1142_v20  ;;  %v1798_v14 = vld [vmem:[#allocation7] sm:$0xf] }
 0x5a7   : > { %v1799_v20 = vor.u32 %v1961_v15, %v1798_v14 }
 0x5a8   : > { %v1146_v22 = vadd.f32 %v1143_v21, %v2710_v3  ;;  %v1800_v21 = vld [vmem:[#allocation7 + $0x8] sm:$0xf0] }
 0x5a9   : > { %v1803_v23 = vor.u32 %v1960_v16, %v1800_v21  ;;  %1297 = vmatpush.bf16.msrb.mxu2 %v1799_v20  ;;  %v2095_v21 = vld [vmem:[#allocation10] ss:$0 sm:$0xff] }
 0x5aa   : > { %1149 = vadd.xlane.f32.xlu0 %v1146_v22 }
 0x5ab   : > { %1311 = vmatpush.bf16.msrb.mxu3 %v1803_v23 }
 0x615   : > { %v1148_v28 = vpop.xlane.xlu1 %1147 }
 0x616   : > { %v1158_v29 = vmul.f32 %v2767_v27, %v1148_v28  ;;  %v1982_v28 = vld [vmem:[#allocation9 + $0x30] sm:$0xff] }
 0x617   : > { %1424 = vmatpush.bf16.msra.mxu0 %v1982_v28 }
 0x618   : > { %v2770_v2 = vsub.f32 %v1145_v19, %v1158_v29  ;;  %v1990_v29 = vld [vmem:[#allocation9 + $0x70] sm:$0xff] }
 0x619   : > { %1438 = vmatpush.bf16.msra.mxu1 %v1990_v29 }
 0x61a   : > { %v1162_v30 = vmul.f32 %v2770_v2, %v2770_v2 }
 0x61c   : > { %1164 = vadd.xlane.f32.xlu2 %v1162_v30 }
 0x61d   : > { %v1150_v3 = vpop.xlane.xlu0 %1149  ;;  %1439 = vmatpush.bf16.msra.mxu1 %v1989_v34 }
 0x61e   : > { %v1159_v31 = vmul.f32 %v2767_v27, %v1150_v3 }
 0x620   : > { %v2775_v32 = vsub.f32 %v1146_v22, %v1159_v31 }
 0x621   : > { %1440 = vmatpush.bf16.msra.mxu1 %v1988_v38 }
 0x622   : > { %v1163_v33 = vmul.f32 %v2775_v32, %v2775_v32 }
 0x624   : > { %1166 = vadd.xlane.f32.xlu2 %v1163_v33  ;;  %v1981_v33 = vld [vmem:[#allocation9 + $0x28] sm:$0xff] }
 0x625   : > { %1425 = vmatpush.bf16.msra.mxu0 %v1981_v33 }
 0x629   : > { %1426 = vmatpush.bf16.msra.mxu0 %v1980_v37 }
 0x62d   : > { %1427 = vmatpush.bf16.msra.mxu0 %v1979_v58 }
 0x631   : > { %1428 = vmatpush.bf16.msra.mxu0 %v1978_v59 }
 0x635   : > { %1429 = vmatpush.bf16.msra.mxu0 %v1977_v61 }
 0x68f   : > { %v1165_v19 = vpop.xlane.xlu2 %1164 }
 0x690   : > { %v1168_v22 = vmul.f32 %v1165_v19, %v2767_v27 }
 0x692   : > { %v1170_v24 = vadd.f32 1e-05, %v1168_v22 }
 0x694   : > { %2116 = vrsqrt.f32 %v1170_v24  ;;  %vm1178_vm4 = vweird.f32 %v1170_v24 }
 0x697   : > { %v1167_v26 = vpop.xlane.xlu2 %1166 }
 0x698   : > { %v1169_v18 = vmul.f32 %v1167_v26, %v2767_v27 }
 0x69a   : > { %v2117_v30 = vpop.eup %2116  ;;  %v1171_v3 = vadd.f32 1e-05, %v1169_v18 }
 0x69b   : > { %v1173_v31 = vmul.f32 %v2117_v30, %v1170_v24  ;;  %vm1179_vm1 = vweird.f32 %v2117_v30 }
 0x69c   : > { %2118 = vrsqrt.f32 %v1171_v3  ;;  %vm1180_vm5 = vmor %vm1178_vm4, %vm1179_vm1  ;;  %vm1188_vm7 = vweird.f32 %v1171_v3 }
 0x69d   : > { %v1174_v35 = vmul.f32 %v2117_v30, %v1173_v31 }
 0x69f   : > { %v1175_v36 = vmul.f32 0.5, %v1174_v35 }
 0x6a1   : > { %v1176_v39 = vsub.f32 1.5, %v1175_v36 }
 0x6a2   : > { %v2119_v40 = vpop.eup %2118 }
 0x6a3   : > { %v1177_v41 = vmul.f32 %v2117_v30, %v1176_v39  ;;  %v1183_v42 = vmul.f32 %v2119_v40, %v1171_v3  ;;  %vm1189_vm6 = vweird.f32 %v2119_v40 }
 0x6a4   : > { %vm1190_vm8 = vmor %vm1188_vm7, %vm1189_vm6 }
 0x6a5   : > { %v1184_v43 = vmul.f32 %v2119_v40, %v1183_v42  ;;  %v1181_v44 = vsel %vm1180_vm5, %v2117_v30, %v1177_v41 }
 0x6a6   : > { %v1192_v47 = vmul.f32 %v1181_v44, %v2770_v2  ;;  %v1987_v2 = vld [vmem:[#allocation9 + $0x58] sm:$0xff] }
 0x6a7   : > { %v1185_v45 = vmul.f32 0.5, %v1184_v43  ;;  %1441 = vmatpush.bf16.msra.mxu1 %v1987_v2 }
 0x6a8   : > { %v1197_v52 = vmul.f32 %v2093_v48, %v1192_v47 }
 0x6a9   : > { %v1186_v46 = vsub.f32 1.5, %v1185_v45 }
 0x6aa   : > { %v1202_v55 = vadd.f32 %v2094_v53, %v1197_v52 }
 0x6ab   : > { %v1187_v49 = vmul.f32 %v2119_v40, %v1186_v46  ;;  %1442 = vmatpush.bf16.msra.mxu1 %v1986_v60 }
 0x6ad   : > { %v1191_v50 = vsel %vm1190_vm8, %v2119_v40, %v1187_v49 }
 0x6ae   : > { %v1193_v51 = vmul.f32 %v1191_v50, %v2775_v32  ;;  %v1976_v32 = vld [vmem:[#allocation9] sm:$0xff] }
 0x6af   : > { %1443 = vmatpush.bf16.msra.mxu1 %v1985_v62  ;;  %1430 = vmatpush.bf16.msra.mxu0 %v1976_v32 }
 0x6b0   : > { %v1198_v54 = vmul.f32 %v2093_v48, %v1193_v51 }
 0x6b2   : > { %v1203_v56 = vadd.f32 %v2094_v53, %v1198_v54  ;;  %v2096_v53 = vld [vmem:[#allocation12] ss:$0 sm:$0xff] }
 0x6b3   : > { %1444 = vmatpush.bf16.msra.mxu1 %v1984_v63 }
 0x6b4   : > { %v1204_v57 = vpack.c.bf16 %v1203_v56, %v1202_v55 }
 0x6b6   : > { %1298 = vmatmul.bf16.vlgmr.msrb.gmra.mxu2 %v1204_v57  ;;  %1312 = vmatmul.bf16.vlgmr.msrb.gmra.mxu3 %v1204_v57 }
 0x739   : > { %v1299_v1 = vpop.f32.mrf.mxu2  ;;  %v1313_v4 = vpop.f32.mrf.mxu3 }
 0x73a   : > { %v1300_v7 = vadd.f32 %v1299_v1, %v1206_v5  ;;  %v1314_v8 = vadd.f32 %v1313_v4, %v1207_v6 }
 0x73c   : > { %v1318_v13 = vmax.f32 %v1300_v7, 0.0  ;;  %v1319_v14 = vmax.f32 %v1314_v8, 0.0 }
 0x741   : > { %v1301_v9 = vpop.f32.mrf.mxu2  ;;  %v1315_v10 = vpop.f32.mrf.mxu3 }
 0x742   : > { %v1302_v11 = vadd.f32 %v1301_v9, %v1206_v5  ;;  %v1316_v12 = vadd.f32 %v1315_v10, %v1207_v6 }
 0x744   : > { %v1320_v15 = vmax.f32 %v1302_v11, 0.0  ;;  %v1321_v16 = vmax.f32 %v1316_v12, 0.0 }
 0x746   : > { %v1322_v19 = vpack.c.bf16 %v1320_v15, %v1318_v13  ;;  %v1323_v20 = vpack.c.bf16 %v1321_v16, %v1319_v14 }
 0x748   : > { %1431 = vmatmul.bf16.vlgmr.msra.gmra.mxu0 %v1322_v19  ;;  %1445 = vmatmul.bf16.vlgmr.msra.gmra.mxu1 %v1323_v20 }
 0x7c5   : > { %v1432_v22 = vpop.f32.mrf.mxu0  ;;  %v1446_v23 = vpop.f32.mrf.mxu1 }
 0x7c6   : > { %v1433_v24 = vadd.f32 %v2095_v21, %v1432_v22 }
 0x7c8   : > { %v1447_v17 = vadd.f32 %v1446_v23, %v1433_v24 }
 0x7ca   : > { %v1451_v25 = vadd.f32 %v1447_v17, %v1202_v55 }
 0x7cc   : > { %1453 = vadd.xlane.f32.xlu2 %v1451_v25 }
 0x7cd   : > { %v1434_v26 = vpop.f32.mrf.mxu0  ;;  %v1448_v28 = vpop.f32.mrf.mxu1 }
 0x7ce   : > { %v1435_v18 = vadd.f32 %v2095_v21, %v1434_v26 }
 0x7d0   : > { %v1449_v29 = vadd.f32 %v1448_v28, %v1435_v18 }
 0x7d2   : > { %v1452_v30 = vadd.f32 %v1449_v29, %v1203_v56  ;;  %v2097_v56 = vld [vmem:[#allocation13] ss:$0 sm:$0xff] }
 0x7d4   : > { %1455 = vadd.xlane.f32.xlu2 %v1452_v30 }
 0x83f   : > { %v1454_v3 = vpop.xlane.xlu2 %1453 }
 0x840   : > { %v1457_v31 = vmul.f32 %v1454_v3, %v2767_v27 }
 0x842   : > { %v1459_v33 = vsub.f32 %v1451_v25, %v1457_v31 }
 0x844   : > { %v1461_v34 = vmul.f32 %v1459_v33, %v1459_v33 }
 0x846   : > { %1463 = vadd.xlane.f32.xlu2 %v1461_v34 }
 0x847   : > { %v1456_v35 = vpop.xlane.xlu2 %1455 }
 0x848   : > { %v1458_v36 = vmul.f32 %v1456_v35, %v2767_v27 }
 0x84a   : > { %v1460_v37 = vsub.f32 %v1452_v30, %v1458_v36 }
 0x84c   : > { %v1462_v38 = vmul.f32 %v1460_v37, %v1460_v37 }
 0x84e   : > { %1465 = vadd.xlane.f32.xlu1 %v1462_v38 }
 0x8b9   : > { %v1464_v39 = vpop.xlane.xlu2 %1463 }
 0x8ba   : > { %v1467_v40 = vmul.f32 %v1464_v39, %v2767_v27 }
 0x8bc   : > { %v1469_v41 = vadd.f32 1e-05, %v1467_v40 }
 0x8be   : > { %2120 = vrsqrt.f32 %v1469_v41  ;;  %vm1477_vm10 = vweird.f32 %v1469_v41 }
 0x8c1   : > { %v1466_v42 = vpop.xlane.xlu1 %1465 }
 0x8c2   : > { %v1468_v43 = vmul.f32 %v1466_v42, %v2767_v27 }
 0x8c4   : > { %v2121_v44 = vpop.eup %2120  ;;  %v1470_v45 = vadd.f32 1e-05, %v1468_v43 }
 0x8c5   : > { %v1472_v46 = vmul.f32 %v2121_v44, %v1469_v41  ;;  %vm1478_vm9 = vweird.f32 %v2121_v44 }
 0x8c6   : > { %2122 = vrsqrt.f32 %v1470_v45  ;;  %vm1479_vm11 = vmor %vm1477_vm10, %vm1478_vm9  ;;  %vm1487_vm13 = vweird.f32 %v1470_v45 }
 0x8c7   : > { %v1473_v47 = vmul.f32 %v2121_v44, %v1472_v46 }
 0x8c9   : > { %v1474_v48 = vmul.f32 0.5, %v1473_v47 }
 0x8cb   : > { %v1475_v49 = vsub.f32 1.5, %v1474_v48 }
 0x8cc   : > { %v2123_v50 = vpop.eup %2122 }
 0x8cd   : > { %v1476_v51 = vmul.f32 %v2121_v44, %v1475_v49  ;;  %v1482_v52 = vmul.f32 %v2123_v50, %v1470_v45  ;;  %vm1488_vm12 = vweird.f32 %v2123_v50 }
 0x8ce   : > { %vm1489_vm14 = vmor %vm1487_vm13, %vm1488_vm12 }
 0x8cf   : > { %v1480_v54 = vsel %vm1479_vm11, %v2121_v44, %v1476_v51  ;;  %v1483_v55 = vmul.f32 %v2123_v50, %v1482_v52 }
 0x8d0   : > { %v1491_v57 = vmul.f32 %v1480_v54, %v1459_v33 }
 0x8d1   : > { %v1484_v27 = vmul.f32 0.5, %v1483_v55 }
 0x8d2   : > { %v1496_v58 = vmul.f32 %v2096_v53, %v1491_v57 }
 0x8d3   : > { %v1485_v2 = vsub.f32 1.5, %v1484_v27 }
 0x8d4   : > { %v1501_v59 = vadd.f32 %v2097_v56, %v1496_v58 }
 0x8d5   : > { %v1486_v60 = vmul.f32 %v2123_v50, %v1485_v2 }
 0x8d6   : > { %1503 = vst [vmem:[%s590_s28] sm:$0xff] %v1501_v59 }
 0x8d7   : > { %v1490_v61 = vsel %vm1489_vm14, %v2123_v50, %v1486_v60 }
 0x8d8   : > { %v1492_v62 = vmul.f32 %v1490_v61, %v1460_v37 }
 0x8da   : > { %v1497_v32 = vmul.f32 %v2096_v53, %v1492_v62 }
 0x8dc   : > { %v1502_v63 = vadd.f32 %v2097_v56, %v1497_v32 }
 0x8de   : > { %1504 = vst [vmem:[%s590_s28 + $0x8] sm:$0xff] %v1502_v63 }
 0x8df PF: > { %s2824_s8 = sld [smem:[#allocation20_spill]] }
 0x8e5   : > { %s29_s29 = sadd.s32 1, %s2824_s8  }
 0x8e6   : > { %p26_p7 = scmp.ge.s32.totalorder %s29_s29, 4  }
 0x8e8   :  { %28 = sbr.rel (!%p26_p7) target bundleno = 8 (0x8), region = 139 }
 0x8ed   :  { %1526 = vsyncpa [#allocation3], 1 }
 0x8ee   :  { %1528 = vsyncpa [#allocation3 + $0x1], 1 }
 0x8ef   :  { %1529 = vsyncpa [#allocation5], 1 }
 0x8f0   :  { %1530 = vsyncpa [#allocation8], 1 }
 0x8f1   :  { %1531 = vsyncpa [#allocation11], 1 }
 0x8f2   :  { %1532 = vsyncpa [#allocation14], 1 }

</bundles_post_ra>
